<compile_context>
chip_gen: v7x
topology: tpu7x:2x2x1
jax: 0.10.0
libtpu: 0.0.40
codegen_flags: <defaults>
</compile_context>

<pallas_src>
import jax
import jax.numpy as jnp
import numpy as np
from jax.experimental import pallas as pl
from jax.experimental.pallas import tpu as pltpu

_PARALLEL_1D = pltpu.CompilerParams(dimension_semantics=("parallel",))


# ---------------------------------------------------------------------------
# Pallas kernels
# ---------------------------------------------------------------------------
def _conv1_relu_pool_kernel(x_ref, w_ref, b_ref, o_ref):
    """Fused conv-as-matmul + bias + ReLU + 2x2 maxpool for a tile of samples.

    x_ref: (TB, 4, S, K) im2col rows grouped by the 4 corners of each 2x2 pool
                         window (S = pooled spatial positions, K = KH*KW*C)
    w_ref: (K, OC), b_ref: (1, OC), o_ref: (TB, S, OC)
    """
    tb = x_ref.shape[0]
    w = w_ref[...]
    b = b_ref[...]
    for t in range(tb):                       # static unroll, TB is small
        c0 = jnp.dot(x_ref[t, 0], w, preferred_element_type=jnp.float32)
        c1 = jnp.dot(x_ref[t, 1], w, preferred_element_type=jnp.float32)
        c2 = jnp.dot(x_ref[t, 2], w, preferred_element_type=jnp.float32)
        c3 = jnp.dot(x_ref[t, 3], w, preferred_element_type=jnp.float32)
        # bias is shared across corners and ReLU is monotone, so
        # relu(max(.)+b) == max(relu(.+b)) -> max first, one bias+relu.
        pooled = jnp.maximum(jnp.maximum(c0, c1), jnp.maximum(c2, c3))
        o_ref[t] = jnp.maximum(pooled + b, 0.0).astype(o_ref.dtype)


def _conv2_mlp_kernel(x_ref, wc_ref, bc_ref, w1_ref, b1_ref, w2_ref, b2_ref,
                      w3_ref, b3_ref, o_ref, flat_ref):
    """Fused conv2 + bias + ReLU + 2x2 maxpool + fc1/relu + fc2/relu + fc3.

    x_ref : (TB, 4, S, K) corner-grouped im2col rows (S=25, K=150)
    wc_ref: (K, OC) conv2 weight, bc_ref: (1, OC)
    w*/b* : MLP weights/biases (in, out) / (1, out)
    o_ref : (TB, 10)
    flat_ref: VMEM scratch (TB, S*OC) used to flatten the pooled map for fc1.
    """
    tb, _, s, _ = x_ref.shape
    oc = wc_ref.shape[1]
    wc = wc_ref[...]
    bc = bc_ref[...]

    rows = []
    for t in range(tb):                       # static unroll
        c0 = jnp.dot(x_ref[t, 0], wc, preferred_element_type=jnp.float32)
        c1 = jnp.dot(x_ref[t, 1], wc, preferred_element_type=jnp.float32)
        c2 = jnp.dot(x_ref[t, 2], wc, preferred_element_type=jnp.float32)
        c3 = jnp.dot(x_ref[t, 3], wc, preferred_element_type=jnp.float32)
        pooled = jnp.maximum(jnp.maximum(c0, c1), jnp.maximum(c2, c3))
        rows.append(jnp.maximum(pooled + bc, 0.0))     # (S, OC)
    act = jnp.stack(rows, axis=0)                       # (TB, S, OC)

    # Flatten (S, OC) -> S*OC features via static lane-slice stores; the fc1
    # weight rows were permuted once in prepare_params to match this order.
    for si in range(s):
        flat_ref[:, si * oc:(si + 1) * oc] = act[:, si, :]

    h = jnp.dot(flat_ref[...], w1_ref[...], preferred_element_type=jnp.float32)
    h = jnp.maximum(h + b1_ref[...], 0.0)
    h = jnp.dot(h, w2_ref[...], preferred_element_type=jnp.float32)
    h = jnp.maximum(h + b2_ref[...], 0.0)
    out = jnp.dot(h, w3_ref[...], preferred_element_type=jnp.float32) + b3_ref[...]
    o_ref[...] = out.astype(o_ref.dtype)


# ---------------------------------------------------------------------------
# Wrappers (layout glue + pallas_call plumbing)
# ---------------------------------------------------------------------------
def _build_pool_patches(x_nhwc, kh_size, kw_size):
    """im2col rows grouped by 2x2-pool corner: (N, 4, S, K), K ordered (kh,kw,c).

    Layout glue only (strided slices + concat) done in XLA; rows come out in
    exactly the order the fused kernels consume.
    """
    n, h, w, c = x_nhwc.shape
    oh, ow = h - kh_size + 1, w - kw_size + 1
    assert oh % 2 == 0 and ow % 2 == 0, "pooling expects even conv output size"
    poh, pow_ = oh // 2, ow // 2
    corners = []
    for a in (0, 1):
        for b in (0, 1):
            taps = [
                x_nhwc[:, a + kh:a + kh + oh:2, b + kw:b + kw + ow:2, :]
                for kh in range(kh_size) for kw in range(kw_size)
            ]
            corners.append(jnp.concatenate(taps, axis=-1))   # (N, POH, POW, K)
    p = jnp.stack(corners, axis=1)                            # (N, 4, POH, POW, K)
    return p.reshape(n, 4, poh * pow_, kh_size * kw_size * c)


def _pick_tile(n, max_tile):
    """Largest divisor of n that is <= max_tile (full batch if n is small)."""
    if n <= max_tile:
        return n
    for t in range(max_tile, 0, -1):
        if n % t == 0:
            return t
    return n


def _pick_tile_mult8(n, max_tile):
    """Batch tile for the fused conv2+MLP kernel: the output block's sublane
    dim is the batch tile, so it must equal the full batch or be a multiple
    of 8."""
    if n <= max_tile:
        return n
    for t in range(max_tile - max_tile % 8, 7, -8):
        if n % t == 0:
            return t
    return n   # fall back to a single grid step (full-extent block)


def conv1_relu_pool(x_nhwc, w_km, b_1m):
    """Fused Conv2d(3->6, 5, valid) + ReLU + MaxPool2d(2, 2)."""
    n = x_nhwc.shape[0]
    patches = _build_pool_patches(x_nhwc, 5, 5)              # (N, 4, S, K)
    _, _, s, k = patches.shape
    oc = w_km.shape[1]
    tb = _pick_tile(n, 8)

    return pl.pallas_call(
        _conv1_relu_pool_kernel,
        out_shape=jax.ShapeDtypeStruct((n, s, oc), jnp.float32),
        grid=(n // tb,),
        in_specs=[
            pl.BlockSpec((tb, 4, s, k), lambda i: (i, 0, 0, 0)),
            pl.BlockSpec((k, oc), lambda i: (0, 0)),
            pl.BlockSpec((1, oc), lambda i: (0, 0)),
        ],
        out_specs=pl.BlockSpec((tb, s, oc), lambda i: (i, 0, 0)),
        compiler_params=_PARALLEL_1D,
    )(patches, w_km, b_1m)


def conv2_mlp(x_nhwc, p):
    """Fused Conv2d(6->16, 5) + ReLU + MaxPool2d(2,2) + fc1/relu + fc2/relu + fc3."""
    n = x_nhwc.shape[0]
    patches = _build_pool_patches(x_nhwc, 5, 5)              # (N, 4, 25, 150)
    _, _, s, k = patches.shape
    oc = p["c2w"].shape[1]
    h1, h2, out_dim = p["w1"].shape[1], p["w2"].shape[1], p["w3"].shape[1]
    tb = _pick_tile_mult8(n, 32)

    return pl.pallas_call(
        _conv2_mlp_kernel,
        out_shape=jax.ShapeDtypeStruct((n, out_dim), jnp.float32),
        grid=(n // tb,),
        in_specs=[
            pl.BlockSpec((tb, 4, s, k), lambda i: (i, 0, 0, 0)),
            pl.BlockSpec((k, oc), lambda i: (0, 0)),
            pl.BlockSpec((1, oc), lambda i: (0, 0)),
            pl.BlockSpec((s * oc, h1), lambda i: (0, 0)),
            pl.BlockSpec((1, h1), lambda i: (0, 0)),
            pl.BlockSpec((h1, h2), lambda i: (0, 0)),
            pl.BlockSpec((1, h2), lambda i: (0, 0)),
            pl.BlockSpec((h2, out_dim), lambda i: (0, 0)),
            pl.BlockSpec((1, out_dim), lambda i: (0, 0)),
        ],
        out_specs=pl.BlockSpec((tb, out_dim), lambda i: (i, 0)),
        scratch_shapes=[pltpu.VMEM((tb, s * oc), jnp.float32)],
        compiler_params=_PARALLEL_1D,
    )(patches, p["c2w"], p["c2b"], p["w1"], p["b1"], p["w2"], p["b2"],
      p["w3"], p["b3"])


# ---------------------------------------------------------------------------
# Parameter preparation (one-time, outside the hot path) and forward pass
# ---------------------------------------------------------------------------
def prepare_params(params):
    """One-time weight re-layout: conv weights -> (KH*KW*C, OC) matching the
    patch K order; FC weights -> (in, out); fc1 input features permuted from
    torch's (c, h, w) flatten order to the (h*w, c) order the fused conv2
    kernel produces in its flatten scratch."""
    (c1w, c1b, c2w, c2b, f1w, f1b, f2w, f2b, f3w, f3b) = params
    c1 = jnp.transpose(c1w, (2, 3, 1, 0)).reshape(5 * 5 * 3, 6)
    c2 = jnp.transpose(c2w, (2, 3, 1, 0)).reshape(5 * 5 * 6, 16)
    f1 = f1w.reshape(120, 16, 25).transpose(0, 2, 1).reshape(120, 400)
    return {
        "c1w": c1, "c1b": c1b.reshape(1, 6),
        "c2w": c2, "c2b": c2b.reshape(1, 16),
        "w1": f1.T, "b1": f1b.reshape(1, 120),
        "w2": f2w.T, "b2": f2b.reshape(1, 84),
        "w3": f3w.T, "b3": f3b.reshape(1, 10),
    }


@jax.jit
def net_forward(x_nchw, p):
    n = x_nchw.shape[0]
    x = jnp.transpose(x_nchw, (0, 2, 3, 1))                  # NCHW -> NHWC once
    x = conv1_relu_pool(x, p["c1w"], p["c1b"])                # (N, 196, 6)
    x = x.reshape(n, 14, 14, 6)
    return conv2_mlp(x, p)                                    # (N, 10)


# ---------------------------------------------------------------------------
# Pure-JAX reference + init
# ---------------------------------------------------------------------------
def reference_forward(x, params):
    (c1w, c1b, c2w, c2b, f1w, f1b, f2w, f2b, f3w, f3b) = params

    def conv(x, w, b):
        y = jax.lax.conv_general_dilated(
            x, w, window_strides=(1, 1), padding="VALID",
            dimension_numbers=("NCHW", "OIHW", "NCHW"))
        return jnp.maximum(y + b[None, :, None, None], 0.0)

    def pool(x):
        return jax.lax.reduce_window(
            x, -jnp.inf, jax.lax.max,
            window_dimensions=(1, 1, 2, 2), window_strides=(1, 1, 2, 2),
            padding="VALID")

    x = pool(conv(x, c1w, c1b))
    x = pool(conv(x, c2w, c2b))
    x = x.reshape(-1, 16 * 5 * 5)
    x = jnp.maximum(x @ f1w.T + f1b, 0.0)
    x = jnp.maximum(x @ f2w.T + f2b, 0.0)
    return x @ f3w.T + f3b


def init_params(key):
    """Deterministic torch-default-style init (uniform +-1/sqrt(fan_in))."""
    keys = jax.random.split(key, 10)

    def u(k, shape, fan_in):
        bound = 1.0 / np.sqrt(fan_in)
        return jax.random.uniform(k, shape, jnp.float32, -bound, bound)

    return (
        u(keys[0], (6, 3, 5, 5), 3 * 5 * 5),   # conv1.weight
        u(keys[1], (6,), 3 * 5 * 5),           # conv1.bias
        u(keys[2], (16, 6, 5, 5), 6 * 5 * 5),  # conv2.weight
        u(keys[3], (16,), 6 * 5 * 5),          # conv2.bias
        u(keys[4], (120, 400), 400),           # fc1.weight
        u(keys[5], (120,), 400),               # fc1.bias
        u(keys[6], (84, 120), 120),            # fc2.weight
        u(keys[7], (84,), 120),                # fc2.bias
        u(keys[8], (10, 84), 84),              # fc3.weight
        u(keys[9], (10,), 84),                 # fc3.bias
    )


if __name__ == "__main__":
    key = jax.random.PRNGKey(0)
    k_x, k_p = jax.random.split(key)

    # CIFAR-10 style input (batch=2, 3 channels, 32x32) — required so the
    # flatten to 16*5*5 matches the module exactly.
    x = jax.random.normal(k_x, (2, 3, 32, 32), dtype=jnp.float32)
    params = init_params(k_p)
    prepared = prepare_params(params)          # one-time weight re-layout

    out = jax.block_until_ready(net_forward(x, prepared))
    ref = jax.block_until_ready(reference_forward(x, params))

    assert out.shape == (2, 10), out.shape
    np.testing.assert_allclose(np.asarray(out), np.asarray(ref),
                               rtol=1e-4, atol=1e-4)
    print("KERNEL_OK")
</pallas_src>

<mosaic_0001>
module attributes {stable_mosaic.version = 11 : i64} {
  func.func @_conv1_relu_pool_kernel(%arg0: i32, %arg1: memref<2x4x196x75xf32, #tpu.memory_space<vmem>>, %arg2: memref<75x6xf32, #tpu.memory_space<vmem>>, %arg3: memref<1x6xf32, #tpu.memory_space<vmem>>, %arg4: memref<2x196x6xf32, #tpu.memory_space<vmem>>) attributes {dimension_semantics = [#tpu.dimension_semantics<parallel>], iteration_bounds = array<i64: 1>, scalar_prefetch = 0 : i64, scratch_operands = 0 : i64, tpu.core_type = #tpu.core_type<tc>, window_params = [{transform_indices = @transform_0, window_bounds = array<i64: 2, 4, 196, 75>}, {pipeline_mode = #tpu.pipeline_mode<synchronous>, transform_indices = @transform_1, window_bounds = array<i64: 75, 6>}, {pipeline_mode = #tpu.pipeline_mode<synchronous>, transform_indices = @transform_2, window_bounds = array<i64: 1, 6>}, {transform_indices = @transform_3, window_bounds = array<i64: 2, 196, 6>}]} {
    %c0 = arith.constant 0 : index
    %c0_0 = arith.constant 0 : index
    %0 = vector.load %arg2[%c0, %c0_0] : memref<75x6xf32, #tpu.memory_space<vmem>>, vector<75x6xf32>
    %c0_1 = arith.constant 0 : index
    %c0_2 = arith.constant 0 : index
    %1 = vector.load %arg3[%c0_1, %c0_2] : memref<1x6xf32, #tpu.memory_space<vmem>>, vector<1x6xf32>
    %c0_3 = arith.constant 0 : index
    %c0_4 = arith.constant 0 : index
    %c0_5 = arith.constant 0 : index
    %c0_6 = arith.constant 0 : index
    %2 = vector.load %arg1[%c0_3, %c0_4, %c0_5, %c0_6] : memref<2x4x196x75xf32, #tpu.memory_space<vmem>>, vector<1x1x196x75xf32>
    %3 = vector.shape_cast %2 : vector<1x1x196x75xf32> to vector<196x75xf32>
    %cst = arith.constant dense<0.000000e+00> : vector<196x6xf32>
    %4 = tpu.matmul %3, %0, %cst {dimension_numbers = #tpu.dot_dimension_numbers<[1], [0], [0], [1], [0, 0, 1, 1], [], []>} : vector<196x75xf32>, vector<75x6xf32>, vector<196x6xf32> -> vector<196x6xf32>
    %c0_7 = arith.constant 0 : index
    %c1 = arith.constant 1 : index
    %c0_8 = arith.constant 0 : index
    %c0_9 = arith.constant 0 : index
    %5 = vector.load %arg1[%c0_7, %c1, %c0_8, %c0_9] : memref<2x4x196x75xf32, #tpu.memory_space<vmem>>, vector<1x1x196x75xf32>
    %6 = vector.shape_cast %5 : vector<1x1x196x75xf32> to vector<196x75xf32>
    %cst_10 = arith.constant dense<0.000000e+00> : vector<196x6xf32>
    %7 = tpu.matmul %6, %0, %cst_10 {dimension_numbers = #tpu.dot_dimension_numbers<[1], [0], [0], [1], [0, 0, 1, 1], [], []>} : vector<196x75xf32>, vector<75x6xf32>, vector<196x6xf32> -> vector<196x6xf32>
    %c0_11 = arith.constant 0 : index
    %c2 = arith.constant 2 : index
    %c0_12 = arith.constant 0 : index
    %c0_13 = arith.constant 0 : index
    %8 = vector.load %arg1[%c0_11, %c2, %c0_12, %c0_13] : memref<2x4x196x75xf32, #tpu.memory_space<vmem>>, vector<1x1x196x75xf32>
    %9 = vector.shape_cast %8 : vector<1x1x196x75xf32> to vector<196x75xf32>
    %cst_14 = arith.constant dense<0.000000e+00> : vector<196x6xf32>
    %10 = tpu.matmul %9, %0, %cst_14 {dimension_numbers = #tpu.dot_dimension_numbers<[1], [0], [0], [1], [0, 0, 1, 1], [], []>} : vector<196x75xf32>, vector<75x6xf32>, vector<196x6xf32> -> vector<196x6xf32>
    %c0_15 = arith.constant 0 : index
    %c3 = arith.constant 3 : index
    %c0_16 = arith.constant 0 : index
    %c0_17 = arith.constant 0 : index
    %11 = vector.load %arg1[%c0_15, %c3, %c0_16, %c0_17] : memref<2x4x196x75xf32, #tpu.memory_space<vmem>>, vector<1x1x196x75xf32>
    %12 = vector.shape_cast %11 : vector<1x1x196x75xf32> to vector<196x75xf32>
    %cst_18 = arith.constant dense<0.000000e+00> : vector<196x6xf32>
    %13 = tpu.matmul %12, %0, %cst_18 {dimension_numbers = #tpu.dot_dimension_numbers<[1], [0], [0], [1], [0, 0, 1, 1], [], []>} : vector<196x75xf32>, vector<75x6xf32>, vector<196x6xf32> -> vector<196x6xf32>
    %14 = arith.maximumf %4, %7 : vector<196x6xf32>
    %15 = arith.maximumf %10, %13 : vector<196x6xf32>
    %16 = arith.maximumf %14, %15 : vector<196x6xf32>
    %17 = vector.broadcast %1 : vector<1x6xf32> to vector<196x6xf32>
    %18 = arith.addf %16, %17 : vector<196x6xf32>
    %cst_19 = arith.constant 0.000000e+00 : f32
    %19 = vector.broadcast %cst_19 : f32 to vector<196x6xf32>
    %20 = arith.maximumf %18, %19 : vector<196x6xf32>
    %c0_20 = arith.constant 0 : index
    %c0_21 = arith.constant 0 : index
    %c0_22 = arith.constant 0 : index
    %21 = vector.load %arg4[%c0_20, %c0_21, %c0_22] : memref<2x196x6xf32, #tpu.memory_space<vmem>>, vector<1x196x6xf32>
    %22 = vector.shape_cast %21 : vector<1x196x6xf32> to vector<196x6xf32>
    %23 = vector.shape_cast %20 : vector<196x6xf32> to vector<1x196x6xf32>
    tpu.vector_store %arg4[%c0_20, %c0_21, %c0_22], %23 {strides = array<i32>} : memref<2x196x6xf32, #tpu.memory_space<vmem>>, vector<1x196x6xf32>,
    %c1_23 = arith.constant 1 : index
    %c0_24 = arith.constant 0 : index
    %c0_25 = arith.constant 0 : index
    %c0_26 = arith.constant 0 : index
    %24 = vector.load %arg1[%c1_23, %c0_24, %c0_25, %c0_26] : memref<2x4x196x75xf32, #tpu.memory_space<vmem>>, vector<1x1x196x75xf32>
    %25 = vector.shape_cast %24 : vector<1x1x196x75xf32> to vector<196x75xf32>
    %cst_27 = arith.constant dense<0.000000e+00> : vector<196x6xf32>
    %26 = tpu.matmul %25, %0, %cst_27 {dimension_numbers = #tpu.dot_dimension_numbers<[1], [0], [0], [1], [0, 0, 1, 1], [], []>} : vector<196x75xf32>, vector<75x6xf32>, vector<196x6xf32> -> vector<196x6xf32>
    %c1_28 = arith.constant 1 : index
    %c1_29 = arith.constant 1 : index
    %c0_30 = arith.constant 0 : index
    %c0_31 = arith.constant 0 : index
    %27 = vector.load %arg1[%c1_28, %c1_29, %c0_30, %c0_31] : memref<2x4x196x75xf32, #tpu.memory_space<vmem>>, vector<1x1x196x75xf32>
    %28 = vector.shape_cast %27 : vector<1x1x196x75xf32> to vector<196x75xf32>
    %cst_32 = arith.constant dense<0.000000e+00> : vector<196x6xf32>
    %29 = tpu.matmul %28, %0, %cst_32 {dimension_numbers = #tpu.dot_dimension_numbers<[1], [0], [0], [1], [0, 0, 1, 1], [], []>} : vector<196x75xf32>, vector<75x6xf32>, vector<196x6xf32> -> vector<196x6xf32>
    %c1_33 = arith.constant 1 : index
    %c2_34 = arith.constant 2 : index
    %c0_35 = arith.constant 0 : index
    %c0_36 = arith.constant 0 : index
    %30 = vector.load %arg1[%c1_33, %c2_34, %c0_35, %c0_36] : memref<2x4x196x75xf32, #tpu.memory_space<vmem>>, vector<1x1x196x75xf32>
    %31 = vector.shape_cast %30 : vector<1x1x196x75xf32> to vector<196x75xf32>
    %cst_37 = arith.constant dense<0.000000e+00> : vector<196x6xf32>
    %32 = tpu.matmul %31, %0, %cst_37 {dimension_numbers = #tpu.dot_dimension_numbers<[1], [0], [0], [1], [0, 0, 1, 1], [], []>} : vector<196x75xf32>, vector<75x6xf32>, vector<196x6xf32> -> vector<196x6xf32>
    %c1_38 = arith.constant 1 : index
    %c3_39 = arith.constant 3 : index
    %c0_40 = arith.constant 0 : index
    %c0_41 = arith.constant 0 : index
    %33 = vector.load %arg1[%c1_38, %c3_39, %c0_40, %c0_41] : memref<2x4x196x75xf32, #tpu.memory_space<vmem>>, vector<1x1x196x75xf32>
    %34 = vector.shape_cast %33 : vector<1x1x196x75xf32> to vector<196x75xf32>
    %cst_42 = arith.constant dense<0.000000e+00> : vector<196x6xf32>
    %35 = tpu.matmul %34, %0, %cst_42 {dimension_numbers = #tpu.dot_dimension_numbers<[1], [0], [0], [1], [0, 0, 1, 1], [], []>} : vector<196x75xf32>, vector<75x6xf32>, vector<196x6xf32> -> vector<196x6xf32>
    %36 = arith.maximumf %26, %29 : vector<196x6xf32>
    %37 = arith.maximumf %32, %35 : vector<196x6xf32>
    %38 = arith.maximumf %36, %37 : vector<196x6xf32>
    %39 = vector.broadcast %1 : vector<1x6xf32> to vector<196x6xf32>
    %40 = arith.addf %38, %39 : vector<196x6xf32>
    %cst_43 = arith.constant 0.000000e+00 : f32
    %41 = vector.broadcast %cst_43 : f32 to vector<196x6xf32>
    %42 = arith.maximumf %40, %41 : vector<196x6xf32>
    %c1_44 = arith.constant 1 : index
    %c0_45 = arith.constant 0 : index
    %c0_46 = arith.constant 0 : index
    %43 = vector.load %arg4[%c1_44, %c0_45, %c0_46] : memref<2x196x6xf32, #tpu.memory_space<vmem>>, vector<1x196x6xf32>
    %44 = vector.shape_cast %43 : vector<1x196x6xf32> to vector<196x6xf32>
    %45 = vector.shape_cast %42 : vector<196x6xf32> to vector<1x196x6xf32>
    tpu.vector_store %arg4[%c1_44, %c0_45, %c0_46], %45 {strides = array<i32>} : memref<2x196x6xf32, #tpu.memory_space<vmem>>, vector<1x196x6xf32>,
    return
  }
  func.func @transform_0(%arg0: i32) -> (i32, i32, i32, i32) {
    %c0_i32 = arith.constant 0 : i32
    %c0_i32_0 = arith.constant 0 : i32
    %c0_i32_1 = arith.constant 0 : i32
    %c0_i32_2 = arith.constant 0 : i32
    return %arg0, %c0_i32, %c0_i32_0, %c0_i32_1 : i32, i32, i32, i32
  }
  func.func @transform_1(%arg0: i32) -> (i32, i32) {
    %c0_i32 = arith.constant 0 : i32
    %c0_i32_0 = arith.constant 0 : i32
    %c0_i32_1 = arith.constant 0 : i32
    return %c0_i32, %c0_i32_0 : i32, i32
  }
  func.func @transform_2(%arg0: i32) -> (i32, i32) {
    %c0_i32 = arith.constant 0 : i32
    %c0_i32_0 = arith.constant 0 : i32
    %c0_i32_1 = arith.constant 0 : i32
    return %c0_i32, %c0_i32_0 : i32, i32
  }
  func.func @transform_3(%arg0: i32) -> (i32, i32, i32) {
    %c0_i32 = arith.constant 0 : i32
    %c0_i32_0 = arith.constant 0 : i32
    %c0_i32_1 = arith.constant 0 : i32
    return %arg0, %c0_i32, %c0_i32_0 : i32, i32, i32
  }
}

module attributes {stable_mosaic.version = 11 : i64} {
  func.func @_conv2_mlp_kernel(%arg0: i32, %arg1: memref<2x4x25x150xf32, #tpu.memory_space<vmem>>, %arg2: memref<150x16xf32, #tpu.memory_space<vmem>>, %arg3: memref<1x16xf32, #tpu.memory_space<vmem>>, %arg4: memref<400x120xf32, #tpu.memory_space<vmem>>, %arg5: memref<1x120xf32, #tpu.memory_space<vmem>>, %arg6: memref<120x84xf32, #tpu.memory_space<vmem>>, %arg7: memref<1x84xf32, #tpu.memory_space<vmem>>, %arg8: memref<84x10xf32, #tpu.memory_space<vmem>>, %arg9: memref<1x10xf32, #tpu.memory_space<vmem>>, %arg10: memref<2x10xf32, #tpu.memory_space<vmem>>, %arg11: memref<2x400xf32, #tpu.memory_space<vmem>>) attributes {dimension_semantics = [#tpu.dimension_semantics<parallel>], iteration_bounds = array<i64: 1>, scalar_prefetch = 0 : i64, scratch_operands = 1 : i64, tpu.core_type = #tpu.core_type<tc>, window_params = [{transform_indices = @transform_0, window_bounds = array<i64: 2, 4, 25, 150>}, {pipeline_mode = #tpu.pipeline_mode<synchronous>, transform_indices = @transform_1, window_bounds = array<i64: 150, 16>}, {pipeline_mode = #tpu.pipeline_mode<synchronous>, transform_indices = @transform_2, window_bounds = array<i64: 1, 16>}, {pipeline_mode = #tpu.pipeline_mode<synchronous>, transform_indices = @transform_3, window_bounds = array<i64: 400, 120>}, {pipeline_mode = #tpu.pipeline_mode<synchronous>, transform_indices = @transform_4, window_bounds = array<i64: 1, 120>}, {pipeline_mode = #tpu.pipeline_mode<synchronous>, transform_indices = @transform_5, window_bounds = array<i64: 120, 84>}, {pipeline_mode = #tpu.pipeline_mode<synchronous>, transform_indices = @transform_6, window_bounds = array<i64: 1, 84>}, {pipeline_mode = #tpu.pipeline_mode<synchronous>, transform_indices = @transform_7, window_bounds = array<i64: 84, 10>}, {pipeline_mode = #tpu.pipeline_mode<synchronous>, transform_indices = @transform_8, window_bounds = array<i64: 1, 10>}, {transform_indices = @transform_9, window_bounds = array<i64: 2, 10>}]} {
    %c0 = arith.constant 0 : index
    %c0_0 = arith.constant 0 : index
    %0 = vector.load %arg2[%c0, %c0_0] : memref<150x16xf32, #tpu.memory_space<vmem>>, vector<150x16xf32>
    %c0_1 = arith.constant 0 : index
    %c0_2 = arith.constant 0 : index
    %1 = vector.load %arg3[%c0_1, %c0_2] : memref<1x16xf32, #tpu.memory_space<vmem>>, vector<1x16xf32>
    %c0_3 = arith.constant 0 : index
    %c0_4 = arith.constant 0 : index
    %c0_5 = arith.constant 0 : index
    %c0_6 = arith.constant 0 : index
    %2 = vector.load %arg1[%c0_3, %c0_4, %c0_5, %c0_6] : memref<2x4x25x150xf32, #tpu.memory_space<vmem>>, vector<1x1x25x150xf32>
    %3 = vector.shape_cast %2 : vector<1x1x25x150xf32> to vector<25x150xf32>
    %cst = arith.constant dense<0.000000e+00> : vector<25x16xf32>
    %4 = tpu.matmul %3, %0, %cst {dimension_numbers = #tpu.dot_dimension_numbers<[1], [0], [0], [1], [0, 0, 1, 1], [], []>} : vector<25x150xf32>, vector<150x16xf32>, vector<25x16xf32> -> vector<25x16xf32>
    %c0_7 = arith.constant 0 : index
    %c1 = arith.constant 1 : index
    %c0_8 = arith.constant 0 : index
    %c0_9 = arith.constant 0 : index
    %5 = vector.load %arg1[%c0_7, %c1, %c0_8, %c0_9] : memref<2x4x25x150xf32, #tpu.memory_space<vmem>>, vector<1x1x25x150xf32>
    %6 = vector.shape_cast %5 : vector<1x1x25x150xf32> to vector<25x150xf32>
    %cst_10 = arith.constant dense<0.000000e+00> : vector<25x16xf32>
    %7 = tpu.matmul %6, %0, %cst_10 {dimension_numbers = #tpu.dot_dimension_numbers<[1], [0], [0], [1], [0, 0, 1, 1], [], []>} : vector<25x150xf32>, vector<150x16xf32>, vector<25x16xf32> -> vector<25x16xf32>
    %c0_11 = arith.constant 0 : index
    %c2 = arith.constant 2 : index
    %c0_12 = arith.constant 0 : index
    %c0_13 = arith.constant 0 : index
    %8 = vector.load %arg1[%c0_11, %c2, %c0_12, %c0_13] : memref<2x4x25x150xf32, #tpu.memory_space<vmem>>, vector<1x1x25x150xf32>
    %9 = vector.shape_cast %8 : vector<1x1x25x150xf32> to vector<25x150xf32>
    %cst_14 = arith.constant dense<0.000000e+00> : vector<25x16xf32>
    %10 = tpu.matmul %9, %0, %cst_14 {dimension_numbers = #tpu.dot_dimension_numbers<[1], [0], [0], [1], [0, 0, 1, 1], [], []>} : vector<25x150xf32>, vector<150x16xf32>, vector<25x16xf32> -> vector<25x16xf32>
    %c0_15 = arith.constant 0 : index
    %c3 = arith.constant 3 : index
    %c0_16 = arith.constant 0 : index
    %c0_17 = arith.constant 0 : index
    %11 = vector.load %arg1[%c0_15, %c3, %c0_16, %c0_17] : memref<2x4x25x150xf32, #tpu.memory_space<vmem>>, vector<1x1x25x150xf32>
    %12 = vector.shape_cast %11 : vector<1x1x25x150xf32> to vector<25x150xf32>
    %cst_18 = arith.constant dense<0.000000e+00> : vector<25x16xf32>
    %13 = tpu.matmul %12, %0, %cst_18 {dimension_numbers = #tpu.dot_dimension_numbers<[1], [0], [0], [1], [0, 0, 1, 1], [], []>} : vector<25x150xf32>, vector<150x16xf32>, vector<25x16xf32> -> vector<25x16xf32>
    %14 = arith.maximumf %4, %7 : vector<25x16xf32>
    %15 = arith.maximumf %10, %13 : vector<25x16xf32>
    %16 = arith.maximumf %14, %15 : vector<25x16xf32>
    %17 = vector.broadcast %1 : vector<1x16xf32> to vector<25x16xf32>
    %18 = arith.addf %16, %17 : vector<25x16xf32>
    %cst_19 = arith.constant 0.000000e+00 : f32
    %19 = vector.broadcast %cst_19 : f32 to vector<25x16xf32>
    %20 = arith.maximumf %18, %19 : vector<25x16xf32>
    %c1_20 = arith.constant 1 : index
    %c0_21 = arith.constant 0 : index
    %c0_22 = arith.constant 0 : index
    %c0_23 = arith.constant 0 : index
    %21 = vector.load %arg1[%c1_20, %c0_21, %c0_22, %c0_23] : memref<2x4x25x150xf32, #tpu.memory_space<vmem>>, vector<1x1x25x150xf32>
    %22 = vector.shape_cast %21 : vector<1x1x25x150xf32> to vector<25x150xf32>
    %cst_24 = arith.constant dense<0.000000e+00> : vector<25x16xf32>
    %23 = tpu.matmul %22, %0, %cst_24 {dimension_numbers = #tpu.dot_dimension_numbers<[1], [0], [0], [1], [0, 0, 1, 1], [], []>} : vector<25x150xf32>, vector<150x16xf32>, vector<25x16xf32> -> vector<25x16xf32>
    %c1_25 = arith.constant 1 : index
    %c1_26 = arith.constant 1 : index
    %c0_27 = arith.constant 0 : index
    %c0_28 = arith.constant 0 : index
    %24 = vector.load %arg1[%c1_25, %c1_26, %c0_27, %c0_28] : memref<2x4x25x150xf32, #tpu.memory_space<vmem>>, vector<1x1x25x150xf32>
    %25 = vector.shape_cast %24 : vector<1x1x25x150xf32> to vector<25x150xf32>
    %cst_29 = arith.constant dense<0.000000e+00> : vector<25x16xf32>
    %26 = tpu.matmul %25, %0, %cst_29 {dimension_numbers = #tpu.dot_dimension_numbers<[1], [0], [0], [1], [0, 0, 1, 1], [], []>} : vector<25x150xf32>, vector<150x16xf32>, vector<25x16xf32> -> vector<25x16xf32>
    %c1_30 = arith.constant 1 : index
    %c2_31 = arith.constant 2 : index
    %c0_32 = arith.constant 0 : index
    %c0_33 = arith.constant 0 : index
    %27 = vector.load %arg1[%c1_30, %c2_31, %c0_32, %c0_33] : memref<2x4x25x150xf32, #tpu.memory_space<vmem>>, vector<1x1x25x150xf32>
    %28 = vector.shape_cast %27 : vector<1x1x25x150xf32> to vector<25x150xf32>
    %cst_34 = arith.constant dense<0.000000e+00> : vector<25x16xf32>
    %29 = tpu.matmul %28, %0, %cst_34 {dimension_numbers = #tpu.dot_dimension_numbers<[1], [0], [0], [1], [0, 0, 1, 1], [], []>} : vector<25x150xf32>, vector<150x16xf32>, vector<25x16xf32> -> vector<25x16xf32>
    %c1_35 = arith.constant 1 : index
    %c3_36 = arith.constant 3 : index
    %c0_37 = arith.constant 0 : index
    %c0_38 = arith.constant 0 : index
    %30 = vector.load %arg1[%c1_35, %c3_36, %c0_37, %c0_38] : memref<2x4x25x150xf32, #tpu.memory_space<vmem>>, vector<1x1x25x150xf32>
    %31 = vector.shape_cast %30 : vector<1x1x25x150xf32> to vector<25x150xf32>
    %cst_39 = arith.constant dense<0.000000e+00> : vector<25x16xf32>
    %32 = tpu.matmul %31, %0, %cst_39 {dimension_numbers = #tpu.dot_dimension_numbers<[1], [0], [0], [1], [0, 0, 1, 1], [], []>} : vector<25x150xf32>, vector<150x16xf32>, vector<25x16xf32> -> vector<25x16xf32>
    %33 = arith.maximumf %23, %26 : vector<25x16xf32>
    %34 = arith.maximumf %29, %32 : vector<25x16xf32>
    %35 = arith.maximumf %33, %34 : vector<25x16xf32>
    %36 = vector.broadcast %1 : vector<1x16xf32> to vector<25x16xf32>
    %37 = arith.addf %35, %36 : vector<25x16xf32>
    %cst_40 = arith.constant 0.000000e+00 : f32
    %38 = vector.broadcast %cst_40 : f32 to vector<25x16xf32>
    %39 = arith.maximumf %37, %38 : vector<25x16xf32>
    %40 = vector.shape_cast %20 : vector<25x16xf32> to vector<1x25x16xf32>
    %41 = vector.shape_cast %39 : vector<25x16xf32> to vector<1x25x16xf32>
    %42 = tpu.concatenate %40, %41 in 0 : vector<1x25x16xf32>, vector<1x25x16xf32> -> vector<2x25x16xf32>
    %43 = vector.extract_strided_slice %42 {offsets = [0, 0, 0], sizes = [2, 1, 16], strides = [1, 1, 1]} : vector<2x25x16xf32> to vector<2x1x16xf32>
    %44 = vector.shape_cast %43 : vector<2x1x16xf32> to vector<2x16xf32>
    %c0_41 = arith.constant 0 : index
    %c0_42 = arith.constant 0 : index
    %45 = vector.load %arg11[%c0_41, %c0_42] : memref<2x400xf32, #tpu.memory_space<vmem>>, vector<2x16xf32>
    tpu.vector_store %arg11[%c0_41, %c0_42], %44 {strides = array<i32>} : memref<2x400xf32, #tpu.memory_space<vmem>>, vector<2x16xf32>,
    %46 = vector.extract_strided_slice %42 {offsets = [0, 1, 0], sizes = [2, 1, 16], strides = [1, 1, 1]} : vector<2x25x16xf32> to vector<2x1x16xf32>
    %47 = vector.shape_cast %46 : vector<2x1x16xf32> to vector<2x16xf32>
    %c0_43 = arith.constant 0 : index
    %c16 = arith.constant 16 : index
    %48 = vector.load %arg11[%c0_43, %c16] : memref<2x400xf32, #tpu.memory_space<vmem>>, vector<2x16xf32>
    tpu.vector_store %arg11[%c0_43, %c16], %47 {strides = array<i32>} : memref<2x400xf32, #tpu.memory_space<vmem>>, vector<2x16xf32>,
    %49 = vector.extract_strided_slice %42 {offsets = [0, 2, 0], sizes = [2, 1, 16], strides = [1, 1, 1]} : vector<2x25x16xf32> to vector<2x1x16xf32>
    %50 = vector.shape_cast %49 : vector<2x1x16xf32> to vector<2x16xf32>
    %c0_44 = arith.constant 0 : index
    %c32 = arith.constant 32 : index
    %51 = vector.load %arg11[%c0_44, %c32] : memref<2x400xf32, #tpu.memory_space<vmem>>, vector<2x16xf32>
    tpu.vector_store %arg11[%c0_44, %c32], %50 {strides = array<i32>} : memref<2x400xf32, #tpu.memory_space<vmem>>, vector<2x16xf32>,
    %52 = vector.extract_strided_slice %42 {offsets = [0, 3, 0], sizes = [2, 1, 16], strides = [1, 1, 1]} : vector<2x25x16xf32> to vector<2x1x16xf32>
    %53 = vector.shape_cast %52 : vector<2x1x16xf32> to vector<2x16xf32>
    %c0_45 = arith.constant 0 : index
    %c48 = arith.constant 48 : index
    %54 = vector.load %arg11[%c0_45, %c48] : memref<2x400xf32, #tpu.memory_space<vmem>>, vector<2x16xf32>
    tpu.vector_store %arg11[%c0_45, %c48], %53 {strides = array<i32>} : memref<2x400xf32, #tpu.memory_space<vmem>>, vector<2x16xf32>,
    %55 = vector.extract_strided_slice %42 {offsets = [0, 4, 0], sizes = [2, 1, 16], strides = [1, 1, 1]} : vector<2x25x16xf32> to vector<2x1x16xf32>
    %56 = vector.shape_cast %55 : vector<2x1x16xf32> to vector<2x16xf32>
    %c0_46 = arith.constant 0 : index
    %c64 = arith.constant 64 : index
    %57 = vector.load %arg11[%c0_46, %c64] : memref<2x400xf32, #tpu.memory_space<vmem>>, vector<2x16xf32>
    tpu.vector_store %arg11[%c0_46, %c64], %56 {strides = array<i32>} : memref<2x400xf32, #tpu.memory_space<vmem>>, vector<2x16xf32>,
    %58 = vector.extract_strided_slice %42 {offsets = [0, 5, 0], sizes = [2, 1, 16], strides = [1, 1, 1]} : vector<2x25x16xf32> to vector<2x1x16xf32>
    %59 = vector.shape_cast %58 : vector<2x1x16xf32> to vector<2x16xf32>
    %c0_47 = arith.constant 0 : index
    %c80 = arith.constant 80 : index
    %60 = vector.load %arg11[%c0_47, %c80] : memref<2x400xf32, #tpu.memory_space<vmem>>, vector<2x16xf32>
    tpu.vector_store %arg11[%c0_47, %c80], %59 {strides = array<i32>} : memref<2x400xf32, #tpu.memory_space<vmem>>, vector<2x16xf32>,
    %61 = vector.extract_strided_slice %42 {offsets = [0, 6, 0], sizes = [2, 1, 16], strides = [1, 1, 1]} : vector<2x25x16xf32> to vector<2x1x16xf32>
    %62 = vector.shape_cast %61 : vector<2x1x16xf32> to vector<2x16xf32>
    %c0_48 = arith.constant 0 : index
    %c96 = arith.constant 96 : index
    %63 = vector.load %arg11[%c0_48, %c96] : memref<2x400xf32, #tpu.memory_space<vmem>>, vector<2x16xf32>
    tpu.vector_store %arg11[%c0_48, %c96], %62 {strides = array<i32>} : memref<2x400xf32, #tpu.memory_space<vmem>>, vector<2x16xf32>,
    %64 = vector.extract_strided_slice %42 {offsets = [0, 7, 0], sizes = [2, 1, 16], strides = [1, 1, 1]} : vector<2x25x16xf32> to vector<2x1x16xf32>
    %65 = vector.shape_cast %64 : vector<2x1x16xf32> to vector<2x16xf32>
    %c0_49 = arith.constant 0 : index
    %c112 = arith.constant 112 : index
    %66 = vector.load %arg11[%c0_49, %c112] : memref<2x400xf32, #tpu.memory_space<vmem>>, vector<2x16xf32>
    tpu.vector_store %arg11[%c0_49, %c112], %65 {strides = array<i32>} : memref<2x400xf32, #tpu.memory_space<vmem>>, vector<2x16xf32>,
    %67 = vector.extract_strided_slice %42 {offsets = [0, 8, 0], sizes = [2, 1, 16], strides = [1, 1, 1]} : vector<2x25x16xf32> to vector<2x1x16xf32>
    %68 = vector.shape_cast %67 : vector<2x1x16xf32> to vector<2x16xf32>
    %c0_50 = arith.constant 0 : index
    %c128 = arith.constant 128 : index
    %69 = vector.load %arg11[%c0_50, %c128] : memref<2x400xf32, #tpu.memory_space<vmem>>, vector<2x16xf32>
    tpu.vector_store %arg11[%c0_50, %c128], %68 {strides = array<i32>} : memref<2x400xf32, #tpu.memory_space<vmem>>, vector<2x16xf32>,
    %70 = vector.extract_strided_slice %42 {offsets = [0, 9, 0], sizes = [2, 1, 16], strides = [1, 1, 1]} : vector<2x25x16xf32> to vector<2x1x16xf32>
    %71 = vector.shape_cast %70 : vector<2x1x16xf32> to vector<2x16xf32>
    %c0_51 = arith.constant 0 : index
    %c144 = arith.constant 144 : index
    %72 = vector.load %arg11[%c0_51, %c144] : memref<2x400xf32, #tpu.memory_space<vmem>>, vector<2x16xf32>
    tpu.vector_store %arg11[%c0_51, %c144], %71 {strides = array<i32>} : memref<2x400xf32, #tpu.memory_space<vmem>>, vector<2x16xf32>,
    %73 = vector.extract_strided_slice %42 {offsets = [0, 10, 0], sizes = [2, 1, 16], strides = [1, 1, 1]} : vector<2x25x16xf32> to vector<2x1x16xf32>
    %74 = vector.shape_cast %73 : vector<2x1x16xf32> to vector<2x16xf32>
    %c0_52 = arith.constant 0 : index
    %c160 = arith.constant 160 : index
    %75 = vector.load %arg11[%c0_52, %c160] : memref<2x400xf32, #tpu.memory_space<vmem>>, vector<2x16xf32>
    tpu.vector_store %arg11[%c0_52, %c160], %74 {strides = array<i32>} : memref<2x400xf32, #tpu.memory_space<vmem>>, vector<2x16xf32>,
    %76 = vector.extract_strided_slice %42 {offsets = [0, 11, 0], sizes = [2, 1, 16], strides = [1, 1, 1]} : vector<2x25x16xf32> to vector<2x1x16xf32>
    %77 = vector.shape_cast %76 : vector<2x1x16xf32> to vector<2x16xf32>
    %c0_53 = arith.constant 0 : index
    %c176 = arith.constant 176 : index
    %78 = vector.load %arg11[%c0_53, %c176] : memref<2x400xf32, #tpu.memory_space<vmem>>, vector<2x16xf32>
    tpu.vector_store %arg11[%c0_53, %c176], %77 {strides = array<i32>} : memref<2x400xf32, #tpu.memory_space<vmem>>, vector<2x16xf32>,
    %79 = vector.extract_strided_slice %42 {offsets = [0, 12, 0], sizes = [2, 1, 16], strides = [1, 1, 1]} : vector<2x25x16xf32> to vector<2x1x16xf32>
    %80 = vector.shape_cast %79 : vector<2x1x16xf32> to vector<2x16xf32>
    %c0_54 = arith.constant 0 : index
    %c192 = arith.constant 192 : index
    %81 = vector.load %arg11[%c0_54, %c192] : memref<2x400xf32, #tpu.memory_space<vmem>>, vector<2x16xf32>
    tpu.vector_store %arg11[%c0_54, %c192], %80 {strides = array<i32>} : memref<2x400xf32, #tpu.memory_space<vmem>>, vector<2x16xf32>,
    %82 = vector.extract_strided_slice %42 {offsets = [0, 13, 0], sizes = [2, 1, 16], strides = [1, 1, 1]} : vector<2x25x16xf32> to vector<2x1x16xf32>
    %83 = vector.shape_cast %82 : vector<2x1x16xf32> to vector<2x16xf32>
    %c0_55 = arith.constant 0 : index
    %c208 = arith.constant 208 : index
    %84 = vector.load %arg11[%c0_55, %c208] : memref<2x400xf32, #tpu.memory_space<vmem>>, vector<2x16xf32>
    tpu.vector_store %arg11[%c0_55, %c208], %83 {strides = array<i32>} : memref<2x400xf32, #tpu.memory_space<vmem>>, vector<2x16xf32>,
    %85 = vector.extract_strided_slice %42 {offsets = [0, 14, 0], sizes = [2, 1, 16], strides = [1, 1, 1]} : vector<2x25x16xf32> to vector<2x1x16xf32>
    %86 = vector.shape_cast %85 : vector<2x1x16xf32> to vector<2x16xf32>
    %c0_56 = arith.constant 0 : index
    %c224 = arith.constant 224 : index
    %87 = vector.load %arg11[%c0_56, %c224] : memref<2x400xf32, #tpu.memory_space<vmem>>, vector<2x16xf32>
    tpu.vector_store %arg11[%c0_56, %c224], %86 {strides = array<i32>} : memref<2x400xf32, #tpu.memory_space<vmem>>, vector<2x16xf32>,
    %88 = vector.extract_strided_slice %42 {offsets = [0, 15, 0], sizes = [2, 1, 16], strides = [1, 1, 1]} : vector<2x25x16xf32> to vector<2x1x16xf32>
    %89 = vector.shape_cast %88 : vector<2x1x16xf32> to vector<2x16xf32>
    %c0_57 = arith.constant 0 : index
    %c240 = arith.constant 240 : index
    %90 = vector.load %arg11[%c0_57, %c240] : memref<2x400xf32, #tpu.memory_space<vmem>>, vector<2x16xf32>
    tpu.vector_store %arg11[%c0_57, %c240], %89 {strides = array<i32>} : memref<2x400xf32, #tpu.memory_space<vmem>>, vector<2x16xf32>,
    %91 = vector.extract_strided_slice %42 {offsets = [0, 16, 0], sizes = [2, 1, 16], strides = [1, 1, 1]} : vector<2x25x16xf32> to vector<2x1x16xf32>
    %92 = vector.shape_cast %91 : vector<2x1x16xf32> to vector<2x16xf32>
    %c0_58 = arith.constant 0 : index
    %c256 = arith.constant 256 : index
    %93 = vector.load %arg11[%c0_58, %c256] : memref<2x400xf32, #tpu.memory_space<vmem>>, vector<2x16xf32>
    tpu.vector_store %arg11[%c0_58, %c256], %92 {strides = array<i32>} : memref<2x400xf32, #tpu.memory_space<vmem>>, vector<2x16xf32>,
    %94 = vector.extract_strided_slice %42 {offsets = [0, 17, 0], sizes = [2, 1, 16], strides = [1, 1, 1]} : vector<2x25x16xf32> to vector<2x1x16xf32>
    %95 = vector.shape_cast %94 : vector<2x1x16xf32> to vector<2x16xf32>
    %c0_59 = arith.constant 0 : index
    %c272 = arith.constant 272 : index
    %96 = vector.load %arg11[%c0_59, %c272] : memref<2x400xf32, #tpu.memory_space<vmem>>, vector<2x16xf32>
    tpu.vector_store %arg11[%c0_59, %c272], %95 {strides = array<i32>} : memref<2x400xf32, #tpu.memory_space<vmem>>, vector<2x16xf32>,
    %97 = vector.extract_strided_slice %42 {offsets = [0, 18, 0], sizes = [2, 1, 16], strides = [1, 1, 1]} : vector<2x25x16xf32> to vector<2x1x16xf32>
    %98 = vector.shape_cast %97 : vector<2x1x16xf32> to vector<2x16xf32>
    %c0_60 = arith.constant 0 : index
    %c288 = arith.constant 288 : index
    %99 = vector.load %arg11[%c0_60, %c288] : memref<2x400xf32, #tpu.memory_space<vmem>>, vector<2x16xf32>
    tpu.vector_store %arg11[%c0_60, %c288], %98 {strides = array<i32>} : memref<2x400xf32, #tpu.memory_space<vmem>>, vector<2x16xf32>,
    %100 = vector.extract_strided_slice %42 {offsets = [0, 19, 0], sizes = [2, 1, 16], strides = [1, 1, 1]} : vector<2x25x16xf32> to vector<2x1x16xf32>
    %101 = vector.shape_cast %100 : vector<2x1x16xf32> to vector<2x16xf32>
    %c0_61 = arith.constant 0 : index
    %c304 = arith.constant 304 : index
    %102 = vector.load %arg11[%c0_61, %c304] : memref<2x400xf32, #tpu.memory_space<vmem>>, vector<2x16xf32>
    tpu.vector_store %arg11[%c0_61, %c304], %101 {strides = array<i32>} : memref<2x400xf32, #tpu.memory_space<vmem>>, vector<2x16xf32>,
    %103 = vector.extract_strided_slice %42 {offsets = [0, 20, 0], sizes = [2, 1, 16], strides = [1, 1, 1]} : vector<2x25x16xf32> to vector<2x1x16xf32>
    %104 = vector.shape_cast %103 : vector<2x1x16xf32> to vector<2x16xf32>
    %c0_62 = arith.constant 0 : index
    %c320 = arith.constant 320 : index
    %105 = vector.load %arg11[%c0_62, %c320] : memref<2x400xf32, #tpu.memory_space<vmem>>, vector<2x16xf32>
    tpu.vector_store %arg11[%c0_62, %c320], %104 {strides = array<i32>} : memref<2x400xf32, #tpu.memory_space<vmem>>, vector<2x16xf32>,
    %106 = vector.extract_strided_slice %42 {offsets = [0, 21, 0], sizes = [2, 1, 16], strides = [1, 1, 1]} : vector<2x25x16xf32> to vector<2x1x16xf32>
    %107 = vector.shape_cast %106 : vector<2x1x16xf32> to vector<2x16xf32>
    %c0_63 = arith.constant 0 : index
    %c336 = arith.constant 336 : index
    %108 = vector.load %arg11[%c0_63, %c336] : memref<2x400xf32, #tpu.memory_space<vmem>>, vector<2x16xf32>
    tpu.vector_store %arg11[%c0_63, %c336], %107 {strides = array<i32>} : memref<2x400xf32, #tpu.memory_space<vmem>>, vector<2x16xf32>,
    %109 = vector.extract_strided_slice %42 {offsets = [0, 22, 0], sizes = [2, 1, 16], strides = [1, 1, 1]} : vector<2x25x16xf32> to vector<2x1x16xf32>
    %110 = vector.shape_cast %109 : vector<2x1x16xf32> to vector<2x16xf32>
    %c0_64 = arith.constant 0 : index
    %c352 = arith.constant 352 : index
    %111 = vector.load %arg11[%c0_64, %c352] : memref<2x400xf32, #tpu.memory_space<vmem>>, vector<2x16xf32>
    tpu.vector_store %arg11[%c0_64, %c352], %110 {strides = array<i32>} : memref<2x400xf32, #tpu.memory_space<vmem>>, vector<2x16xf32>,
    %112 = vector.extract_strided_slice %42 {offsets = [0, 23, 0], sizes = [2, 1, 16], strides = [1, 1, 1]} : vector<2x25x16xf32> to vector<2x1x16xf32>
    %113 = vector.shape_cast %112 : vector<2x1x16xf32> to vector<2x16xf32>
    %c0_65 = arith.constant 0 : index
    %c368 = arith.constant 368 : index
    %114 = vector.load %arg11[%c0_65, %c368] : memref<2x400xf32, #tpu.memory_space<vmem>>, vector<2x16xf32>
    tpu.vector_store %arg11[%c0_65, %c368], %113 {strides = array<i32>} : memref<2x400xf32, #tpu.memory_space<vmem>>, vector<2x16xf32>,
    %115 = vector.extract_strided_slice %42 {offsets = [0, 24, 0], sizes = [2, 1, 16], strides = [1, 1, 1]} : vector<2x25x16xf32> to vector<2x1x16xf32>
    %116 = vector.shape_cast %115 : vector<2x1x16xf32> to vector<2x16xf32>
    %c0_66 = arith.constant 0 : index
    %c384 = arith.constant 384 : index
    %117 = vector.load %arg11[%c0_66, %c384] : memref<2x400xf32, #tpu.memory_space<vmem>>, vector<2x16xf32>
    tpu.vector_store %arg11[%c0_66, %c384], %116 {strides = array<i32>} : memref<2x400xf32, #tpu.memory_space<vmem>>, vector<2x16xf32>,
    %c0_67 = arith.constant 0 : index
    %c0_68 = arith.constant 0 : index
    %118 = vector.load %arg11[%c0_67, %c0_68] : memref<2x400xf32, #tpu.memory_space<vmem>>, vector<2x400xf32>
    %c0_69 = arith.constant 0 : index
    %c0_70 = arith.constant 0 : index
    %119 = vector.load %arg4[%c0_69, %c0_70] : memref<400x120xf32, #tpu.memory_space<vmem>>, vector<400x120xf32>
    %cst_71 = arith.constant dense<0.000000e+00> : vector<2x120xf32>
    %120 = tpu.matmul %118, %119, %cst_71 {dimension_numbers = #tpu.dot_dimension_numbers<[1], [0], [0], [1], [0, 0, 1, 1], [], []>} : vector<2x400xf32>, vector<400x120xf32>, vector<2x120xf32> -> vector<2x120xf32>
    %c0_72 = arith.constant 0 : index
    %c0_73 = arith.constant 0 : index
    %121 = vector.load %arg5[%c0_72, %c0_73] : memref<1x120xf32, #tpu.memory_space<vmem>>, vector<1x120xf32>
    %122 = vector.broadcast %121 : vector<1x120xf32> to vector<2x120xf32>
    %123 = arith.addf %120, %122 : vector<2x120xf32>
    %cst_74 = arith.constant 0.000000e+00 : f32
    %124 = vector.broadcast %cst_74 : f32 to vector<2x120xf32>
    %125 = arith.maximumf %123, %124 : vector<2x120xf32>
    %c0_75 = arith.constant 0 : index
    %c0_76 = arith.constant 0 : index
    %126 = vector.load %arg6[%c0_75, %c0_76] : memref<120x84xf32, #tpu.memory_space<vmem>>, vector<120x84xf32>
    %cst_77 = arith.constant dense<0.000000e+00> : vector<2x84xf32>
    %127 = tpu.matmul %125, %126, %cst_77 {dimension_numbers = #tpu.dot_dimension_numbers<[1], [0], [0], [1], [0, 0, 1, 1], [], []>} : vector<2x120xf32>, vector<120x84xf32>, vector<2x84xf32> -> vector<2x84xf32>
    %c0_78 = arith.constant 0 : index
    %c0_79 = arith.constant 0 : index
    %128 = vector.load %arg7[%c0_78, %c0_79] : memref<1x84xf32, #tpu.memory_space<vmem>>, vector<1x84xf32>
    %129 = vector.broadcast %128 : vector<1x84xf32> to vector<2x84xf32>
    %130 = arith.addf %127, %129 : vector<2x84xf32>
    %cst_80 = arith.constant 0.000000e+00 : f32
    %131 = vector.broadcast %cst_80 : f32 to vector<2x84xf32>
    %132 = arith.maximumf %130, %131 : vector<2x84xf32>
    %c0_81 = arith.constant 0 : index
    %c0_82 = arith.constant 0 : index
    %133 = vector.load %arg8[%c0_81, %c0_82] : memref<84x10xf32, #tpu.memory_space<vmem>>, vector<84x10xf32>
    %cst_83 = arith.constant dense<0.000000e+00> : vector<2x10xf32>
    %134 = tpu.matmul %132, %133, %cst_83 {dimension_numbers = #tpu.dot_dimension_numbers<[1], [0], [0], [1], [0, 0, 1, 1], [], []>} : vector<2x84xf32>, vector<84x10xf32>, vector<2x10xf32> -> vector<2x10xf32>
    %c0_84 = arith.constant 0 : index
    %c0_85 = arith.constant 0 : index
    %135 = vector.load %arg9[%c0_84, %c0_85] : memref<1x10xf32, #tpu.memory_space<vmem>>, vector<1x10xf32>
    %136 = vector.broadcast %135 : vector<1x10xf32> to vector<2x10xf32>
    %137 = arith.addf %134, %136 : vector<2x10xf32>
    %c0_86 = arith.constant 0 : index
    %c0_87 = arith.constant 0 : index
    %138 = vector.load %arg10[%c0_86, %c0_87] : memref<2x10xf32, #tpu.memory_space<vmem>>, vector<2x10xf32>
    tpu.vector_store %arg10[%c0_86, %c0_87], %137 {strides = array<i32>} : memref<2x10xf32, #tpu.memory_space<vmem>>, vector<2x10xf32>,
    return
  }
  func.func @transform_0(%arg0: i32) -> (i32, i32, i32, i32) {
    %c0_i32 = arith.constant 0 : i32
    %c0_i32_0 = arith.constant 0 : i32
    %c0_i32_1 = arith.constant 0 : i32
    %c0_i32_2 = arith.constant 0 : i32
    return %arg0, %c0_i32, %c0_i32_0, %c0_i32_1 : i32, i32, i32, i32
  }
  func.func @transform_1(%arg0: i32) -> (i32, i32) {
    %c0_i32 = arith.constant 0 : i32
    %c0_i32_0 = arith.constant 0 : i32
    %c0_i32_1 = arith.constant 0 : i32
    return %c0_i32, %c0_i32_0 : i32, i32
  }
  func.func @transform_2(%arg0: i32) -> (i32, i32) {
    %c0_i32 = arith.constant 0 : i32
    %c0_i32_0 = arith.constant 0 : i32
    %c0_i32_1 = arith.constant 0 : i32
    return %c0_i32, %c0_i32_0 : i32, i32
  }
  func.func @transform_3(%arg0: i32) -> (i32, i32) {
    %c0_i32 = arith.constant 0 : i32
    %c0_i32_0 = arith.constant 0 : i32
    %c0_i32_1 = arith.constant 0 : i32
    return %c0_i32, %c0_i32_0 : i32, i32
  }
  func.func @transform_4(%arg0: i32) -> (i32, i32) {
    %c0_i32 = arith.constant 0 : i32
    %c0_i32_0 = arith.constant 0 : i32
    %c0_i32_1 = arith.constant 0 : i32
    return %c0_i32, %c0_i32_0 : i32, i32
  }
  func.func @transform_5(%arg0: i32) -> (i32, i32) {
    %c0_i32 = arith.constant 0 : i32
    %c0_i32_0 = arith.constant 0 : i32
    %c0_i32_1 = arith.constant 0 : i32
    return %c0_i32, %c0_i32_0 : i32, i32
  }
  func.func @transform_6(%arg0: i32) -> (i32, i32) {
    %c0_i32 = arith.constant 0 : i32
    %c0_i32_0 = arith.constant 0 : i32
    %c0_i32_1 = arith.constant 0 : i32
    return %c0_i32, %c0_i32_0 : i32, i32
  }
  func.func @transform_7(%arg0: i32) -> (i32, i32) {
    %c0_i32 = arith.constant 0 : i32
    %c0_i32_0 = arith.constant 0 : i32
    %c0_i32_1 = arith.constant 0 : i32
    return %c0_i32, %c0_i32_0 : i32, i32
  }
  func.func @transform_8(%arg0: i32) -> (i32, i32) {
    %c0_i32 = arith.constant 0 : i32
    %c0_i32_0 = arith.constant 0 : i32
    %c0_i32_1 = arith.constant 0 : i32
    return %c0_i32, %c0_i32_0 : i32, i32
  }
  func.func @transform_9(%arg0: i32) -> (i32, i32) {
    %c0_i32 = arith.constant 0 : i32
    %c0_i32_0 = arith.constant 0 : i32
    return %arg0, %c0_i32 : i32, i32
  }
}

</mosaic_0001>

<bundles_post_ra>
// kernel: net_forward.2
= control target key start
LH: loop header
LB: loop body
LE: loop exit
PB: predicated region body
PF: predicated region fallthrough
CT: control target
= control target key end

     0   :  { %v4252_v0 = vmov 0.0|0.0   ;;  %vm4253_vm0 = vmmov 0   ;;  %v4254_v6 = vmov 0.0   ;;  %vm126_vm1 = vcmask 1042432   ;;  %s6326_s1 = inlined_call_operand.vmem [shape: f32[75,6], index: 1, kind: input, shape index: {}]   ;;  %s6327_s0 = inlined_call_operand.vmem [shape: f32[2,4,196,75], index: 0, kind: input, shape index: {}]   ;;  %s6328_s2 = inlined_call_operand.vmem [shape: f32[1,6], index: 2, kind: input, shape index: {}]   ;;  %s6329_s3 = inlined_call_operand.vmem [shape: f32[2,196,6], index: 3, kind: output, shape index: {}]  }
   0x1   :  { %4119 = vmatprep.subr.bf16.mxu0 %v4252_v0  ;;  %4135 = vmatprep.subr.bf16.mxu1 %v4252_v0  ;;  %v14_v1 = vld [vmem:[%s6326_s1] sm:$0xff]  ;;  %v15_v2 = vld [vmem:[%s6326_s1 + $0x8] sm:$0xff]  ;;  %v16_v3 = vld [vmem:[%s6326_s1 + $0x10] sm:$0xff]  ;;  %vm4255_vm2 = vmmov 1   ;;  %vm50_vm4 = vcmask 613376   ;;  %vm1324_vm5 = vcmask 48128  }
   0x2   :  { %v4287_v4 = vpack.c.bf16 %v15_v2, %v14_v1  ;;  %v17_v5 = vld [vmem:[%s6326_s1 + $0x18] sm:$0xff]  ;;  %3379 = vmatprep.mubr.msk.f32.mxu0 %vm4253_vm0, %v4254_v6  ;;  %3474 = vmatprep.mubr.msk.f32.mxu1 %vm4253_vm0, %v4254_v6  ;;  %v18_v8 = vld [vmem:[%s6326_s1 + $0x20] sm:$0xff]  ;;  %v19_v9 = vld [vmem:[%s6326_s1 + $0x28] sm:$0xff]  ;;  %vm1349_vm6 = vcmask 44032  }
   0x3   :  { %v4298_v7 = vpack.c.bf16 %v17_v5, %v16_v3  ;;  %v4310_v10 = vpack.c.bf16 %v19_v9, %v18_v8  ;;  %v20_v11 = vld [vmem:[%s6326_s1 + $0x30] sm:$0xff]  ;;  %v21_v12 = vld [vmem:[%s6326_s1 + $0x38] sm:$0xff]  ;;  %v22_v14 = vld [vmem:[%s6326_s1 + $0x40] sm:$0xff] }
   0x4   :  { %4121 = vmatpush3.bf16.msra.mxu0 %v4287_v4  ;;  %4137 = vmatpush3.bf16.msra.mxu1 %v4287_v4  ;;  %v4322_v13 = vpack.c.bf16 %v21_v12, %v20_v11  ;;  %v23_v15 = vld [vmem:[%s6326_s1 + $0x48] sm:$0x7]  ;;  %vm4338_vm3 = vmpackc.low %vm126_vm1, %vm4255_vm2  ;;  %v25_v18 = vld [vmem:[%s6327_s0] sm:$0xff] }
   0x5   :  { %4122 = vmatprep.subr.bf16.mxu0 %v4252_v0  ;;  %4138 = vmatprep.subr.bf16.mxu1 %v4252_v0  ;;  %v4334_v16 = vpack.c.bf16 %v23_v15, %v22_v14  ;;  %v2696_v19 = vld [vmem:[%s6327_s0 + $0xc8] sm:$0xff]  ;;  %v2697_v21 = vld [vmem:[%s6327_s0 + $0xd0] sm:$0xff]  ;;  %v2698_v23 = vld [vmem:[%s6327_s0 + $0xd8] sm:$0xff] }
   0x6   :  { %v26_v20 = vld [vmem:[%s6327_s0 + $0x8] sm:$0xff]  ;;  %v27_v22 = vld [vmem:[%s6327_s0 + $0x10] sm:$0xff]  ;;  %v28_v24 = vld [vmem:[%s6327_s0 + $0x18] sm:$0xff] }
   0x7   :  { %v2699_v25 = vld [vmem:[%s6327_s0 + $0xe0] sm:$0xff]  ;;  %v2700_v27 = vld [vmem:[%s6327_s0 + $0xe8] sm:$0xff]  ;;  %v2701_v29 = vld [vmem:[%s6327_s0 + $0xf0] sm:$0xff] }
   0x8   :  { %4124 = vmatpush3.bf16.msra.mxu0 %v4298_v7  ;;  %4140 = vmatpush3.bf16.msra.mxu1 %v4298_v7  ;;  %v29_v26 = vld [vmem:[%s6327_s0 + $0x20] sm:$0xff]  ;;  %v30_v28 = vld [vmem:[%s6327_s0 + $0x28] sm:$0xff]  ;;  %v31_v30 = vld [vmem:[%s6327_s0 + $0x30] sm:$0xff] }
   0x9   :  { %4125 = vmatprep.subr.bf16.mxu0 %v4252_v0  ;;  %4141 = vmatprep.subr.bf16.mxu1 %v4252_v0  ;;  %v2702_v31 = vld [vmem:[%s6327_s0 + $0xf8] sm:$0xff]  ;;  %v2703_v33 = vld [vmem:[%s6327_s0 + $0x100] sm:$0xff]  ;;  %v2704_v35 = vld [vmem:[%s6327_s0 + $0x108] sm:$0xff] }
   0xa   :  { %v32_v32 = vld [vmem:[%s6327_s0 + $0x38] sm:$0xff]  ;;  %v33_v34 = vld [vmem:[%s6327_s0 + $0x40] sm:$0xff]  ;;  %v34_v36 = vld [vmem:[%s6327_s0 + $0x48] sm:$0xff] }
   0xb   :  { %v2705_v37 = vld [vmem:[%s6327_s0 + $0x110] sm:$0xff]  ;;  %v2706_v39 = vld [vmem:[%s6327_s0 + $0x118] sm:$0xff]  ;;  %v2707_v41 = vld [vmem:[%s6327_s0 + $0x120] sm:$0xff] }
   0xc   :  { %4127 = vmatpush3.bf16.msra.mxu0 %v4310_v10  ;;  %4143 = vmatpush3.bf16.msra.mxu1 %v4310_v10  ;;  %v35_v38 = vld [vmem:[%s6327_s0 + $0x50] sm:$0xff]  ;;  %v36_v40 = vld [vmem:[%s6327_s0 + $0x58] sm:$0xff]  ;;  %v37_v42 = vld [vmem:[%s6327_s0 + $0x60] sm:$0xff] }
   0xd   :  { %4128 = vmatprep.subr.bf16.mxu0 %v4252_v0  ;;  %4144 = vmatprep.subr.bf16.mxu1 %v4252_v0  ;;  %v2708_v43 = vld [vmem:[%s6327_s0 + $0x128] sm:$0xff]  ;;  %v2709_v45 = vld [vmem:[%s6327_s0 + $0x130] sm:$0xff]  ;;  %v2710_v47 = vld [vmem:[%s6327_s0 + $0x138] sm:$0xff] }
   0xe   :  { %v38_v44 = vld [vmem:[%s6327_s0 + $0x68] sm:$0xff]  ;;  %v39_v46 = vld [vmem:[%s6327_s0 + $0x70] sm:$0xff]  ;;  %v40_v48 = vld [vmem:[%s6327_s0 + $0x78] sm:$0xff] }
   0xf   :  { %v2711_v49 = vld [vmem:[%s6327_s0 + $0x140] sm:$0xff]  ;;  %v2712_v51 = vld [vmem:[%s6327_s0 + $0x148] sm:$0xff]  ;;  %v2713_v53 = vld [vmem:[%s6327_s0 + $0x150] sm:$0xff] }
  0x10   :  { %4130 = vmatpush3.bf16.msra.mxu0 %v4322_v13  ;;  %4146 = vmatpush3.bf16.msra.mxu1 %v4322_v13  ;;  %v41_v50 = vld [vmem:[%s6327_s0 + $0x80] sm:$0xff]  ;;  %v42_v52 = vld [vmem:[%s6327_s0 + $0x88] sm:$0xff]  ;;  %v43_v54 = vld [vmem:[%s6327_s0 + $0x90] sm:$0xff] }
  0x11   :  { %4131 = vmatprep.subr.bf16.mxu0 %v4252_v0  ;;  %4147 = vmatprep.subr.bf16.mxu1 %v4252_v0  ;;  %v2714_v55 = vld [vmem:[%s6327_s0 + $0x158] sm:$0xff]  ;;  %v2715_v57 = vld [vmem:[%s6327_s0 + $0x160] sm:$0xff]  ;;  %v2716_v59 = vld [vmem:[%s6327_s0 + $0x168] sm:$0xff] }
  0x12   :  { %v44_v56 = vld [vmem:[%s6327_s0 + $0x98] sm:$0xff]  ;;  %v45_v58 = vld [vmem:[%s6327_s0 + $0xa0] sm:$0xff]  ;;  %v46_v60 = vld [vmem:[%s6327_s0 + $0xa8] sm:$0xff] }
  0x13   :  { %v2717_v61 = vld [vmem:[%s6327_s0 + $0x170] sm:$0xff]  ;;  %v2718_v63 = vld [vmem:[%s6327_s0 + $0x178] sm:$0xff]  ;;  %v2719_v2 = vld [vmem:[%s6327_s0 + $0x180] sm:$0xff] }
  0x14   :  { %4134 = vmatpush3.bf16.msk.msra.mxu0 %vm4338_vm3, %v4334_v16  ;;  %4150 = vmatpush3.bf16.msk.msra.mxu1 %vm4338_vm3, %v4334_v16  ;;  %v47_v62 = vld [vmem:[%s6327_s0 + $0xb0] sm:$0xff]  ;;  %v48_v1 = vld [vmem:[%s6327_s0 + $0xb8] sm:$0xff]  ;;  %v49_v3 = vld [vmem:[%s6327_s0 + $0xc0] sm:$0xf] }
  0x15   :  { %4151 = vmatprep.subr.bf16.mxu0 %v4252_v0  ;;  %4167 = vmatprep.subr.bf16.mxu1 %v4252_v0  ;;  %v2720_v5 = vld [vmem:[%s6327_s0 + $0x188] sm:$0xf]  ;;  %v2747_v8 = vld [vmem:[%s6327_s0 + $0x190] sm:$0xff]  ;;  %v2798_v9 = vld [vmem:[%s6327_s0 + $0x258] sm:$0xff] }
  0x16   :  { %v2748_v11 = vld [vmem:[%s6327_s0 + $0x198] sm:$0xff]  ;;  %v2799_v12 = vld [vmem:[%s6327_s0 + $0x260] sm:$0xff]  ;;  %v2800_v15 = vld [vmem:[%s6327_s0 + $0x268] sm:$0xff] }
  0x17   :  { %3380 = vmatmul.mubr.msk.f32.vlgmr.msra.gmra.mrb[0].mxu0 %vm50_vm4, %v25_v18  ;;  %3475 = vmatmul.mubr.msk.f32.vlgmr.msra.gmra.mrb[0].mxu1 %vm50_vm4, %v2696_v19  ;;  %v2749_v14 = vld [vmem:[%s6327_s0 + $0x1a0] sm:$0xff]  ;;  %v2750_v18 = vld [vmem:[%s6327_s0 + $0x1a8] sm:$0xff]  ;;  %v2801_v19 = vld [vmem:[%s6327_s0 + $0x270] sm:$0xff] }
  0x18   :  { %4153 = vmatpush3.bf16.msra.mxu0 %v4287_v4  ;;  %4169 = vmatpush3.bf16.msra.mxu1 %v4287_v4  ;;  %v2907_v17 = vld [vmem:[%s6327_s0 + $0x418] sm:$0xff] }
  0x19   :  { %3382 = vmatprep.mubr.msk.f32.mxu0 %vm4253_vm0, %v4254_v6  ;;  %3477 = vmatprep.mubr.msk.f32.mxu1 %vm4253_vm0, %v4254_v6 }
  0x1a   :  { %4154 = vmatprep.subr.bf16.mxu0 %v4252_v0  ;;  %4170 = vmatprep.subr.bf16.mxu1 %v4252_v0 }
  0x1b   :  { %3383 = vmatmul.mubr.msk.f32.gmra.mrb[2].mxu0 %vm50_vm4, %v26_v20  ;;  %3478 = vmatmul.mubr.msk.f32.gmra.mrb[2].mxu1 %vm50_vm4, %v2697_v21  ;;  %v2751_v20 = vld [vmem:[%s6327_s0 + $0x1b0] sm:$0xff]  ;;  %v2802_v21 = vld [vmem:[%s6327_s0 + $0x278] sm:$0xff] }
  0x1c   :  { %3385 = vmatprep.mubr.msk.f32.mxu0 %vm4253_vm0, %v4254_v6  ;;  %3480 = vmatprep.mubr.msk.f32.mxu1 %vm4253_vm0, %v4254_v6 }
  0x1d   :  { %4156 = vmatpush3.bf16.msra.mxu0 %v4298_v7  ;;  %4172 = vmatpush3.bf16.msra.mxu1 %v4298_v7 }
  0x1e   :  { %4157 = vmatprep.subr.bf16.mxu0 %v4252_v0  ;;  %4173 = vmatprep.subr.bf16.mxu1 %v4252_v0 }
  0x1f   :  { %3386 = vmatmul.mubr.msk.f32.gmra.mrb[4].mxu0 %vm50_vm4, %v27_v22  ;;  %3481 = vmatmul.mubr.msk.f32.gmra.mrb[4].mxu1 %vm50_vm4, %v2698_v23  ;;  %v2752_v22 = vld [vmem:[%s6327_s0 + $0x1b8] sm:$0xff]  ;;  %v2803_v23 = vld [vmem:[%s6327_s0 + $0x280] sm:$0xff] }
  0x20   :  { %3388 = vmatprep.mubr.msk.f32.mxu0 %vm4253_vm0, %v4254_v6  ;;  %3483 = vmatprep.mubr.msk.f32.mxu1 %vm4253_vm0, %v4254_v6 }
  0x21   :  { %4159 = vmatpush3.bf16.msra.mxu0 %v4310_v10  ;;  %4175 = vmatpush3.bf16.msra.mxu1 %v4310_v10 }
  0x22   :  { %4160 = vmatprep.subr.bf16.mxu0 %v4252_v0  ;;  %4176 = vmatprep.subr.bf16.mxu1 %v4252_v0 }
  0x23   :  { %3389 = vmatmul.mubr.msk.f32.gmra.mrb[6].mxu0 %vm50_vm4, %v28_v24  ;;  %3484 = vmatmul.mubr.msk.f32.gmra.mrb[6].mxu1 %vm50_vm4, %v2699_v25  ;;  %v2753_v24 = vld [vmem:[%s6327_s0 + $0x1c0] sm:$0xff]  ;;  %v2804_v25 = vld [vmem:[%s6327_s0 + $0x288] sm:$0xff] }
  0x24   :  { %3391 = vmatprep.mubr.msk.f32.mxu0 %vm4253_vm0, %v4254_v6  ;;  %3486 = vmatprep.mubr.msk.f32.mxu1 %vm4253_vm0, %v4254_v6 }
  0x25   :  { %4162 = vmatpush3.bf16.msra.mxu0 %v4322_v13  ;;  %4178 = vmatpush3.bf16.msra.mxu1 %v4322_v13 }
  0x26   :  { %4163 = vmatprep.subr.bf16.mxu0 %v4252_v0  ;;  %4179 = vmatprep.subr.bf16.mxu1 %v4252_v0 }
  0x27   :  { %3392 = vmatmul.mubr.msk.f32.gmra.mrb[8].mxu0 %vm50_vm4, %v29_v26  ;;  %3487 = vmatmul.mubr.msk.f32.gmra.mrb[8].mxu1 %vm50_vm4, %v2700_v27  ;;  %v2754_v26 = vld [vmem:[%s6327_s0 + $0x1c8] sm:$0xff]  ;;  %v2805_v27 = vld [vmem:[%s6327_s0 + $0x290] sm:$0xff] }
  0x28   :  { %3394 = vmatprep.mubr.msk.f32.mxu0 %vm4253_vm0, %v4254_v6  ;;  %3489 = vmatprep.mubr.msk.f32.mxu1 %vm4253_vm0, %v4254_v6 }
  0x29   :  { %4166 = vmatpush3.bf16.msk.msra.mxu0 %vm4338_vm3, %v4334_v16  ;;  %4182 = vmatpush3.bf16.msk.msra.mxu1 %vm4338_vm3, %v4334_v16 }
  0x2a   :  { %4183 = vmatprep.subr.bf16.mxu0 %v4252_v0  ;;  %4199 = vmatprep.subr.bf16.mxu1 %v4252_v0 }
  0x2b   :  { %3395 = vmatmul.mubr.msk.f32.gmra.mrb[10].mxu0 %vm50_vm4, %v30_v28  ;;  %3490 = vmatmul.mubr.msk.f32.gmra.mrb[10].mxu1 %vm50_vm4, %v2701_v29  ;;  %v2755_v28 = vld [vmem:[%s6327_s0 + $0x1d0] sm:$0xff]  ;;  %v2806_v29 = vld [vmem:[%s6327_s0 + $0x298] sm:$0xff] }
  0x2c   :  { %3397 = vmatprep.mubr.msk.f32.mxu0 %vm4253_vm0, %v4254_v6  ;;  %3492 = vmatprep.mubr.msk.f32.mxu1 %vm4253_vm0, %v4254_v6 }
  0x2f   :  { %3398 = vmatmul.mubr.msk.f32.gmra.mrb[12].mxu0 %vm50_vm4, %v31_v30  ;;  %3493 = vmatmul.mubr.msk.f32.gmra.mrb[12].mxu1 %vm50_vm4, %v2702_v31  ;;  %v2756_v30 = vld [vmem:[%s6327_s0 + $0x1d8] sm:$0xff]  ;;  %v2807_v31 = vld [vmem:[%s6327_s0 + $0x2a0] sm:$0xff] }
  0x30   :  { %3400 = vmatprep.mubr.msk.f32.mxu0 %vm4253_vm0, %v4254_v6  ;;  %3495 = vmatprep.mubr.msk.f32.mxu1 %vm4253_vm0, %v4254_v6 }
  0x33   :  { %3401 = vmatmul.mubr.msk.f32.gmra.mrb[14].mxu0 %vm50_vm4, %v32_v32  ;;  %3496 = vmatmul.mubr.msk.f32.gmra.mrb[14].mxu1 %vm50_vm4, %v2703_v33  ;;  %v2757_v32 = vld [vmem:[%s6327_s0 + $0x1e0] sm:$0xff]  ;;  %v2808_v33 = vld [vmem:[%s6327_s0 + $0x2a8] sm:$0xff] }
  0x34   :  { %3403 = vmatprep.mubr.msk.f32.mxu0 %vm4253_vm0, %v4254_v6  ;;  %3498 = vmatprep.mubr.msk.f32.mxu1 %vm4253_vm0, %v4254_v6 }
  0x37   :  { %3404 = vmatmul.mubr.msk.f32.gmra.mrb[16].mxu0 %vm50_vm4, %v33_v34  ;;  %3499 = vmatmul.mubr.msk.f32.gmra.mrb[16].mxu1 %vm50_vm4, %v2704_v35  ;;  %v2758_v34 = vld [vmem:[%s6327_s0 + $0x1e8] sm:$0xff]  ;;  %v2809_v35 = vld [vmem:[%s6327_s0 + $0x2b0] sm:$0xff] }
  0x38   :  { %3406 = vmatprep.mubr.msk.f32.mxu0 %vm4253_vm0, %v4254_v6  ;;  %3501 = vmatprep.mubr.msk.f32.mxu1 %vm4253_vm0, %v4254_v6 }
  0x3b   :  { %3407 = vmatmul.mubr.msk.f32.gmra.mrb[18].mxu0 %vm50_vm4, %v34_v36  ;;  %3502 = vmatmul.mubr.msk.f32.gmra.mrb[18].mxu1 %vm50_vm4, %v2705_v37  ;;  %v2759_v36 = vld [vmem:[%s6327_s0 + $0x1f0] sm:$0xff]  ;;  %v2810_v37 = vld [vmem:[%s6327_s0 + $0x2b8] sm:$0xff] }
  0x3c   :  { %3409 = vmatprep.mubr.msk.f32.mxu0 %vm4253_vm0, %v4254_v6  ;;  %3504 = vmatprep.mubr.msk.f32.mxu1 %vm4253_vm0, %v4254_v6 }
  0x3f   :  { %3410 = vmatmul.mubr.msk.f32.gmra.mrb[20].mxu0 %vm50_vm4, %v35_v38  ;;  %3505 = vmatmul.mubr.msk.f32.gmra.mrb[20].mxu1 %vm50_vm4, %v2706_v39  ;;  %v2760_v38 = vld [vmem:[%s6327_s0 + $0x1f8] sm:$0xff]  ;;  %v2811_v39 = vld [vmem:[%s6327_s0 + $0x2c0] sm:$0xff] }
  0x40   :  { %3412 = vmatprep.mubr.msk.f32.mxu0 %vm4253_vm0, %v4254_v6  ;;  %3507 = vmatprep.mubr.msk.f32.mxu1 %vm4253_vm0, %v4254_v6 }
  0x43   :  { %3413 = vmatmul.mubr.msk.f32.gmra.mrb[22].mxu0 %vm50_vm4, %v36_v40  ;;  %3508 = vmatmul.mubr.msk.f32.gmra.mrb[22].mxu1 %vm50_vm4, %v2707_v41  ;;  %v2761_v40 = vld [vmem:[%s6327_s0 + $0x200] sm:$0xff]  ;;  %v2812_v41 = vld [vmem:[%s6327_s0 + $0x2c8] sm:$0xff] }
  0x44   :  { %3415 = vmatprep.mubr.msk.f32.mxu0 %vm4253_vm0, %v4254_v6  ;;  %3510 = vmatprep.mubr.msk.f32.mxu1 %vm4253_vm0, %v4254_v6 }
  0x47   :  { %3416 = vmatmul.mubr.msk.f32.gmra.mrb[24].mxu0 %vm50_vm4, %v37_v42  ;;  %3511 = vmatmul.mubr.msk.f32.gmra.mrb[24].mxu1 %vm50_vm4, %v2708_v43  ;;  %v2762_v42 = vld [vmem:[%s6327_s0 + $0x208] sm:$0xff]  ;;  %v2813_v43 = vld [vmem:[%s6327_s0 + $0x2d0] sm:$0xff] }
  0x48   :  { %3418 = vmatprep.mubr.msk.f32.mxu0 %vm4253_vm0, %v4254_v6  ;;  %3513 = vmatprep.mubr.msk.f32.mxu1 %vm4253_vm0, %v4254_v6 }
  0x4b   :  { %3419 = vmatmul.mubr.msk.f32.gmra.mrb[26].mxu0 %vm50_vm4, %v38_v44  ;;  %3514 = vmatmul.mubr.msk.f32.gmra.mrb[26].mxu1 %vm50_vm4, %v2709_v45  ;;  %v2763_v44 = vld [vmem:[%s6327_s0 + $0x210] sm:$0xff]  ;;  %v2814_v45 = vld [vmem:[%s6327_s0 + $0x2d8] sm:$0xff] }
  0x4c   :  { %3421 = vmatprep.mubr.msk.f32.mxu0 %vm4253_vm0, %v4254_v6  ;;  %3516 = vmatprep.mubr.msk.f32.mxu1 %vm4253_vm0, %v4254_v6 }
  0x4f   :  { %3422 = vmatmul.mubr.msk.f32.gmra.mrb[28].mxu0 %vm50_vm4, %v39_v46  ;;  %3517 = vmatmul.mubr.msk.f32.gmra.mrb[28].mxu1 %vm50_vm4, %v2710_v47  ;;  %v2764_v46 = vld [vmem:[%s6327_s0 + $0x218] sm:$0xff]  ;;  %v2815_v47 = vld [vmem:[%s6327_s0 + $0x2e0] sm:$0xff] }
  0x50   :  { %3424 = vmatprep.mubr.msk.f32.mxu0 %vm4253_vm0, %v4254_v6  ;;  %3519 = vmatprep.mubr.msk.f32.mxu1 %vm4253_vm0, %v4254_v6 }
  0x53   :  { %3425 = vmatmul.mubr.msk.f32.gmra.mrb[30].mxu0 %vm50_vm4, %v40_v48  ;;  %3520 = vmatmul.mubr.msk.f32.gmra.mrb[30].mxu1 %vm50_vm4, %v2711_v49  ;;  %v2765_v48 = vld [vmem:[%s6327_s0 + $0x220] sm:$0xff]  ;;  %v2816_v49 = vld [vmem:[%s6327_s0 + $0x2e8] sm:$0xff] }
  0x54   :  { %3427 = vmatprep.mubr.msk.f32.mxu0 %vm4253_vm0, %v4254_v6  ;;  %3522 = vmatprep.mubr.msk.f32.mxu1 %vm4253_vm0, %v4254_v6 }
  0x57   :  { %3428 = vmatmul.mubr.msk.f32.gmra.mrb[32].mxu0 %vm50_vm4, %v41_v50  ;;  %3523 = vmatmul.mubr.msk.f32.gmra.mrb[32].mxu1 %vm50_vm4, %v2712_v51  ;;  %v2766_v50 = vld [vmem:[%s6327_s0 + $0x228] sm:$0xff]  ;;  %v2817_v51 = vld [vmem:[%s6327_s0 + $0x2f0] sm:$0xff] }
  0x58   :  { %3430 = vmatprep.mubr.msk.f32.mxu0 %vm4253_vm0, %v4254_v6  ;;  %3525 = vmatprep.mubr.msk.f32.mxu1 %vm4253_vm0, %v4254_v6 }
  0x5b   :  { %3431 = vmatmul.mubr.msk.f32.gmra.mrb[34].mxu0 %vm50_vm4, %v42_v52  ;;  %3526 = vmatmul.mubr.msk.f32.gmra.mrb[34].mxu1 %vm50_vm4, %v2713_v53  ;;  %v2767_v52 = vld [vmem:[%s6327_s0 + $0x230] sm:$0xff]  ;;  %v2818_v53 = vld [vmem:[%s6327_s0 + $0x2f8] sm:$0xff] }
  0x5c   :  { %3433 = vmatprep.mubr.msk.f32.mxu0 %vm4253_vm0, %v4254_v6  ;;  %3528 = vmatprep.mubr.msk.f32.mxu1 %vm4253_vm0, %v4254_v6 }
  0x5f   :  { %3434 = vmatmul.mubr.msk.f32.gmra.mrb[36].mxu0 %vm50_vm4, %v43_v54  ;;  %3529 = vmatmul.mubr.msk.f32.gmra.mrb[36].mxu1 %vm50_vm4, %v2714_v55  ;;  %v2768_v54 = vld [vmem:[%s6327_s0 + $0x238] sm:$0xff]  ;;  %v2819_v55 = vld [vmem:[%s6327_s0 + $0x300] sm:$0xff] }
  0x60   :  { %3436 = vmatprep.mubr.msk.f32.mxu0 %vm4253_vm0, %v4254_v6  ;;  %3531 = vmatprep.mubr.msk.f32.mxu1 %vm4253_vm0, %v4254_v6 }
  0x63   :  { %3437 = vmatmul.mubr.msk.f32.gmra.mrb[38].mxu0 %vm50_vm4, %v44_v56  ;;  %3532 = vmatmul.mubr.msk.f32.gmra.mrb[38].mxu1 %vm50_vm4, %v2715_v57  ;;  %v2769_v56 = vld [vmem:[%s6327_s0 + $0x240] sm:$0xff]  ;;  %v2820_v57 = vld [vmem:[%s6327_s0 + $0x308] sm:$0xff] }
  0x64   :  { %3439 = vmatprep.mubr.msk.f32.mxu0 %vm4253_vm0, %v4254_v6  ;;  %3534 = vmatprep.mubr.msk.f32.mxu1 %vm4253_vm0, %v4254_v6 }
  0x67   :  { %3440 = vmatmul.mubr.msk.f32.gmra.mrb[40].mxu0 %vm50_vm4, %v45_v58  ;;  %3535 = vmatmul.mubr.msk.f32.gmra.mrb[40].mxu1 %vm50_vm4, %v2716_v59  ;;  %v2770_v58 = vld [vmem:[%s6327_s0 + $0x248] sm:$0xff]  ;;  %v2821_v59 = vld [vmem:[%s6327_s0 + $0x310] sm:$0xff] }
  0x68   :  { %3442 = vmatprep.mubr.msk.f32.mxu0 %vm4253_vm0, %v4254_v6  ;;  %3537 = vmatprep.mubr.msk.f32.mxu1 %vm4253_vm0, %v4254_v6 }
  0x6b   :  { %3443 = vmatmul.mubr.msk.f32.gmra.mrb[42].mxu0 %vm50_vm4, %v46_v60  ;;  %3538 = vmatmul.mubr.msk.f32.gmra.mrb[42].mxu1 %vm50_vm4, %v2717_v61  ;;  %v2771_v60 = vld [vmem:[%s6327_s0 + $0x250] sm:$0xf]  ;;  %v2822_v61 = vld [vmem:[%s6327_s0 + $0x318] sm:$0xf] }
  0x6c   :  { %3445 = vmatprep.mubr.msk.f32.mxu0 %vm4253_vm0, %v4254_v6  ;;  %3540 = vmatprep.mubr.msk.f32.mxu1 %vm4253_vm0, %v4254_v6 }
  0x6f   :  { %3446 = vmatmul.mubr.msk.f32.gmra.mrb[44].mxu0 %vm50_vm4, %v47_v62  ;;  %3541 = vmatmul.mubr.msk.f32.gmra.mrb[44].mxu1 %vm50_vm4, %v2718_v63  ;;  %v2850_v62 = vld [vmem:[%s6327_s0 + $0x320] sm:$0xff]  ;;  %v2901_v63 = vld [vmem:[%s6327_s0 + $0x3e8] sm:$0xff] }
  0x70   :  { %3448 = vmatprep.mubr.msk.f32.mxu0 %vm4253_vm0, %v4254_v6  ;;  %3543 = vmatprep.mubr.msk.f32.mxu1 %vm4253_vm0, %v4254_v6 }
  0x73   :  { %3449 = vmatmul.mubr.msk.f32.gmra.mrb[46].mxu0 %vm50_vm4, %v48_v1  ;;  %3544 = vmatmul.mubr.msk.f32.gmra.mrb[46].mxu1 %vm50_vm4, %v2719_v2  ;;  %v2851_v1 = vld [vmem:[%s6327_s0 + $0x328] sm:$0xff]  ;;  %v2902_v2 = vld [vmem:[%s6327_s0 + $0x3f0] sm:$0xff] }
  0x74   :  { %3451 = vmatprep.mubr.msk.f32.mxu0 %vm4253_vm0, %v4254_v6  ;;  %3546 = vmatprep.mubr.msk.f32.mxu1 %vm4253_vm0, %v4254_v6 }
  0x77   :  { %3452 = vmatmul.mubr.msk.f32.gmra.mrb[48].mxu0 %vm50_vm4, %v49_v3  ;;  %3547 = vmatmul.mubr.msk.f32.gmra.mrb[48].mxu1 %vm50_vm4, %v2720_v5  ;;  %v2903_v3 = vld [vmem:[%s6327_s0 + $0x3f8] sm:$0xff] }
  0x78   :  { %3569 = vmatprep.mubr.msk.f32.mxu0 %vm4253_vm0, %v4254_v6  ;;  %3664 = vmatprep.mubr.msk.f32.mxu1 %vm4253_vm0, %v4254_v6  ;;  %v2853_v5 = vld [vmem:[%s6327_s0 + $0x338] sm:$0xff] }
  0x7b   :  { %3570 = vmatmul.mubr.msk.f32.vlgmr.msra.gmra.mrb[50].mxu0 %vm50_vm4, %v2747_v8  ;;  %3665 = vmatmul.mubr.msk.f32.vlgmr.msra.gmra.mrb[50].mxu1 %vm50_vm4, %v2798_v9 }
  0x7c   :  { %4185 = vmatpush3.bf16.msra.mxu0 %v4287_v4  ;;  %4201 = vmatpush3.bf16.msra.mxu1 %v4287_v4 }
  0x7d   :  { %3572 = vmatprep.mubr.msk.f32.mxu0 %vm4253_vm0, %v4254_v6  ;;  %3667 = vmatprep.mubr.msk.f32.mxu1 %vm4253_vm0, %v4254_v6 }
  0x7e   :  { %4186 = vmatprep.subr.bf16.mxu0 %v4252_v0  ;;  %4202 = vmatprep.subr.bf16.mxu1 %v4252_v0 }
  0x7f   :  { %3573 = vmatmul.mubr.msk.f32.gmra.mrb[52].mxu0 %vm50_vm4, %v2748_v11  ;;  %3668 = vmatmul.mubr.msk.f32.gmra.mrb[52].mxu1 %vm50_vm4, %v2799_v12 }
  0x80   :  { %3575 = vmatprep.mubr.msk.f32.mxu0 %vm4253_vm0, %v4254_v6  ;;  %3670 = vmatprep.mubr.msk.f32.mxu1 %vm4253_vm0, %v4254_v6 }
  0x81   :  { %4188 = vmatpush3.bf16.msra.mxu0 %v4298_v7  ;;  %4204 = vmatpush3.bf16.msra.mxu1 %v4298_v7 }
  0x82   :  { %4189 = vmatprep.subr.bf16.mxu0 %v4252_v0  ;;  %4205 = vmatprep.subr.bf16.mxu1 %v4252_v0 }
  0x83   :  { %3576 = vmatmul.mubr.msk.f32.gmra.mrb[54].mxu0 %vm50_vm4, %v2749_v14  ;;  %3671 = vmatmul.mubr.msk.f32.gmra.mrb[54].mxu1 %vm50_vm4, %v2800_v15  ;;  %v2905_v15 = vld [vmem:[%s6327_s0 + $0x408] sm:$0xff] }
  0x84   :  { %3578 = vmatprep.mubr.msk.f32.mxu0 %vm4253_vm0, %v4254_v6  ;;  %3673 = vmatprep.mubr.msk.f32.mxu1 %vm4253_vm0, %v4254_v6 }
  0x85   :  { %4191 = vmatpush3.bf16.msra.mxu0 %v4310_v10  ;;  %4207 = vmatpush3.bf16.msra.mxu1 %v4310_v10 }
  0x86   :  { %4192 = vmatprep.subr.bf16.mxu0 %v4252_v0  ;;  %4208 = vmatprep.subr.bf16.mxu1 %v4252_v0 }
  0x87   :  { %3579 = vmatmul.mubr.msk.f32.gmra.mrb[56].mxu0 %vm50_vm4, %v2750_v18  ;;  %3674 = vmatmul.mubr.msk.f32.gmra.mrb[56].mxu1 %vm50_vm4, %v2801_v19 }
  0x88   :  { %3581 = vmatprep.mubr.msk.f32.mxu0 %vm4253_vm0, %v4254_v6  ;;  %3676 = vmatprep.mubr.msk.f32.mxu1 %vm4253_vm0, %v4254_v6 }
  0x89   :  { %4194 = vmatpush3.bf16.msra.mxu0 %v4322_v13  ;;  %4210 = vmatpush3.bf16.msra.mxu1 %v4322_v13 }
  0x8a   :  { %4195 = vmatprep.subr.bf16.mxu0 %v4252_v0  ;;  %4211 = vmatprep.subr.bf16.mxu1 %v4252_v0 }
  0x8b   :  { %3582 = vmatmul.mubr.msk.f32.gmra.mrb[58].mxu0 %vm50_vm4, %v2751_v20  ;;  %3677 = vmatmul.mubr.msk.f32.gmra.mrb[58].mxu1 %vm50_vm4, %v2802_v21 }
  0x8c   :  { %3584 = vmatprep.mubr.msk.f32.mxu0 %vm4253_vm0, %v4254_v6  ;;  %3679 = vmatprep.mubr.msk.f32.mxu1 %vm4253_vm0, %v4254_v6 }
  0x8d   :  { %4198 = vmatpush3.bf16.msk.msra.mxu0 %vm4338_vm3, %v4334_v16  ;;  %4214 = vmatpush3.bf16.msk.msra.mxu1 %vm4338_vm3, %v4334_v16 }
  0x8e   :  { %4215 = vmatprep.subr.bf16.mxu0 %v4252_v0  ;;  %4231 = vmatprep.subr.bf16.mxu1 %v4252_v0 }
  0x8f   :  { %3585 = vmatmul.mubr.msk.f32.gmra.mrb[60].mxu0 %vm50_vm4, %v2752_v22  ;;  %3680 = vmatmul.mubr.msk.f32.gmra.mrb[60].mxu1 %vm50_vm4, %v2803_v23 }
  0x90   :  { %3587 = vmatprep.mubr.msk.f32.mxu0 %vm4253_vm0, %v4254_v6  ;;  %3682 = vmatprep.mubr.msk.f32.mxu1 %vm4253_vm0, %v4254_v6 }
  0x93   :  { %3588 = vmatmul.mubr.msk.f32.gmra.mrb[62].mxu0 %vm50_vm4, %v2753_v24  ;;  %3683 = vmatmul.mubr.msk.f32.gmra.mrb[62].mxu1 %vm50_vm4, %v2804_v25 }
  0x94   :  { %3590 = vmatprep.mubr.msk.f32.mxu0 %vm4253_vm0, %v4254_v6  ;;  %3685 = vmatprep.mubr.msk.f32.mxu1 %vm4253_vm0, %v4254_v6 }
  0x97   :  { %3591 = vmatmul.mubr.msk.f32.gmra.mrb[64].mxu0 %vm50_vm4, %v2754_v26  ;;  %3686 = vmatmul.mubr.msk.f32.gmra.mrb[64].mxu1 %vm50_vm4, %v2805_v27 }
  0x98   :  { %3593 = vmatprep.mubr.msk.f32.mxu0 %vm4253_vm0, %v4254_v6  ;;  %3688 = vmatprep.mubr.msk.f32.mxu1 %vm4253_vm0, %v4254_v6 }
  0x9b   :  { %3594 = vmatmul.mubr.msk.f32.gmra.mrb[66].mxu0 %vm50_vm4, %v2755_v28  ;;  %3689 = vmatmul.mubr.msk.f32.gmra.mrb[66].mxu1 %vm50_vm4, %v2806_v29 }
  0x9c   :  { %3596 = vmatprep.mubr.msk.f32.mxu0 %vm4253_vm0, %v4254_v6  ;;  %3691 = vmatprep.mubr.msk.f32.mxu1 %vm4253_vm0, %v4254_v6 }
  0x9f   :  { %3597 = vmatmul.mubr.msk.f32.gmra.mrb[68].mxu0 %vm50_vm4, %v2756_v30  ;;  %3692 = vmatmul.mubr.msk.f32.gmra.mrb[68].mxu1 %vm50_vm4, %v2807_v31 }
  0xa0   :  { %3599 = vmatprep.mubr.msk.f32.mxu0 %vm4253_vm0, %v4254_v6  ;;  %3694 = vmatprep.mubr.msk.f32.mxu1 %vm4253_vm0, %v4254_v6 }
  0xa3   :  { %3600 = vmatmul.mubr.msk.f32.gmra.mrb[70].mxu0 %vm50_vm4, %v2757_v32  ;;  %3695 = vmatmul.mubr.msk.f32.gmra.mrb[70].mxu1 %vm50_vm4, %v2808_v33  ;;  %v2857_v33 = vld [vmem:[%s6327_s0 + $0x358] sm:$0xff] }
  0xa4   :  { %3602 = vmatprep.mubr.msk.f32.mxu0 %vm4253_vm0, %v4254_v6  ;;  %3697 = vmatprep.mubr.msk.f32.mxu1 %vm4253_vm0, %v4254_v6 }
  0xa7   :  { %3603 = vmatmul.mubr.msk.f32.gmra.mrb[72].mxu0 %vm50_vm4, %v2758_v34  ;;  %3698 = vmatmul.mubr.msk.f32.gmra.mrb[72].mxu1 %vm50_vm4, %v2809_v35  ;;  %v2908_v34 = vld [vmem:[%s6327_s0 + $0x420] sm:$0xff] }
  0xa8   :  { %3605 = vmatprep.mubr.msk.f32.mxu0 %vm4253_vm0, %v4254_v6  ;;  %3700 = vmatprep.mubr.msk.f32.mxu1 %vm4253_vm0, %v4254_v6 }
  0xab   :  { %3606 = vmatmul.mubr.msk.f32.gmra.mrb[74].mxu0 %vm50_vm4, %v2759_v36  ;;  %3701 = vmatmul.mubr.msk.f32.gmra.mrb[74].mxu1 %vm50_vm4, %v2810_v37 }
  0xac   :  { %3608 = vmatprep.mubr.msk.f32.mxu0 %vm4253_vm0, %v4254_v6  ;;  %3703 = vmatprep.mubr.msk.f32.mxu1 %vm4253_vm0, %v4254_v6 }
  0xaf   :  { %3609 = vmatmul.mubr.msk.f32.gmra.mrb[76].mxu0 %vm50_vm4, %v2760_v38  ;;  %3704 = vmatmul.mubr.msk.f32.gmra.mrb[76].mxu1 %vm50_vm4, %v2811_v39 }
  0xb0   :  { %3611 = vmatprep.mubr.msk.f32.mxu0 %vm4253_vm0, %v4254_v6  ;;  %3706 = vmatprep.mubr.msk.f32.mxu1 %vm4253_vm0, %v4254_v6 }
  0xb3   :  { %3612 = vmatmul.mubr.msk.f32.gmra.mrb[78].mxu0 %vm50_vm4, %v2761_v40  ;;  %3707 = vmatmul.mubr.msk.f32.gmra.mrb[78].mxu1 %vm50_vm4, %v2812_v41  ;;  %v2858_v40 = vld [vmem:[%s6327_s0 + $0x360] sm:$0xff]  ;;  %v2909_v41 = vld [vmem:[%s6327_s0 + $0x428] sm:$0xff] }
  0xb4   :  { %3614 = vmatprep.mubr.msk.f32.mxu0 %vm4253_vm0, %v4254_v6  ;;  %3709 = vmatprep.mubr.msk.f32.mxu1 %vm4253_vm0, %v4254_v6 }
  0xb7   :  { %3615 = vmatmul.mubr.msk.f32.gmra.mrb[80].mxu0 %vm50_vm4, %v2762_v42  ;;  %3710 = vmatmul.mubr.msk.f32.gmra.mrb[80].mxu1 %vm50_vm4, %v2813_v43 }
  0xb8   :  { %3617 = vmatprep.mubr.msk.f32.mxu0 %vm4253_vm0, %v4254_v6  ;;  %3712 = vmatprep.mubr.msk.f32.mxu1 %vm4253_vm0, %v4254_v6 }
  0xbb   :  { %3618 = vmatmul.mubr.msk.f32.gmra.mrb[82].mxu0 %vm50_vm4, %v2763_v44  ;;  %3713 = vmatmul.mubr.msk.f32.gmra.mrb[82].mxu1 %vm50_vm4, %v2814_v45 }
  0xbc   :  { %3620 = vmatprep.mubr.msk.f32.mxu0 %vm4253_vm0, %v4254_v6  ;;  %3715 = vmatprep.mubr.msk.f32.mxu1 %vm4253_vm0, %v4254_v6 }
  0xbf   :  { %3621 = vmatmul.mubr.msk.f32.gmra.mrb[84].mxu0 %vm50_vm4, %v2764_v46  ;;  %3716 = vmatmul.mubr.msk.f32.gmra.mrb[84].mxu1 %vm50_vm4, %v2815_v47  ;;  %v2859_v47 = vld [vmem:[%s6327_s0 + $0x368] sm:$0xff] }
  0xc0   :  { %3623 = vmatprep.mubr.msk.f32.mxu0 %vm4253_vm0, %v4254_v6  ;;  %3718 = vmatprep.mubr.msk.f32.mxu1 %vm4253_vm0, %v4254_v6 }
  0xc3   :  { %3624 = vmatmul.mubr.msk.f32.gmra.mrb[86].mxu0 %vm50_vm4, %v2765_v48  ;;  %3719 = vmatmul.mubr.msk.f32.gmra.mrb[86].mxu1 %vm50_vm4, %v2816_v49  ;;  %v2910_v48 = vld [vmem:[%s6327_s0 + $0x430] sm:$0xff] }
  0xc4   :  { %3626 = vmatprep.mubr.msk.f32.mxu0 %vm4253_vm0, %v4254_v6  ;;  %3721 = vmatprep.mubr.msk.f32.mxu1 %vm4253_vm0, %v4254_v6 }
  0xc7   :  { %3627 = vmatmul.mubr.msk.f32.gmra.mrb[88].mxu0 %vm50_vm4, %v2766_v50  ;;  %3722 = vmatmul.mubr.msk.f32.gmra.mrb[88].mxu1 %vm50_vm4, %v2817_v51 }
  0xc8   :  { %3629 = vmatprep.mubr.msk.f32.mxu0 %vm4253_vm0, %v4254_v6  ;;  %3724 = vmatprep.mubr.msk.f32.mxu1 %vm4253_vm0, %v4254_v6 }
  0xcb   :  { %3630 = vmatmul.mubr.msk.f32.gmra.mrb[90].mxu0 %vm50_vm4, %v2767_v52  ;;  %3725 = vmatmul.mubr.msk.f32.gmra.mrb[90].mxu1 %vm50_vm4, %v2818_v53 }
  0xcc   :  { %3632 = vmatprep.mubr.msk.f32.mxu0 %vm4253_vm0, %v4254_v6  ;;  %3727 = vmatprep.mubr.msk.f32.mxu1 %vm4253_vm0, %v4254_v6 }
  0xcf   :  { %3633 = vmatmul.mubr.msk.f32.gmra.mrb[92].mxu0 %vm50_vm4, %v2768_v54  ;;  %3728 = vmatmul.mubr.msk.f32.gmra.mrb[92].mxu1 %vm50_vm4, %v2819_v55  ;;  %v2860_v54 = vld [vmem:[%s6327_s0 + $0x370] sm:$0xff]  ;;  %v2911_v55 = vld [vmem:[%s6327_s0 + $0x438] sm:$0xff] }
  0xd0   :  { %3635 = vmatprep.mubr.msk.f32.mxu0 %vm4253_vm0, %v4254_v6  ;;  %3730 = vmatprep.mubr.msk.f32.mxu1 %vm4253_vm0, %v4254_v6 }
  0xd3   :  { %3636 = vmatmul.mubr.msk.f32.gmra.mrb[94].mxu0 %vm50_vm4, %v2769_v56  ;;  %3731 = vmatmul.mubr.msk.f32.gmra.mrb[94].mxu1 %vm50_vm4, %v2820_v57 }
  0xd4   :  { %3638 = vmatprep.mubr.msk.f32.mxu0 %vm4253_vm0, %v4254_v6  ;;  %3733 = vmatprep.mubr.msk.f32.mxu1 %vm4253_vm0, %v4254_v6 }
  0xd7   :  { %3639 = vmatmul.mubr.msk.f32.gmra.mrb[96].mxu0 %vm50_vm4, %v2770_v58  ;;  %3734 = vmatmul.mubr.msk.f32.gmra.mrb[96].mxu1 %vm50_vm4, %v2821_v59  ;;  %v2955_v58 = vld [vmem:[%s6327_s0 + $0x4c8] sm:$0xff] }
  0xd8   :  { %3641 = vmatprep.mubr.msk.f32.mxu0 %vm4253_vm0, %v4254_v6  ;;  %3736 = vmatprep.mubr.msk.f32.mxu1 %vm4253_vm0, %v4254_v6 }
  0xdb   :  { %3642 = vmatmul.mubr.msk.f32.gmra.mrb[98].mxu0 %vm50_vm4, %v2771_v60  ;;  %3737 = vmatmul.mubr.msk.f32.gmra.mrb[98].mxu1 %vm50_vm4, %v2822_v61  ;;  %v2861_v61 = vld [vmem:[%s6327_s0 + $0x378] sm:$0xff] }
  0xdc   :  { %3759 = vmatprep.mubr.msk.f32.mxu0 %vm4253_vm0, %v4254_v6  ;;  %3854 = vmatprep.mubr.msk.f32.mxu1 %vm4253_vm0, %v4254_v6 }
  0xdf   :  { %3760 = vmatmul.mubr.msk.f32.vlgmr.msra.gmra.mrb[100].mxu0 %vm50_vm4, %v2850_v62  ;;  %3855 = vmatmul.mubr.msk.f32.vlgmr.msra.gmra.mrb[100].mxu1 %vm50_vm4, %v2901_v63  ;;  %v2912_v62 = vld [vmem:[%s6327_s0 + $0x440] sm:$0xff] }
  0xe0   :  { %4217 = vmatpush3.bf16.msra.mxu0 %v4287_v4  ;;  %4233 = vmatpush3.bf16.msra.mxu1 %v4287_v4  ;;  %v2852_v4 = vld [vmem:[%s6327_s0 + $0x330] sm:$0xff] }
  0xe1   :  { %3762 = vmatprep.mubr.msk.f32.mxu0 %vm4253_vm0, %v4254_v6  ;;  %3857 = vmatprep.mubr.msk.f32.mxu1 %vm4253_vm0, %v4254_v6 }
  0xe2   :  { %4218 = vmatprep.subr.bf16.mxu0 %v4252_v0  ;;  %4234 = vmatprep.subr.bf16.mxu1 %v4252_v0 }
  0xe3   :  { %3763 = vmatmul.mubr.msk.f32.gmra.mrb[102].mxu0 %vm50_vm4, %v2851_v1  ;;  %3858 = vmatmul.mubr.msk.f32.gmra.mrb[102].mxu1 %vm50_vm4, %v2902_v2 }
  0xe4   :  { %3765 = vmatprep.mubr.msk.f32.mxu0 %vm4253_vm0, %v4254_v6  ;;  %3860 = vmatprep.mubr.msk.f32.mxu1 %vm4253_vm0, %v4254_v6 }
  0xe5   :  { %4220 = vmatpush3.bf16.msra.mxu0 %v4298_v7  ;;  %4236 = vmatpush3.bf16.msra.mxu1 %v4298_v7  ;;  %v2904_v7 = vld [vmem:[%s6327_s0 + $0x400] sm:$0xff] }
  0xe6   :  { %4221 = vmatprep.subr.bf16.mxu0 %v4252_v0  ;;  %4237 = vmatprep.subr.bf16.mxu1 %v4252_v0 }
  0xe7   :  { %3766 = vmatmul.mubr.msk.f32.gmra.mrb[104].mxu0 %vm50_vm4, %v2852_v4  ;;  %3861 = vmatmul.mubr.msk.f32.gmra.mrb[104].mxu1 %vm50_vm4, %v2903_v3 }
  0xe8   :  { %3768 = vmatprep.mubr.msk.f32.mxu0 %vm4253_vm0, %v4254_v6  ;;  %3863 = vmatprep.mubr.msk.f32.mxu1 %vm4253_vm0, %v4254_v6 }
  0xe9   :  { %4223 = vmatpush3.bf16.msra.mxu0 %v4310_v10  ;;  %4239 = vmatpush3.bf16.msra.mxu1 %v4310_v10  ;;  %v2854_v10 = vld [vmem:[%s6327_s0 + $0x340] sm:$0xff] }
  0xea   :  { %v5050_v8 = vpop.f32.mrb[0].mxu0  ;;  %v5052_v9 = vpop.f32.mrb[0].mxu1  ;;  %4224 = vmatprep.subr.bf16.mxu0 %v4252_v0  ;;  %4240 = vmatprep.subr.bf16.mxu1 %v4252_v0 }
  0xeb   :  { %v1193_v11 = vmax.f32 %v5050_v8, %v5052_v9  ;;  %v3381_v12 = vpop.f32.mrb[1].mxu0  ;;  %v3476_v14 = vpop.f32.mrb[1].mxu1  ;;  %3769 = vmatmul.mubr.msk.f32.gmra.mrb[106].mxu0 %vm50_vm4, %v2853_v5  ;;  %3864 = vmatmul.mubr.msk.f32.gmra.mrb[106].mxu1 %vm50_vm4, %v2904_v7  ;;  %v2862_v5 = vld [vmem:[%s6327_s0 + $0x380] sm:$0xff]  ;;  %v2913_v7 = vld [vmem:[%s6327_s0 + $0x448] sm:$0xff]  ;;  %v2957_v8 = vld [vmem:[%s6327_s0 + $0x4d8] sm:$0xff] }
  0xec   :  { %3771 = vmatprep.mubr.msk.f32.mxu0 %vm4253_vm0, %v4254_v6  ;;  %3866 = vmatprep.mubr.msk.f32.mxu1 %vm4253_vm0, %v4254_v6  ;;  %v3008_v9 = vld [vmem:[%s6327_s0 + $0x5a0] sm:$0xff] }
  0xed   :  { %4226 = vmatpush3.bf16.msra.mxu0 %v4322_v13  ;;  %4242 = vmatpush3.bf16.msra.mxu1 %v4322_v13  ;;  %v2855_v13 = vld [vmem:[%s6327_s0 + $0x348] sm:$0xff] }
  0xee   :  { %v5072_v18 = vpop.f32.mrb[2].mxu0  ;;  %v5074_v19 = vpop.f32.mrb[2].mxu1  ;;  %4227 = vmatprep.subr.bf16.mxu0 %v4252_v0  ;;  %4243 = vmatprep.subr.bf16.mxu1 %v4252_v0  ;;  %v2906_v0 = vld [vmem:[%s6327_s0 + $0x410] sm:$0xff] }
  0xef   :  { %v1194_v20 = vmax.f32 %v5072_v18, %v5074_v19  ;;  %v3384_v21 = vpop.f32.mrb[3].mxu0  ;;  %v3479_v22 = vpop.f32.mrb[3].mxu1  ;;  %3772 = vmatmul.mubr.msk.f32.gmra.mrb[108].mxu0 %vm50_vm4, %v2854_v10  ;;  %3867 = vmatmul.mubr.msk.f32.gmra.mrb[108].mxu1 %vm50_vm4, %v2905_v15  ;;  %v2954_v10 = vld [vmem:[%s6327_s0 + $0x4c0] sm:$0xff]  ;;  %v3009_v19 = vld [vmem:[%s6327_s0 + $0x5a8] sm:$0xff] }
  0xf0   :  { %3774 = vmatprep.mubr.msk.f32.mxu0 %vm4253_vm0, %v4254_v6  ;;  %3869 = vmatprep.mubr.msk.f32.mxu1 %vm4253_vm0, %v4254_v6  ;;  %v2863_v22 = vld [vmem:[%s6327_s0 + $0x388] sm:$0xff]  ;;  %v2958_v18 = vld [vmem:[%s6327_s0 + $0x4e0] sm:$0xff] }
  0xf1   :  { %4230 = vmatpush3.bf16.msk.msra.mxu0 %vm4338_vm3, %v4334_v16  ;;  %4246 = vmatpush3.bf16.msk.msra.mxu1 %vm4338_vm3, %v4334_v16  ;;  %v2856_v16 = vld [vmem:[%s6327_s0 + $0x350] sm:$0xff] }
  0xf2   :  { %v5098_v23 = vpop.f32.mrb[4].mxu0  ;;  %v5100_v24 = vpop.f32.mrb[4].mxu1 }
  0xf3   :  { %v3387_v26 = vpop.f32.mrb[5].mxu0  ;;  %v3482_v27 = vpop.f32.mrb[5].mxu1  ;;  %3775 = vmatmul.mubr.msk.f32.gmra.mrb[110].mxu0 %vm50_vm4, %v2855_v13  ;;  %3870 = vmatmul.mubr.msk.f32.gmra.mrb[110].mxu1 %vm50_vm4, %v2906_v0  ;;  %v2914_v13 = vld [vmem:[%s6327_s0 + $0x450] sm:$0xff] }
  0xf4   :  { %3777 = vmatprep.mubr.msk.f32.mxu0 %vm4253_vm0, %v4254_v6  ;;  %3872 = vmatprep.mubr.msk.f32.mxu1 %vm4253_vm0, %v4254_v6 }
  0xf6   :  { %v5116_v28 = vpop.f32.mrb[6].mxu0  ;;  %v5118_v29 = vpop.f32.mrb[6].mxu1 }
  0xf7   :  { %v3390_v31 = vpop.f32.mrb[7].mxu0  ;;  %v3485_v32 = vpop.f32.mrb[7].mxu1  ;;  %3778 = vmatmul.mubr.msk.f32.gmra.mrb[112].mxu0 %vm50_vm4, %v2856_v16  ;;  %3873 = vmatmul.mubr.msk.f32.gmra.mrb[112].mxu1 %vm50_vm4, %v2907_v17 }
  0xf8   :  { %3780 = vmatprep.mubr.msk.f32.mxu0 %vm4253_vm0, %v4254_v6  ;;  %3875 = vmatprep.mubr.msk.f32.mxu1 %vm4253_vm0, %v4254_v6  ;;  %v2864_v31 = vld [vmem:[%s6327_s0 + $0x390] sm:$0xff]  ;;  %v2915_v32 = vld [vmem:[%s6327_s0 + $0x458] sm:$0xff] }
  0xfa   :  { %v5134_v35 = vpop.f32.mrb[8].mxu0  ;;  %v5136_v36 = vpop.f32.mrb[8].mxu1 }
  0xfb   :  { %v3393_v38 = vpop.f32.mrb[9].mxu0  ;;  %v3488_v39 = vpop.f32.mrb[9].mxu1  ;;  %3781 = vmatmul.mubr.msk.f32.gmra.mrb[114].mxu0 %vm50_vm4, %v2857_v33  ;;  %3876 = vmatmul.mubr.msk.f32.gmra.mrb[114].mxu1 %vm50_vm4, %v2908_v34 }
  0xfc   :  { %3783 = vmatprep.mubr.msk.f32.mxu0 %vm4253_vm0, %v4254_v6  ;;  %3878 = vmatprep.mubr.msk.f32.mxu1 %vm4253_vm0, %v4254_v6  ;;  %v2953_v38 = vld [vmem:[%s6327_s0 + $0x4b8] sm:$0xff] }
  0xfe   :  { %v5152_v42 = vpop.f32.mrb[10].mxu0  ;;  %v5154_v43 = vpop.f32.mrb[10].mxu1 }
  0xff   :  { %v3396_v45 = vpop.f32.mrb[11].mxu0  ;;  %v3491_v46 = vpop.f32.mrb[11].mxu1  ;;  %3784 = vmatmul.mubr.msk.f32.gmra.mrb[116].mxu0 %vm50_vm4, %v2858_v40  ;;  %3879 = vmatmul.mubr.msk.f32.gmra.mrb[116].mxu1 %vm50_vm4, %v2909_v41  ;;  %v2865_v41 = vld [vmem:[%s6327_s0 + $0x398] sm:$0xff] }
 0x100   :  { %3786 = vmatprep.mubr.msk.f32.mxu0 %vm4253_vm0, %v4254_v6  ;;  %3881 = vmatprep.mubr.msk.f32.mxu1 %vm4253_vm0, %v4254_v6  ;;  %v2916_v45 = vld [vmem:[%s6327_s0 + $0x460] sm:$0xff] }
 0x102   :  { %v5170_v49 = vpop.f32.mrb[12].mxu0  ;;  %v5172_v50 = vpop.f32.mrb[12].mxu1 }
 0x103   :  { %v3399_v52 = vpop.f32.mrb[13].mxu0  ;;  %v3494_v53 = vpop.f32.mrb[13].mxu1  ;;  %3787 = vmatmul.mubr.msk.f32.gmra.mrb[118].mxu0 %vm50_vm4, %v2859_v47  ;;  %3882 = vmatmul.mubr.msk.f32.gmra.mrb[118].mxu1 %vm50_vm4, %v2910_v48 }
 0x104   :  { %3789 = vmatprep.mubr.msk.f32.mxu0 %vm4253_vm0, %v4254_v6  ;;  %3884 = vmatprep.mubr.msk.f32.mxu1 %vm4253_vm0, %v4254_v6 }
 0x106   :  { %v5188_v56 = vpop.f32.mrb[14].mxu0  ;;  %v5190_v57 = vpop.f32.mrb[14].mxu1 }
 0x107   :  { %v3402_v59 = vpop.f32.mrb[15].mxu0  ;;  %v3497_v60 = vpop.f32.mrb[15].mxu1  ;;  %3790 = vmatmul.mubr.msk.f32.gmra.mrb[120].mxu0 %vm50_vm4, %v2860_v54  ;;  %3885 = vmatmul.mubr.msk.f32.gmra.mrb[120].mxu1 %vm50_vm4, %v2911_v55  ;;  %v2866_v54 = vld [vmem:[%s6327_s0 + $0x3a0] sm:$0xff]  ;;  %v2917_v55 = vld [vmem:[%s6327_s0 + $0x468] sm:$0xff] }
 0x108   :  { %3792 = vmatprep.mubr.msk.f32.mxu0 %vm4253_vm0, %v4254_v6  ;;  %3887 = vmatprep.mubr.msk.f32.mxu1 %vm4253_vm0, %v4254_v6 }
 0x10a   :  { %v5206_v63 = vpop.f32.mrb[16].mxu0  ;;  %v5208_v1 = vpop.f32.mrb[16].mxu1 }
 0x10b   :  { %v3405_v4 = vpop.f32.mrb[17].mxu0  ;;  %v3500_v3 = vpop.f32.mrb[17].mxu1  ;;  %3793 = vmatmul.mubr.msk.f32.gmra.mrb[122].mxu0 %vm50_vm4, %v2861_v61  ;;  %3888 = vmatmul.mubr.msk.f32.gmra.mrb[122].mxu1 %vm50_vm4, %v2912_v62  ;;  %v2952_v61 = vld [vmem:[%s6327_s0 + $0x4b0] sm:$0xff] }
 0x10c   :  { %3795 = vmatprep.mubr.msk.f32.mxu0 %vm4253_vm0, %v4254_v6  ;;  %3890 = vmatprep.mubr.msk.f32.mxu1 %vm4253_vm0, %v4254_v6  ;;  %v2867_v3 = vld [vmem:[%s6327_s0 + $0x3a8] sm:$0xff] }
 0x10e   :  { %v5224_v12 = vpop.f32.mrb[18].mxu0  ;;  %v5226_v14 = vpop.f32.mrb[18].mxu1 }
 0x10f   :  { %v3408_v15 = vpop.f32.mrb[19].mxu0  ;;  %v3503_v21 = vpop.f32.mrb[19].mxu1  ;;  %3796 = vmatmul.mubr.msk.f32.gmra.mrb[124].mxu0 %vm50_vm4, %v2862_v5  ;;  %3891 = vmatmul.mubr.msk.f32.gmra.mrb[124].mxu1 %vm50_vm4, %v2913_v7  ;;  %v2918_v5 = vld [vmem:[%s6327_s0 + $0x470] sm:$0xff] }
 0x110   :  { %3798 = vmatprep.mubr.msk.f32.mxu0 %vm4253_vm0, %v4254_v6  ;;  %3893 = vmatprep.mubr.msk.f32.mxu1 %vm4253_vm0, %v4254_v6 }
 0x112   :  { %v5242_v0 = vpop.f32.mrb[20].mxu0  ;;  %v5244_v26 = vpop.f32.mrb[20].mxu1 }
 0x113   :  { %v3411_v16 = vpop.f32.mrb[21].mxu0  ;;  %v3506_v17 = vpop.f32.mrb[21].mxu1  ;;  %3799 = vmatmul.mubr.msk.f32.gmra.mrb[126].mxu0 %vm50_vm4, %v2863_v22  ;;  %3894 = vmatmul.mubr.msk.f32.gmra.mrb[126].mxu1 %vm50_vm4, %v2914_v13 }
 0x114   :  { %3801 = vmatprep.mubr.msk.f32.mxu0 %vm4253_vm0, %v4254_v6  ;;  %3896 = vmatprep.mubr.msk.f32.mxu1 %vm4253_vm0, %v4254_v6  ;;  %v2868_v16 = vld [vmem:[%s6327_s0 + $0x3b0] sm:$0xff]  ;;  %v2919_v17 = vld [vmem:[%s6327_s0 + $0x478] sm:$0xff] }
 0x116   :  { %v5260_v33 = vpop.f32.mrb[22].mxu0  ;;  %v5262_v34 = vpop.f32.mrb[22].mxu1 }
 0x117   :  { %v3414_v39 = vpop.f32.mrb[23].mxu0  ;;  %v3509_v40 = vpop.f32.mrb[23].mxu1  ;;  %3802 = vmatmul.mubr.msk.f32.gmra.mrb[128].mxu0 %vm50_vm4, %v2864_v31  ;;  %3897 = vmatmul.mubr.msk.f32.gmra.mrb[128].mxu1 %vm50_vm4, %v2915_v32 }
 0x118   :  { %3804 = vmatprep.mubr.msk.f32.mxu0 %vm4253_vm0, %v4254_v6  ;;  %3899 = vmatprep.mubr.msk.f32.mxu1 %vm4253_vm0, %v4254_v6  ;;  %v2874_v39 = vld [vmem:[%s6327_s0 + $0x3e0] sm:$0xf] }
 0x11a   :  { %v5278_v46 = vpop.f32.mrb[24].mxu0  ;;  %v5280_v47 = vpop.f32.mrb[24].mxu1 }
 0x11b   :  { %v3417_v52 = vpop.f32.mrb[25].mxu0  ;;  %v3512_v53 = vpop.f32.mrb[25].mxu1  ;;  %3805 = vmatmul.mubr.msk.f32.gmra.mrb[130].mxu0 %vm50_vm4, %v2865_v41  ;;  %3900 = vmatmul.mubr.msk.f32.gmra.mrb[130].mxu1 %vm50_vm4, %v2916_v45  ;;  %v2869_v45 = vld [vmem:[%s6327_s0 + $0x3b8] sm:$0xff] }
 0x11c   :  { %3807 = vmatprep.mubr.msk.f32.mxu0 %vm4253_vm0, %v4254_v6  ;;  %3902 = vmatprep.mubr.msk.f32.mxu1 %vm4253_vm0, %v4254_v6  ;;  %v2920_v52 = vld [vmem:[%s6327_s0 + $0x480] sm:$0xff] }
 0x11e   :  { %v5296_v59 = vpop.f32.mrb[26].mxu0  ;;  %v5298_v60 = vpop.f32.mrb[26].mxu1 }
 0x11f   :  { %v3420_v62 = vpop.f32.mrb[27].mxu0  ;;  %v3515_v4 = vpop.f32.mrb[27].mxu1  ;;  %3808 = vmatmul.mubr.msk.f32.gmra.mrb[132].mxu0 %vm50_vm4, %v2866_v54  ;;  %3903 = vmatmul.mubr.msk.f32.gmra.mrb[132].mxu1 %vm50_vm4, %v2917_v55 }
 0x120   :  { %3810 = vmatprep.mubr.msk.f32.mxu0 %vm4253_vm0, %v4254_v6  ;;  %3905 = vmatprep.mubr.msk.f32.mxu1 %vm4253_vm0, %v4254_v6 }
 0x122   :  { %v5314_v7 = vpop.f32.mrb[28].mxu0  ;;  %v5316_v15 = vpop.f32.mrb[28].mxu1 }
 0x123   :  { %v3423_v22 = vpop.f32.mrb[29].mxu0  ;;  %v3518_v13 = vpop.f32.mrb[29].mxu1  ;;  %3811 = vmatmul.mubr.msk.f32.gmra.mrb[134].mxu0 %vm50_vm4, %v2867_v3  ;;  %3906 = vmatmul.mubr.msk.f32.gmra.mrb[134].mxu1 %vm50_vm4, %v2918_v5  ;;  %v2870_v3 = vld [vmem:[%s6327_s0 + $0x3c0] sm:$0xff]  ;;  %v2921_v5 = vld [vmem:[%s6327_s0 + $0x488] sm:$0xff] }
 0x124   :  { %3813 = vmatprep.mubr.msk.f32.mxu0 %vm4253_vm0, %v4254_v6  ;;  %3908 = vmatprep.mubr.msk.f32.mxu1 %vm4253_vm0, %v4254_v6 }
 0x126   :  { %v5332_v31 = vpop.f32.mrb[30].mxu0  ;;  %v5334_v32 = vpop.f32.mrb[30].mxu1 }
 0x127   :  { %v3426_v40 = vpop.f32.mrb[31].mxu0  ;;  %v3521_v41 = vpop.f32.mrb[31].mxu1  ;;  %3814 = vmatmul.mubr.msk.f32.gmra.mrb[136].mxu0 %vm50_vm4, %v2868_v16  ;;  %3909 = vmatmul.mubr.msk.f32.gmra.mrb[136].mxu1 %vm50_vm4, %v2919_v17  ;;  %v2873_v16 = vld [vmem:[%s6327_s0 + $0x3d8] sm:$0xff] }
 0x128   :  { %3816 = vmatprep.mubr.msk.f32.mxu0 %vm4253_vm0, %v4254_v6  ;;  %3911 = vmatprep.mubr.msk.f32.mxu1 %vm4253_vm0, %v4254_v6  ;;  %v2871_v41 = vld [vmem:[%s6327_s0 + $0x3c8] sm:$0xff] }
 0x12a   :  { %v5350_v53 = vpop.f32.mrb[32].mxu0  ;;  %v5352_v54 = vpop.f32.mrb[32].mxu1 }
 0x12b   :  { %v3429_v62 = vpop.f32.mrb[33].mxu0  ;;  %v3524_v4 = vpop.f32.mrb[33].mxu1  ;;  %3817 = vmatmul.mubr.msk.f32.gmra.mrb[138].mxu0 %vm50_vm4, %v2869_v45  ;;  %3912 = vmatmul.mubr.msk.f32.gmra.mrb[138].mxu1 %vm50_vm4, %v2920_v52  ;;  %v2922_v45 = vld [vmem:[%s6327_s0 + $0x490] sm:$0xff] }
 0x12c   :  { %3819 = vmatprep.mubr.msk.f32.mxu0 %vm4253_vm0, %v4254_v6  ;;  %3914 = vmatprep.mubr.msk.f32.mxu1 %vm4253_vm0, %v4254_v6 }
 0x12e   :  { %v5368_v22 = vpop.f32.mrb[34].mxu0  ;;  %v5370_v13 = vpop.f32.mrb[34].mxu1 }
 0x12f   :  { %v3432_v17 = vpop.f32.mrb[35].mxu0  ;;  %v3527_v40 = vpop.f32.mrb[35].mxu1  ;;  %3820 = vmatmul.mubr.msk.f32.gmra.mrb[140].mxu0 %vm50_vm4, %v2870_v3  ;;  %3915 = vmatmul.mubr.msk.f32.gmra.mrb[140].mxu1 %vm50_vm4, %v2921_v5 }
 0x130   :  { %3822 = vmatprep.mubr.msk.f32.mxu0 %vm4253_vm0, %v4254_v6  ;;  %3917 = vmatprep.mubr.msk.f32.mxu1 %vm4253_vm0, %v4254_v6  ;;  %v2872_v17 = vld [vmem:[%s6327_s0 + $0x3d0] sm:$0xff]  ;;  %v2923_v40 = vld [vmem:[%s6327_s0 + $0x498] sm:$0xff] }
 0x132   :  { %v5386_v52 = vpop.f32.mrb[36].mxu0  ;;  %v5388_v62 = vpop.f32.mrb[36].mxu1 }
 0x133   :  { %v3435_v3 = vpop.f32.mrb[37].mxu0  ;;  %v3530_v5 = vpop.f32.mrb[37].mxu1  ;;  %3823 = vmatmul.mubr.msk.f32.gmra.mrb[142].mxu0 %vm50_vm4, %v2871_v41  ;;  %3918 = vmatmul.mubr.msk.f32.gmra.mrb[142].mxu1 %vm50_vm4, %v2922_v45  ;;  %v2924_v41 = vld [vmem:[%s6327_s0 + $0x4a0] sm:$0xff] }
 0x134   :  { %3825 = vmatprep.mubr.msk.f32.mxu0 %vm4253_vm0, %v4254_v6  ;;  %3920 = vmatprep.mubr.msk.f32.mxu1 %vm4253_vm0, %v4254_v6 }
 0x136   :  { %v5404_v3 = vpop.f32.mrb[38].mxu0  ;;  %v5406_v5 = vpop.f32.mrb[38].mxu1 }
 0x137   :  { %v3438_v45 = vpop.f32.mrb[39].mxu0  ;;  %v3533_v4 = vpop.f32.mrb[39].mxu1  ;;  %3826 = vmatmul.mubr.msk.f32.gmra.mrb[144].mxu0 %vm50_vm4, %v2872_v17  ;;  %3921 = vmatmul.mubr.msk.f32.gmra.mrb[144].mxu1 %vm50_vm4, %v2923_v40  ;;  %v2925_v17 = vld [vmem:[%s6327_s0 + $0x4a8] sm:$0xf] }
 0x138   :  { %3828 = vmatprep.mubr.msk.f32.mxu0 %vm4253_vm0, %v4254_v6  ;;  %3923 = vmatprep.mubr.msk.f32.mxu1 %vm4253_vm0, %v4254_v6 }
 0x13a   :  { %v5422_v45 = vpop.f32.mrb[40].mxu0  ;;  %v5424_v4 = vpop.f32.mrb[40].mxu1 }
 0x13b   :  { %v3441_v40 = vpop.f32.mrb[41].mxu0  ;;  %v3536_v55 = vpop.f32.mrb[41].mxu1  ;;  %3829 = vmatmul.mubr.msk.f32.gmra.mrb[146].mxu0 %vm50_vm4, %v2873_v16  ;;  %3924 = vmatmul.mubr.msk.f32.gmra.mrb[146].mxu1 %vm50_vm4, %v2924_v41  ;;  %v3003_v16 = vld [vmem:[%s6327_s0 + $0x578] sm:$0xff] }
 0x13c   :  { %3831 = vmatprep.mubr.msk.f32.mxu0 %vm4253_vm0, %v4254_v6  ;;  %3926 = vmatprep.mubr.msk.f32.mxu1 %vm4253_vm0, %v4254_v6 }
 0x13e   :  { %v5440_v40 = vpop.f32.mrb[42].mxu0  ;;  %v5442_v55 = vpop.f32.mrb[42].mxu1 }
 0x13f   :  { %v3444_v41 = vpop.f32.mrb[43].mxu0  ;;  %v3539_v21 = vpop.f32.mrb[43].mxu1  ;;  %3832 = vmatmul.mubr.msk.f32.gmra.mrb[148].mxu0 %vm50_vm4, %v2874_v39  ;;  %3927 = vmatmul.mubr.msk.f32.gmra.mrb[148].mxu1 %vm50_vm4, %v2925_v17  ;;  %v3004_v39 = vld [vmem:[%s6327_s0 + $0x580] sm:$0xff] }
 0x140   :  { %3949 = vmatprep.mubr.msk.f32.mxu0 %vm4253_vm0, %v4254_v6  ;;  %4044 = vmatprep.mubr.msk.f32.mxu1 %vm4253_vm0, %v4254_v6 }
 0x142   :  { %v5458_v41 = vpop.f32.mrb[44].mxu0  ;;  %v5460_v21 = vpop.f32.mrb[44].mxu1 }
 0x143   :  { %v3447_v17 = vpop.f32.mrb[45].mxu0  ;;  %v3542_v48 = vpop.f32.mrb[45].mxu1  ;;  %3950 = vmatmul.mubr.msk.f32.vlgmr.msra.gmra.mrb[150].mxu0 %vm50_vm4, %v2952_v61  ;;  %4045 = vmatmul.mubr.msk.f32.vlgmr.msra.gmra.mrb[150].mxu1 %vm50_vm4, %v3003_v16  ;;  %v3005_v61 = vld [vmem:[%s6327_s0 + $0x588] sm:$0xff] }
 0x144   :  { %3952 = vmatprep.mubr.msk.f32.mxu0 %vm4253_vm0, %v4254_v6  ;;  %4047 = vmatprep.mubr.msk.f32.mxu1 %vm4253_vm0, %v4254_v6 }
 0x146   :  { %v5476_v17 = vpop.f32.mrb[46].mxu0  ;;  %v5478_v48 = vpop.f32.mrb[46].mxu1 }
 0x147   :  { %v3450_v16 = vpop.f32.mrb[47].mxu0  ;;  %v3545_v27 = vpop.f32.mrb[47].mxu1  ;;  %3953 = vmatmul.mubr.msk.f32.gmra.mrb[152].mxu0 %vm50_vm4, %v2953_v38  ;;  %4048 = vmatmul.mubr.msk.f32.gmra.mrb[152].mxu1 %vm50_vm4, %v3004_v39  ;;  %v3006_v38 = vld [vmem:[%s6327_s0 + $0x590] sm:$0xff] }
 0x148   :  { %3955 = vmatprep.mubr.msk.f32.mxu0 %vm4253_vm0, %v4254_v6  ;;  %4050 = vmatprep.mubr.msk.f32.mxu1 %vm4253_vm0, %v4254_v6 }
 0x14a   :  { %v5494_v16 = vpop.f32.mrb[48].mxu0  ;;  %v5496_v27 = vpop.f32.mrb[48].mxu1 }
 0x14b   :  { %v3453_v39 = vpop.f32.mrb[49].mxu0  ;;  %v3548_v2 = vpop.f32.mrb[49].mxu1  ;;  %3956 = vmatmul.mubr.msk.f32.gmra.mrb[154].mxu0 %vm50_vm4, %v2954_v10  ;;  %4051 = vmatmul.mubr.msk.f32.gmra.mrb[154].mxu1 %vm50_vm4, %v3005_v61  ;;  %v5517_v61 = vld [vmem:[%s6328_s2] ss:$0 sm:$0xff] }
 0x14c   :  { %3958 = vmatprep.mubr.msk.f32.mxu0 %vm4253_vm0, %v4254_v6  ;;  %4053 = vmatprep.mubr.msk.f32.mxu1 %vm4253_vm0, %v4254_v6 }
 0x14e   :  { %v778_v39 = vpop.f32.mrb[50].mxu0  ;;  %v1069_v2 = vpop.f32.mrb[50].mxu1 }
 0x14f   :  { %v1218_v51 = vmax.f32 %v778_v39, %v1069_v2  ;;  %v3571_v10 = vpop.f32.mrb[51].mxu0  ;;  %v3666_v44 = vpop.f32.mrb[51].mxu1  ;;  %3959 = vmatmul.mubr.msk.f32.gmra.mrb[156].mxu0 %vm50_vm4, %v2955_v58  ;;  %4054 = vmatmul.mubr.msk.f32.gmra.mrb[156].mxu1 %vm50_vm4, %v3006_v38  ;;  %v2956_v39 = vld [vmem:[%s6327_s0 + $0x4d0] sm:$0xff] }
 0x150   :  { %3961 = vmatprep.mubr.msk.f32.mxu0 %vm4253_vm0, %v4254_v6  ;;  %4056 = vmatprep.mubr.msk.f32.mxu1 %vm4253_vm0, %v4254_v6  ;;  %v3007_v44 = vld [vmem:[%s6327_s0 + $0x598] sm:$0xff] }
 0x151   :  { %v1243_v58 = vmax.f32 %v1193_v11, %v1218_v51 }
 0x152   :  { %v783_v38 = vpop.f32.mrb[52].mxu0  ;;  %v1074_v2 = vpop.f32.mrb[52].mxu1 }
 0x153   :  { %v1274_v10 = vadd.f32 %v5517_v61, %v1243_v58  ;;  %v1219_v37 = vmax.f32 %v783_v38, %v1074_v2  ;;  %v3574_v30 = vpop.f32.mrb[53].mxu0  ;;  %v3669_v25 = vpop.f32.mrb[53].mxu1  ;;  %3962 = vmatmul.mubr.msk.f32.gmra.mrb[158].mxu0 %vm50_vm4, %v2956_v39  ;;  %4057 = vmatmul.mubr.msk.f32.gmra.mrb[158].mxu1 %vm50_vm4, %v3007_v44 }
 0x154   :  { %3964 = vmatprep.mubr.msk.f32.mxu0 %vm4253_vm0, %v4254_v6  ;;  %4059 = vmatprep.mubr.msk.f32.mxu1 %vm4253_vm0, %v4254_v6 }
 0x155   :  { %v1299_v11 = vmax.f32 %v1274_v10, 0.0  ;;  %v1244_v25 = vmax.f32 %v1194_v20, %v1219_v37  ;;  %v6336_v37 = vmax.f32 %v5098_v23, %v5100_v24  ;;  %v2959_v23 = vld [vmem:[%s6327_s0 + $0x4e8] sm:$0xff]  ;;  %v3010_v24 = vld [vmem:[%s6327_s0 + $0x5b0] sm:$0xff] }
 0x156   :  { %v788_v30 = vpop.f32.mrb[54].mxu0  ;;  %v1079_v51 = vpop.f32.mrb[54].mxu1 }
 0x157   :  { %1325 = vst.msk [vmem:[%s6329_s3] sm:$0xff] %vm1324_vm5, %v1299_v11  ;;  %v1275_v39 = vadd.f32 %v5517_v61, %v1244_v25  ;;  %v1220_v44 = vmax.f32 %v788_v30, %v1079_v51  ;;  %v3577_v58 = vpop.f32.mrb[55].mxu0  ;;  %v3672_v38 = vpop.f32.mrb[55].mxu1  ;;  %3965 = vmatmul.mubr.msk.f32.gmra.mrb[160].mxu0 %vm50_vm4, %v2957_v8  ;;  %4060 = vmatmul.mubr.msk.f32.gmra.mrb[160].mxu1 %vm50_vm4, %v3008_v9 }
 0x158   :  { %3967 = vmatprep.mubr.msk.f32.mxu0 %vm4253_vm0, %v4254_v6  ;;  %4062 = vmatprep.mubr.msk.f32.mxu1 %vm4253_vm0, %v4254_v6 }
 0x159   :  { %v1300_v20 = vmax.f32 %v1275_v39, 0.0  ;;  %v1245_v2 = vmax.f32 %v6336_v37, %v1220_v44  ;;  %v6337_v39 = vmax.f32 %v5116_v28, %v5118_v29  ;;  %v2960_v28 = vld [vmem:[%s6327_s0 + $0x4f0] sm:$0xff]  ;;  %v3011_v29 = vld [vmem:[%s6327_s0 + $0x5b8] sm:$0xff] }
 0x15a   :  { %v793_v10 = vpop.f32.mrb[56].mxu0  ;;  %v1084_v8 = vpop.f32.mrb[56].mxu1 }
 0x15b   :  { %1326 = vst.msk [vmem:[%s6329_s3 + $0x8] sm:$0xff] %vm1324_vm5, %v1300_v20  ;;  %v1276_v9 = vadd.f32 %v5517_v61, %v1245_v2  ;;  %v1221_v11 = vmax.f32 %v793_v10, %v1084_v8  ;;  %v3580_v25 = vpop.f32.mrb[57].mxu0  ;;  %v3675_v30 = vpop.f32.mrb[57].mxu1  ;;  %3968 = vmatmul.mubr.msk.f32.gmra.mrb[162].mxu0 %vm50_vm4, %v2958_v18  ;;  %4063 = vmatmul.mubr.msk.f32.gmra.mrb[162].mxu1 %vm50_vm4, %v3009_v19 }
 0x15c   :  { %3970 = vmatprep.mubr.msk.f32.mxu0 %vm4253_vm0, %v4254_v6  ;;  %4065 = vmatprep.mubr.msk.f32.mxu1 %vm4253_vm0, %v4254_v6  ;;  %v6338_v10 = vmax.f32 %v5134_v35, %v5136_v36  ;;  %v2961_v35 = vld [vmem:[%s6327_s0 + $0x4f8] sm:$0xff]  ;;  %v3012_v36 = vld [vmem:[%s6327_s0 + $0x5c0] sm:$0xff] }
 0x15d   :  { %v1301_v51 = vmax.f32 %v1276_v9, 0.0  ;;  %v1246_v44 = vmax.f32 %v6337_v39, %v1221_v11  ;;  %v6339_v39 = vmax.f32 %v5152_v42, %v5154_v43  ;;  %v2962_v42 = vld [vmem:[%s6327_s0 + $0x500] sm:$0xff]  ;;  %v3013_v43 = vld [vmem:[%s6327_s0 + $0x5c8] sm:$0xff] }
 0x15e   :  { %v798_v58 = vpop.f32.mrb[58].mxu0  ;;  %v1089_v38 = vpop.f32.mrb[58].mxu1 }
 0x15f   :  { %1327 = vst.msk [vmem:[%s6329_s3 + $0x10] sm:$0xff] %vm1324_vm5, %v1301_v51  ;;  %v1277_v18 = vadd.f32 %v5517_v61, %v1246_v44  ;;  %v1222_v19 = vmax.f32 %v798_v58, %v1089_v38  ;;  %v3583_v20 = vpop.f32.mrb[59].mxu0  ;;  %v3678_v37 = vpop.f32.mrb[59].mxu1  ;;  %3971 = vmatmul.mubr.msk.f32.gmra.mrb[164].mxu0 %vm50_vm4, %v2959_v23  ;;  %4066 = vmatmul.mubr.msk.f32.gmra.mrb[164].mxu1 %vm50_vm4, %v3010_v24 }
 0x160   :  { %3973 = vmatprep.mubr.msk.f32.mxu0 %vm4253_vm0, %v4254_v6  ;;  %4068 = vmatprep.mubr.msk.f32.mxu1 %vm4253_vm0, %v4254_v6 }
 0x161   :  { %v1302_v2 = vmax.f32 %v1277_v18, 0.0  ;;  %v1247_v8 = vmax.f32 %v6338_v10, %v1222_v19 }
 0x162   :  { %v803_v9 = vpop.f32.mrb[60].mxu0  ;;  %v1094_v11 = vpop.f32.mrb[60].mxu1 }
 0x163   :  { %1328 = vst.msk [vmem:[%s6329_s3 + $0x18] sm:$0xff] %vm1324_vm5, %v1302_v2  ;;  %v1278_v25 = vadd.f32 %v5517_v61, %v1247_v8  ;;  %v1223_v30 = vmax.f32 %v803_v9, %v1094_v11  ;;  %v3586_v23 = vpop.f32.mrb[61].mxu0  ;;  %v3681_v24 = vpop.f32.mrb[61].mxu1  ;;  %3974 = vmatmul.mubr.msk.f32.gmra.mrb[166].mxu0 %vm50_vm4, %v2960_v28  ;;  %4069 = vmatmul.mubr.msk.f32.gmra.mrb[166].mxu1 %vm50_vm4, %v3011_v29 }
 0x164   :  { %3976 = vmatprep.mubr.msk.f32.mxu0 %vm4253_vm0, %v4254_v6  ;;  %4071 = vmatprep.mubr.msk.f32.mxu1 %vm4253_vm0, %v4254_v6  ;;  %v6340_v29 = vmax.f32 %v5170_v49, %v5172_v50  ;;  %v2963_v49 = vld [vmem:[%s6327_s0 + $0x508] sm:$0xff]  ;;  %v3014_v50 = vld [vmem:[%s6327_s0 + $0x5d0] sm:$0xff]  ;;  %v6341_v24 = vmax.f32 %v5188_v56, %v5190_v57  ;;  %v3015_v57 = vld [vmem:[%s6327_s0 + $0x5d8] sm:$0xff] }
 0x165   :  { %v1303_v51 = vmax.f32 %v1278_v25, 0.0  ;;  %v1248_v44 = vmax.f32 %v6339_v39, %v1223_v30  ;;  %v2964_v56 = vld [vmem:[%s6327_s0 + $0x510] sm:$0xff] }
 0x166   :  { %v808_v58 = vpop.f32.mrb[62].mxu0  ;;  %v1099_v38 = vpop.f32.mrb[62].mxu1 }
 0x167   :  { %1329 = vst.msk [vmem:[%s6329_s3 + $0x20] sm:$0xff] %vm1324_vm5, %v1303_v51  ;;  %v1279_v18 = vadd.f32 %v5517_v61, %v1248_v44  ;;  %v1224_v19 = vmax.f32 %v808_v58, %v1099_v38  ;;  %v3589_v20 = vpop.f32.mrb[63].mxu0  ;;  %v3684_v37 = vpop.f32.mrb[63].mxu1  ;;  %3977 = vmatmul.mubr.msk.f32.gmra.mrb[168].mxu0 %vm50_vm4, %v2961_v35  ;;  %4072 = vmatmul.mubr.msk.f32.gmra.mrb[168].mxu1 %vm50_vm4, %v3012_v36 }
 0x168   :  { %3979 = vmatprep.mubr.msk.f32.mxu0 %vm4253_vm0, %v4254_v6  ;;  %4074 = vmatprep.mubr.msk.f32.mxu1 %vm4253_vm0, %v4254_v6 }
 0x169   :  { %v1304_v28 = vmax.f32 %v1279_v18, 0.0  ;;  %v1249_v2 = vmax.f32 %v6340_v29, %v1224_v19  ;;  %v6342_v19 = vmax.f32 %v5206_v63, %v5208_v1  ;;  %v2965_v63 = vld [vmem:[%s6327_s0 + $0x518] sm:$0xff]  ;;  %v3016_v1 = vld [vmem:[%s6327_s0 + $0x5e0] sm:$0xff] }
 0x16a   :  { %v813_v10 = vpop.f32.mrb[64].mxu0  ;;  %v1104_v8 = vpop.f32.mrb[64].mxu1 }
 0x16b   :  { %1330 = vst.msk [vmem:[%s6329_s3 + $0x28] sm:$0xff] %vm1324_vm5, %v1304_v28  ;;  %v1280_v9 = vadd.f32 %v5517_v61, %v1249_v2  ;;  %v1225_v11 = vmax.f32 %v813_v10, %v1104_v8  ;;  %v3592_v25 = vpop.f32.mrb[65].mxu0  ;;  %v3687_v30 = vpop.f32.mrb[65].mxu1  ;;  %3980 = vmatmul.mubr.msk.f32.gmra.mrb[170].mxu0 %vm50_vm4, %v2962_v42  ;;  %4075 = vmatmul.mubr.msk.f32.gmra.mrb[170].mxu1 %vm50_vm4, %v3013_v43 }
 0x16c   :  { %3982 = vmatprep.mubr.msk.f32.mxu0 %vm4253_vm0, %v4254_v6  ;;  %4077 = vmatprep.mubr.msk.f32.mxu1 %vm4253_vm0, %v4254_v6  ;;  %v6343_v8 = vmax.f32 %v5224_v12, %v5226_v14  ;;  %v2966_v12 = vld [vmem:[%s6327_s0 + $0x520] sm:$0xff]  ;;  %v3017_v14 = vld [vmem:[%s6327_s0 + $0x5e8] sm:$0xff] }
 0x16d   :  { %v1305_v23 = vmax.f32 %v1280_v9, 0.0  ;;  %v1250_v35 = vmax.f32 %v6341_v24, %v1225_v11 }
 0x16e   :  { %v818_v36 = vpop.f32.mrb[66].mxu0  ;;  %v1109_v51 = vpop.f32.mrb[66].mxu1 }
 0x16f   :  { %1331 = vst.msk [vmem:[%s6329_s3 + $0x30] sm:$0xff] %vm1324_vm5, %v1305_v23  ;;  %v1281_v39 = vadd.f32 %v5517_v61, %v1250_v35  ;;  %v1226_v44 = vmax.f32 %v818_v36, %v1109_v51  ;;  %v3595_v58 = vpop.f32.mrb[67].mxu0  ;;  %v3690_v38 = vpop.f32.mrb[67].mxu1  ;;  %3983 = vmatmul.mubr.msk.f32.gmra.mrb[172].mxu0 %vm50_vm4, %v2963_v49  ;;  %4078 = vmatmul.mubr.msk.f32.gmra.mrb[172].mxu1 %vm50_vm4, %v3014_v50 }
 0x170   :  { %3985 = vmatprep.mubr.msk.f32.mxu0 %vm4253_vm0, %v4254_v6  ;;  %4080 = vmatprep.mubr.msk.f32.mxu1 %vm4253_vm0, %v4254_v6  ;;  %v6344_v35 = vmax.f32 %v5242_v0, %v5244_v26  ;;  %v2967_v0 = vld [vmem:[%s6327_s0 + $0x528] sm:$0xff]  ;;  %v3018_v26 = vld [vmem:[%s6327_s0 + $0x5f0] sm:$0xff] }
 0x171   :  { %v1306_v18 = vmax.f32 %v1281_v39, 0.0  ;;  %v1251_v20 = vmax.f32 %v6342_v19, %v1226_v44 }
 0x172   :  { %v823_v37 = vpop.f32.mrb[68].mxu0  ;;  %v1114_v42 = vpop.f32.mrb[68].mxu1 }
 0x173   :  { %1332 = vst.msk [vmem:[%s6329_s3 + $0x38] sm:$0xff] %vm1324_vm5, %v1306_v18  ;;  %v1282_v43 = vadd.f32 %v5517_v61, %v1251_v20  ;;  %v1227_v28 = vmax.f32 %v823_v37, %v1114_v42  ;;  %v3598_v29 = vpop.f32.mrb[69].mxu0  ;;  %v3693_v2 = vpop.f32.mrb[69].mxu1  ;;  %3986 = vmatmul.mubr.msk.f32.gmra.mrb[174].mxu0 %vm50_vm4, %v2964_v56  ;;  %4081 = vmatmul.mubr.msk.f32.gmra.mrb[174].mxu1 %vm50_vm4, %v3015_v57 }
 0x174   :  { %3988 = vmatprep.mubr.msk.f32.mxu0 %vm4253_vm0, %v4254_v6  ;;  %4083 = vmatprep.mubr.msk.f32.mxu1 %vm4253_vm0, %v4254_v6  ;;  %v6345_v18 = vmax.f32 %v5260_v33, %v5262_v34  ;;  %v2968_v33 = vld [vmem:[%s6327_s0 + $0x530] sm:$0xff]  ;;  %v3019_v34 = vld [vmem:[%s6327_s0 + $0x5f8] sm:$0xff] }
 0x175   :  { %v1307_v10 = vmax.f32 %v1282_v43, 0.0  ;;  %v1252_v9 = vmax.f32 %v6343_v8, %v1227_v28 }
 0x176   :  { %v828_v11 = vpop.f32.mrb[70].mxu0  ;;  %v1119_v25 = vpop.f32.mrb[70].mxu1 }
 0x177   :  { %1333 = vst.msk [vmem:[%s6329_s3 + $0x40] sm:$0xff] %vm1324_vm5, %v1307_v10  ;;  %v1283_v30 = vadd.f32 %v5517_v61, %v1252_v9  ;;  %v1228_v49 = vmax.f32 %v828_v11, %v1119_v25  ;;  %v3601_v50 = vpop.f32.mrb[71].mxu0  ;;  %v3696_v23 = vpop.f32.mrb[71].mxu1  ;;  %3989 = vmatmul.mubr.msk.f32.gmra.mrb[176].mxu0 %vm50_vm4, %v2965_v63  ;;  %4084 = vmatmul.mubr.msk.f32.gmra.mrb[176].mxu1 %vm50_vm4, %v3016_v1 }
 0x178   :  { %3991 = vmatprep.mubr.msk.f32.mxu0 %vm4253_vm0, %v4254_v6  ;;  %4086 = vmatprep.mubr.msk.f32.mxu1 %vm4253_vm0, %v4254_v6  ;;  %v6346_v63 = vmax.f32 %v5278_v46, %v5280_v47  ;;  %v2969_v46 = vld [vmem:[%s6327_s0 + $0x538] sm:$0xff]  ;;  %v3020_v47 = vld [vmem:[%s6327_s0 + $0x600] sm:$0xff]  ;;  %v6347_v50 = vmax.f32 %v5296_v59, %v5298_v60  ;;  %v3021_v60 = vld [vmem:[%s6327_s0 + $0x608] sm:$0xff] }
 0x179   :  { %v1308_v24 = vmax.f32 %v1283_v30, 0.0  ;;  %v1253_v36 = vmax.f32 %v6344_v35, %v1228_v49  ;;  %v2970_v59 = vld [vmem:[%s6327_s0 + $0x540] sm:$0xff] }
 0x17a   :  { %v833_v51 = vpop.f32.mrb[72].mxu0  ;;  %v1124_v39 = vpop.f32.mrb[72].mxu1 }
 0x17b   :  { %1334 = vst.msk [vmem:[%s6329_s3 + $0x48] sm:$0xff] %vm1324_vm5, %v1308_v24  ;;  %v1284_v44 = vadd.f32 %v5517_v61, %v1253_v36  ;;  %v1229_v58 = vmax.f32 %v833_v51, %v1124_v39  ;;  %v3604_v38 = vpop.f32.mrb[73].mxu0  ;;  %v3699_v56 = vpop.f32.mrb[73].mxu1  ;;  %3992 = vmatmul.mubr.msk.f32.gmra.mrb[178].mxu0 %vm50_vm4, %v2966_v12  ;;  %4087 = vmatmul.mubr.msk.f32.gmra.mrb[178].mxu1 %vm50_vm4, %v3017_v14 }
 0x17c   :  { %3994 = vmatprep.mubr.msk.f32.mxu0 %vm4253_vm0, %v4254_v6  ;;  %4089 = vmatprep.mubr.msk.f32.mxu1 %vm4253_vm0, %v4254_v6 }
 0x17d   :  { %v1309_v57 = vmax.f32 %v1284_v44, 0.0  ;;  %v1254_v19 = vmax.f32 %v6345_v18, %v1229_v58  ;;  %v6348_v44 = vmax.f32 %v5314_v7, %v5316_v15  ;;  %v2971_v7 = vld [vmem:[%s6327_s0 + $0x548] sm:$0xff]  ;;  %v3022_v15 = vld [vmem:[%s6327_s0 + $0x610] sm:$0xff] }
 0x17e   :  { %v838_v20 = vpop.f32.mrb[74].mxu0  ;;  %v1129_v37 = vpop.f32.mrb[74].mxu1 }
 0x17f   :  { %1335 = vst.msk [vmem:[%s6329_s3 + $0x50] sm:$0xff] %vm1324_vm5, %v1309_v57  ;;  %v1285_v42 = vadd.f32 %v5517_v61, %v1254_v19  ;;  %v1230_v43 = vmax.f32 %v838_v20, %v1129_v37  ;;  %v3607_v28 = vpop.f32.mrb[75].mxu0  ;;  %v3702_v29 = vpop.f32.mrb[75].mxu1  ;;  %3995 = vmatmul.mubr.msk.f32.gmra.mrb[180].mxu0 %vm50_vm4, %v2967_v0  ;;  %4090 = vmatmul.mubr.msk.f32.gmra.mrb[180].mxu1 %vm50_vm4, %v3018_v26 }
 0x180   :  { %3997 = vmatprep.mubr.msk.f32.mxu0 %vm4253_vm0, %v4254_v6  ;;  %4092 = vmatprep.mubr.msk.f32.mxu1 %vm4253_vm0, %v4254_v6  ;;  %v6349_v20 = vmax.f32 %v5332_v31, %v5334_v32  ;;  %v2972_v31 = vld [vmem:[%s6327_s0 + $0x550] sm:$0xff]  ;;  %v3023_v32 = vld [vmem:[%s6327_s0 + $0x618] sm:$0xff] }
 0x181   :  { %v1310_v2 = vmax.f32 %v1285_v42, 0.0  ;;  %v1255_v1 = vmax.f32 %v6346_v63, %v1230_v43  ;;  %v6350_v63 = vmax.f32 %v5350_v53, %v5352_v54  ;;  %v2973_v53 = vld [vmem:[%s6327_s0 + $0x558] sm:$0xff]  ;;  %v3024_v54 = vld [vmem:[%s6327_s0 + $0x620] sm:$0xff] }
 0x182   :  { %v843_v10 = vpop.f32.mrb[76].mxu0  ;;  %v1134_v8 = vpop.f32.mrb[76].mxu1 }
 0x183   :  { %1336 = vst.msk [vmem:[%s6329_s3 + $0x58] sm:$0xff] %vm1324_vm5, %v1310_v2  ;;  %v1286_v9 = vadd.f32 %v5517_v61, %v1255_v1  ;;  %v1231_v11 = vmax.f32 %v843_v10, %v1134_v8  ;;  %v3610_v25 = vpop.f32.mrb[77].mxu0  ;;  %v3705_v30 = vpop.f32.mrb[77].mxu1  ;;  %3998 = vmatmul.mubr.msk.f32.gmra.mrb[182].mxu0 %vm50_vm4, %v2968_v33  ;;  %4093 = vmatmul.mubr.msk.f32.gmra.mrb[182].mxu1 %vm50_vm4, %v3019_v34 }
 0x184   :  { %4000 = vmatprep.mubr.msk.f32.mxu0 %vm4253_vm0, %v4254_v6  ;;  %4095 = vmatprep.mubr.msk.f32.mxu1 %vm4253_vm0, %v4254_v6 }
 0x185   :  { %v1311_v49 = vmax.f32 %v1286_v9, 0.0  ;;  %v1256_v23 = vmax.f32 %v6347_v50, %v1231_v11 }
 0x186   :  { %v848_v12 = vpop.f32.mrb[78].mxu0  ;;  %v1139_v14 = vpop.f32.mrb[78].mxu1 }
 0x187   :  { %1337 = vst.msk [vmem:[%s6329_s3 + $0x60] sm:$0xff] %vm1324_vm5, %v1311_v49  ;;  %v1287_v24 = vadd.f32 %v5517_v61, %v1256_v23  ;;  %v1232_v35 = vmax.f32 %v848_v12, %v1139_v14  ;;  %v3613_v36 = vpop.f32.mrb[79].mxu0  ;;  %v3708_v51 = vpop.f32.mrb[79].mxu1  ;;  %4001 = vmatmul.mubr.msk.f32.gmra.mrb[184].mxu0 %vm50_vm4, %v2969_v46  ;;  %4096 = vmatmul.mubr.msk.f32.gmra.mrb[184].mxu1 %vm50_vm4, %v3020_v47 }
 0x188   :  { %4003 = vmatprep.mubr.msk.f32.mxu0 %vm4253_vm0, %v4254_v6  ;;  %4098 = vmatprep.mubr.msk.f32.mxu1 %vm4253_vm0, %v4254_v6  ;;  %v6351_v47 = vmax.f32 %v5368_v22, %v5370_v13  ;;  %v2974_v22 = vld [vmem:[%s6327_s0 + $0x560] sm:$0xff]  ;;  %v3025_v13 = vld [vmem:[%s6327_s0 + $0x628] sm:$0xff]  ;;  %v6352_v51 = vmax.f32 %v5386_v52, %v5388_v62  ;;  %v3026_v62 = vld [vmem:[%s6327_s0 + $0x630] sm:$0xff] }
 0x189   :  { %v1312_v39 = vmax.f32 %v1287_v24, 0.0  ;;  %v1257_v58 = vmax.f32 %v6348_v44, %v1232_v35  ;;  %v2975_v52 = vld [vmem:[%s6327_s0 + $0x568] sm:$0xff] }
 0x18a   :  { %v853_v38 = vpop.f32.mrb[80].mxu0  ;;  %v1144_v56 = vpop.f32.mrb[80].mxu1 }
 0x18b   :  { %1338 = vst.msk [vmem:[%s6329_s3 + $0x68] sm:$0xff] %vm1324_vm5, %v1312_v39  ;;  %v1288_v0 = vadd.f32 %v5517_v61, %v1257_v58  ;;  %v1233_v26 = vmax.f32 %v853_v38, %v1144_v56  ;;  %v3616_v57 = vpop.f32.mrb[81].mxu0  ;;  %v3711_v18 = vpop.f32.mrb[81].mxu1  ;;  %4004 = vmatmul.mubr.msk.f32.gmra.mrb[186].mxu0 %vm50_vm4, %v2970_v59  ;;  %4099 = vmatmul.mubr.msk.f32.gmra.mrb[186].mxu1 %vm50_vm4, %v3021_v60 }
 0x18c   :  { %4006 = vmatprep.mubr.msk.f32.mxu0 %vm4253_vm0, %v4254_v6  ;;  %4101 = vmatprep.mubr.msk.f32.mxu1 %vm4253_vm0, %v4254_v6 }
 0x18d   :  { %v1313_v19 = vmax.f32 %v1288_v0, 0.0  ;;  %v1258_v37 = vmax.f32 %v6349_v20, %v1233_v26  ;;  %v6353_v26 = vmax.f32 %v5404_v3, %v5406_v5  ;;  %v2976_v3 = vld [vmem:[%s6327_s0 + $0x570] sm:$0xf]  ;;  %v3027_v5 = vld [vmem:[%s6327_s0 + $0x638] sm:$0xf] }
 0x18e   :  { %v858_v42 = vpop.f32.mrb[82].mxu0  ;;  %v1149_v43 = vpop.f32.mrb[82].mxu1 }
 0x18f   :  { %1339 = vst.msk [vmem:[%s6329_s3 + $0x70] sm:$0xff] %vm1324_vm5, %v1313_v19  ;;  %v1289_v28 = vadd.f32 %v5517_v61, %v1258_v37  ;;  %v1234_v29 = vmax.f32 %v858_v42, %v1149_v43  ;;  %v3619_v33 = vpop.f32.mrb[83].mxu0  ;;  %v3714_v34 = vpop.f32.mrb[83].mxu1  ;;  %4007 = vmatmul.mubr.msk.f32.gmra.mrb[188].mxu0 %vm50_vm4, %v2971_v7  ;;  %4102 = vmatmul.mubr.msk.f32.gmra.mrb[188].mxu1 %vm50_vm4, %v3022_v15 }
 0x190   :  { %4009 = vmatprep.mubr.msk.f32.mxu0 %vm4253_vm0, %v4254_v6  ;;  %4104 = vmatprep.mubr.msk.f32.mxu1 %vm4253_vm0, %v4254_v6  ;;  %v6354_v43 = vmax.f32 %v5422_v45, %v5424_v4  ;;  %v6355_v45 = vmax.f32 %v5440_v40, %v5442_v55 }
 0x191   :  { %v1314_v2 = vmax.f32 %v1289_v28, 0.0  ;;  %v1259_v1 = vmax.f32 %v6350_v63, %v1234_v29 }
 0x192   :  { %v863_v10 = vpop.f32.mrb[84].mxu0  ;;  %v1154_v8 = vpop.f32.mrb[84].mxu1 }
 0x193   :  { %1340 = vst.msk [vmem:[%s6329_s3 + $0x78] sm:$0xff] %vm1324_vm5, %v1314_v2  ;;  %v1290_v9 = vadd.f32 %v5517_v61, %v1259_v1  ;;  %v1235_v11 = vmax.f32 %v863_v10, %v1154_v8  ;;  %v3622_v25 = vpop.f32.mrb[85].mxu0  ;;  %v3717_v30 = vpop.f32.mrb[85].mxu1  ;;  %4010 = vmatmul.mubr.msk.f32.gmra.mrb[190].mxu0 %vm50_vm4, %v2972_v31  ;;  %4105 = vmatmul.mubr.msk.f32.gmra.mrb[190].mxu1 %vm50_vm4, %v3023_v32 }
 0x194   :  { %4012 = vmatprep.mubr.msk.f32.mxu0 %vm4253_vm0, %v4254_v6  ;;  %4107 = vmatprep.mubr.msk.f32.mxu1 %vm4253_vm0, %v4254_v6  ;;  %v6356_v30 = vmax.f32 %v5458_v41, %v5460_v21 }
 0x195   :  { %v1315_v46 = vmax.f32 %v1290_v9, 0.0  ;;  %v1260_v49 = vmax.f32 %v6351_v47, %v1235_v11 }
 0x196   :  { %v868_v50 = vpop.f32.mrb[86].mxu0  ;;  %v1159_v23 = vpop.f32.mrb[86].mxu1 }
 0x197   :  { %1341 = vst.msk [vmem:[%s6329_s3 + $0x80] sm:$0xff] %vm1324_vm5, %v1315_v46  ;;  %v1291_v12 = vadd.f32 %v5517_v61, %v1260_v49  ;;  %v1236_v14 = vmax.f32 %v868_v50, %v1159_v23  ;;  %v3625_v24 = vpop.f32.mrb[87].mxu0  ;;  %v3720_v35 = vpop.f32.mrb[87].mxu1  ;;  %4013 = vmatmul.mubr.msk.f32.gmra.mrb[192].mxu0 %vm50_vm4, %v2973_v53  ;;  %4108 = vmatmul.mubr.msk.f32.gmra.mrb[192].mxu1 %vm50_vm4, %v3024_v54 }
 0x198   :  { %4015 = vmatprep.mubr.msk.f32.mxu0 %vm4253_vm0, %v4254_v6  ;;  %4110 = vmatprep.mubr.msk.f32.mxu1 %vm4253_vm0, %v4254_v6  ;;  %v6357_v23 = vmax.f32 %v5476_v17, %v5478_v48 }
 0x199   :  { %v1316_v36 = vmax.f32 %v1291_v12, 0.0  ;;  %v1261_v59 = vmax.f32 %v6352_v51, %v1236_v14 }
 0x19a   :  { %v873_v60 = vpop.f32.mrb[88].mxu0  ;;  %v1164_v39 = vpop.f32.mrb[88].mxu1 }
 0x19b   :  { %1342 = vst.msk [vmem:[%s6329_s3 + $0x88] sm:$0xff] %vm1324_vm5, %v1316_v36  ;;  %v1292_v44 = vadd.f32 %v5517_v61, %v1261_v59  ;;  %v1237_v58 = vmax.f32 %v873_v60, %v1164_v39  ;;  %v3628_v38 = vpop.f32.mrb[89].mxu0  ;;  %v3723_v56 = vpop.f32.mrb[89].mxu1  ;;  %4016 = vmatmul.mubr.msk.f32.gmra.mrb[194].mxu0 %vm50_vm4, %v2974_v22  ;;  %4111 = vmatmul.mubr.msk.f32.gmra.mrb[194].mxu1 %vm50_vm4, %v3025_v13 }
 0x19c   :  { %4018 = vmatprep.mubr.msk.f32.mxu0 %vm4253_vm0, %v4254_v6  ;;  %4113 = vmatprep.mubr.msk.f32.mxu1 %vm4253_vm0, %v4254_v6  ;;  %v6358_v36 = vmax.f32 %v5494_v16, %v5496_v27 }
 0x19d   :  { %v1317_v0 = vmax.f32 %v1292_v44, 0.0  ;;  %v1262_v57 = vmax.f32 %v6353_v26, %v1237_v58 }
 0x19e   :  { %v878_v18 = vpop.f32.mrb[90].mxu0  ;;  %v1169_v7 = vpop.f32.mrb[90].mxu1 }
 0x19f   :  { %1343 = vst.msk [vmem:[%s6329_s3 + $0x90] sm:$0xff] %vm1324_vm5, %v1317_v0  ;;  %v1293_v15 = vadd.f32 %v5517_v61, %v1262_v57  ;;  %v1238_v19 = vmax.f32 %v878_v18, %v1169_v7  ;;  %v3631_v20 = vpop.f32.mrb[91].mxu0  ;;  %v3726_v37 = vpop.f32.mrb[91].mxu1  ;;  %4019 = vmatmul.mubr.msk.f32.gmra.mrb[196].mxu0 %vm50_vm4, %v2975_v52  ;;  %4114 = vmatmul.mubr.msk.f32.gmra.mrb[196].mxu1 %vm50_vm4, %v3026_v62 }
 0x1a0   :  { %4021 = vmatprep.mubr.msk.f32.mxu0 %vm4253_vm0, %v4254_v6  ;;  %4116 = vmatprep.mubr.msk.f32.mxu1 %vm4253_vm0, %v4254_v6 }
 0x1a1   :  { %v1318_v42 = vmax.f32 %v1293_v15, 0.0  ;;  %v1263_v28 = vmax.f32 %v6354_v43, %v1238_v19 }
 0x1a2   :  { %v883_v29 = vpop.f32.mrb[92].mxu0  ;;  %v1174_v33 = vpop.f32.mrb[92].mxu1 }
 0x1a3   :  { %1344 = vst.msk [vmem:[%s6329_s3 + $0x98] sm:$0xff] %vm1324_vm5, %v1318_v42  ;;  %v1294_v6 = vadd.f32 %v5517_v61, %v1263_v28  ;;  %v1239_v34 = vmax.f32 %v883_v29, %v1174_v33  ;;  %v3634_v31 = vpop.f32.mrb[93].mxu0  ;;  %v3729_v32 = vpop.f32.mrb[93].mxu1  ;;  %4022 = vmatmul.mubr.msk.f32.gmra.mrb[198].mxu0 %vm50_vm4, %v2976_v3  ;;  %4117 = vmatmul.mubr.msk.f32.gmra.mrb[198].mxu1 %vm50_vm4, %v3027_v5 }
 0x1a5   :  { %v1319_v2 = vmax.f32 %v1294_v6, 0.0  ;;  %v1264_v4 = vmax.f32 %v6355_v45, %v1239_v34 }
 0x1a6   :  { %v888_v63 = vpop.f32.mrb[94].mxu0  ;;  %v1179_v1 = vpop.f32.mrb[94].mxu1 }
 0x1a7   :  { %1345 = vst.msk [vmem:[%s6329_s3 + $0xa0] sm:$0xff] %vm1324_vm5, %v1319_v2  ;;  %v1295_v10 = vadd.f32 %v5517_v61, %v1264_v4  ;;  %v1240_v8 = vmax.f32 %v888_v63, %v1179_v1  ;;  %v3637_v9 = vpop.f32.mrb[95].mxu0  ;;  %v3732_v11 = vpop.f32.mrb[95].mxu1 }
 0x1a9   :  { %v1320_v25 = vmax.f32 %v1295_v10, 0.0  ;;  %v1265_v53 = vmax.f32 %v6356_v30, %v1240_v8 }
 0x1aa   :  { %v893_v54 = vpop.f32.mrb[96].mxu0  ;;  %v1184_v40 = vpop.f32.mrb[96].mxu1 }
 0x1ab   :  { %1346 = vst.msk [vmem:[%s6329_s3 + $0xa8] sm:$0xff] %vm1324_vm5, %v1320_v25  ;;  %v1296_v55 = vadd.f32 %v5517_v61, %v1265_v53  ;;  %v1241_v46 = vmax.f32 %v893_v54, %v1184_v40  ;;  %v3640_v47 = vpop.f32.mrb[97].mxu0  ;;  %v3735_v49 = vpop.f32.mrb[97].mxu1 }
 0x1ad   :  { %v1321_v50 = vmax.f32 %v1296_v55, 0.0  ;;  %v1266_v12 = vmax.f32 %v6357_v23, %v1241_v46 }
 0x1ae   :  { %v898_v14 = vpop.f32.mrb[98].mxu0  ;;  %v1189_v41 = vpop.f32.mrb[98].mxu1 }
 0x1af   :  { %1347 = vst.msk [vmem:[%s6329_s3 + $0xb0] sm:$0xff] %vm1324_vm5, %v1321_v50  ;;  %v1297_v21 = vadd.f32 %v5517_v61, %v1266_v12  ;;  %v1242_v24 = vmax.f32 %v898_v14, %v1189_v41  ;;  %v3643_v35 = vpop.f32.mrb[99].mxu0  ;;  %v3738_v22 = vpop.f32.mrb[99].mxu1 }
 0x1b1   :  { %v1322_v13 = vmax.f32 %v1297_v21, 0.0  ;;  %v1267_v51 = vmax.f32 %v6358_v36, %v1242_v24 }
 0x1b2   :  { %v5962_v59 = vpop.f32.mrb[100].mxu0  ;;  %v5964_v17 = vpop.f32.mrb[100].mxu1 }
 0x1b3   :  { %1348 = vst.msk [vmem:[%s6329_s3 + $0xb8] sm:$0xff] %vm1324_vm5, %v1322_v13  ;;  %v1298_v48 = vadd.f32 %v5517_v61, %v1267_v51  ;;  %v2515_v60 = vmax.f32 %v5962_v59, %v5964_v17  ;;  %v3761_v39 = vpop.f32.mrb[101].mxu0  ;;  %v3856_v44 = vpop.f32.mrb[101].mxu1 }
 0x1b5   :  { %v1323_v58 = vmax.f32 %v1298_v48, 0.0 }
 0x1b6   :  { %v5973_v16 = vpop.f32.mrb[102].mxu0  ;;  %v5975_v27 = vpop.f32.mrb[102].mxu1 }
 0x1b7   :  { %1350 = vst.msk [vmem:[%s6329_s3 + $0xc0] sm:$0xf] %vm1349_vm6, %v1323_v58  ;;  %v3764_v56 = vpop.f32.mrb[103].mxu0  ;;  %v3859_v52 = vpop.f32.mrb[103].mxu1 }
 0x1ba   :  { %v5983_v62 = vpop.f32.mrb[104].mxu0  ;;  %v5985_v0 = vpop.f32.mrb[104].mxu1 }
 0x1bb   :  { %v3767_v57 = vpop.f32.mrb[105].mxu0  ;;  %v3862_v18 = vpop.f32.mrb[105].mxu1 }
 0x1be   :  { %v5989_v7 = vpop.f32.mrb[106].mxu0  ;;  %v5991_v15 = vpop.f32.mrb[106].mxu1 }
 0x1bf   :  { %v3770_v20 = vpop.f32.mrb[107].mxu0  ;;  %v3865_v37 = vpop.f32.mrb[107].mxu1 }
 0x1c2   :  { %v5995_v3 = vpop.f32.mrb[108].mxu0  ;;  %v5997_v5 = vpop.f32.mrb[108].mxu1 }
 0x1c3   :  { %v3773_v43 = vpop.f32.mrb[109].mxu0  ;;  %v3868_v28 = vpop.f32.mrb[109].mxu1 }
 0x1c6   :  { %v6001_v29 = vpop.f32.mrb[110].mxu0  ;;  %v6003_v33 = vpop.f32.mrb[110].mxu1 }
 0x1c7   :  { %v3776_v34 = vpop.f32.mrb[111].mxu0  ;;  %v3871_v31 = vpop.f32.mrb[111].mxu1 }
 0x1ca   :  { %v6007_v32 = vpop.f32.mrb[112].mxu0  ;;  %v6009_v2 = vpop.f32.mrb[112].mxu1 }
 0x1cb   :  { %v3779_v4 = vpop.f32.mrb[113].mxu0  ;;  %v3874_v63 = vpop.f32.mrb[113].mxu1 }
 0x1ce   :  { %v6013_v1 = vpop.f32.mrb[114].mxu0  ;;  %v6015_v10 = vpop.f32.mrb[114].mxu1 }
 0x1cf   :  { %v3782_v9 = vpop.f32.mrb[115].mxu0  ;;  %v3877_v11 = vpop.f32.mrb[115].mxu1 }
 0x1d2   :  { %v6019_v25 = vpop.f32.mrb[116].mxu0  ;;  %v6021_v30 = vpop.f32.mrb[116].mxu1 }
 0x1d3   :  { %v3785_v54 = vpop.f32.mrb[117].mxu0  ;;  %v3880_v40 = vpop.f32.mrb[117].mxu1 }
 0x1d6   :  { %v6025_v55 = vpop.f32.mrb[118].mxu0  ;;  %v6027_v46 = vpop.f32.mrb[118].mxu1 }
 0x1d7   :  { %v3788_v49 = vpop.f32.mrb[119].mxu0  ;;  %v3883_v50 = vpop.f32.mrb[119].mxu1 }
 0x1da   :  { %v6031_v23 = vpop.f32.mrb[120].mxu0  ;;  %v6033_v12 = vpop.f32.mrb[120].mxu1 }
 0x1db   :  { %v3791_v41 = vpop.f32.mrb[121].mxu0  ;;  %v3886_v21 = vpop.f32.mrb[121].mxu1 }
 0x1de   :  { %v6037_v24 = vpop.f32.mrb[122].mxu0  ;;  %v6039_v35 = vpop.f32.mrb[122].mxu1 }
 0x1df   :  { %v3794_v13 = vpop.f32.mrb[123].mxu0  ;;  %v3889_v36 = vpop.f32.mrb[123].mxu1 }
 0x1e2   :  { %v6043_v51 = vpop.f32.mrb[124].mxu0  ;;  %v6045_v48 = vpop.f32.mrb[124].mxu1 }
 0x1e3   :  { %v3797_v44 = vpop.f32.mrb[125].mxu0  ;;  %v3892_v58 = vpop.f32.mrb[125].mxu1 }
 0x1e6   :  { %v6049_v56 = vpop.f32.mrb[126].mxu0  ;;  %v6051_v52 = vpop.f32.mrb[126].mxu1 }
 0x1e7   :  { %v3800_v18 = vpop.f32.mrb[127].mxu0  ;;  %v3895_v20 = vpop.f32.mrb[127].mxu1 }
 0x1ea   :  { %v6055_v37 = vpop.f32.mrb[128].mxu0  ;;  %v6057_v43 = vpop.f32.mrb[128].mxu1 }
 0x1eb   :  { %v3803_v34 = vpop.f32.mrb[129].mxu0  ;;  %v3898_v31 = vpop.f32.mrb[129].mxu1 }
 0x1ee   :  { %v6061_v4 = vpop.f32.mrb[130].mxu0  ;;  %v6063_v63 = vpop.f32.mrb[130].mxu1 }
 0x1ef   :  { %v3806_v11 = vpop.f32.mrb[131].mxu0  ;;  %v3901_v54 = vpop.f32.mrb[131].mxu1 }
 0x1f2   :  { %v6067_v40 = vpop.f32.mrb[132].mxu0  ;;  %v6069_v49 = vpop.f32.mrb[132].mxu1 }
 0x1f3   :  { %v3809_v41 = vpop.f32.mrb[133].mxu0  ;;  %v3904_v21 = vpop.f32.mrb[133].mxu1 }
 0x1f6   :  { %v6073_v13 = vpop.f32.mrb[134].mxu0  ;;  %v6075_v36 = vpop.f32.mrb[134].mxu1 }
 0x1f7   :  { %v3812_v58 = vpop.f32.mrb[135].mxu0  ;;  %v3907_v18 = vpop.f32.mrb[135].mxu1 }
 0x1fa   :  { %v6079_v20 = vpop.f32.mrb[136].mxu0  ;;  %v6081_v34 = vpop.f32.mrb[136].mxu1 }
 0x1fb   :  { %v3815_v11 = vpop.f32.mrb[137].mxu0  ;;  %v3910_v54 = vpop.f32.mrb[137].mxu1 }
 0x1fe   :  { %v6085_v41 = vpop.f32.mrb[138].mxu0  ;;  %v6087_v21 = vpop.f32.mrb[138].mxu1 }
 0x1ff   :  { %v3818_v9 = vpop.f32.mrb[139].mxu0  ;;  %v3913_v44 = vpop.f32.mrb[139].mxu1 }
 0x202   :  { %v6091_v58 = vpop.f32.mrb[140].mxu0  ;;  %v6093_v18 = vpop.f32.mrb[140].mxu1 }
 0x203   :  { %v3821_v57 = vpop.f32.mrb[141].mxu0  ;;  %v3916_v31 = vpop.f32.mrb[141].mxu1 }
 0x206   :  { %v6097_v11 = vpop.f32.mrb[142].mxu0  ;;  %v6099_v54 = vpop.f32.mrb[142].mxu1 }
 0x207   :  { %v3824_v22 = vpop.f32.mrb[143].mxu0  ;;  %v3919_v50 = vpop.f32.mrb[143].mxu1 }
 0x20a   :  { %v6103_v9 = vpop.f32.mrb[144].mxu0  ;;  %v6105_v44 = vpop.f32.mrb[144].mxu1 }
 0x20b   :  { %6359 = vst [vmem:[#allocation2_spill] sm:$0xff] %v6103_v9  ;;  %6360 = vst [vmem:[#allocation3_spill] sm:$0xff] %v6105_v44  ;;  %v3827_v47 = vpop.f32.mrb[145].mxu0  ;;  %v3922_v28 = vpop.f32.mrb[145].mxu1 }
 0x20e   :  { %v6109_v57 = vpop.f32.mrb[146].mxu0  ;;  %v6111_v31 = vpop.f32.mrb[146].mxu1 }
 0x20f   :  { %6361 = vst [vmem:[#allocation4_spill] sm:$0xff] %v6109_v57  ;;  %6362 = vst [vmem:[#allocation5_spill] sm:$0xff] %v6111_v31  ;;  %v3830_v8 = vpop.f32.mrb[147].mxu0  ;;  %v3925_v39 = vpop.f32.mrb[147].mxu1 }
 0x212   :  { %v6115_v22 = vpop.f32.mrb[148].mxu0  ;;  %v6117_v50 = vpop.f32.mrb[148].mxu1 }
 0x213   :  { %v3833_v6 = vpop.f32.mrb[149].mxu0  ;;  %v3928_v14 = vpop.f32.mrb[149].mxu1 }
 0x214   :  { %v6363_v6 = vmax.f32 %v5973_v16, %v5975_v27 }
 0x216   :  { %v2100_v47 = vpop.f32.mrb[150].mxu0  ;;  %v2391_v28 = vpop.f32.mrb[150].mxu1 }
 0x217   :  { %v2540_v42 = vmax.f32 %v2100_v47, %v2391_v28  ;;  %v3951_v19 = vpop.f32.mrb[151].mxu0  ;;  %v4046_v26 = vpop.f32.mrb[151].mxu1 }
 0x219   :  { %v2565_v53 = vmax.f32 %v2515_v60, %v2540_v42 }
 0x21a   :  { %v2105_v8 = vpop.f32.mrb[152].mxu0  ;;  %v2396_v39 = vpop.f32.mrb[152].mxu1 }
 0x21b   :  { %v2590_v38 = vadd.f32 %v5517_v61, %v2565_v53  ;;  %v2541_v31 = vmax.f32 %v2105_v8, %v2396_v39  ;;  %v3954_v57 = vpop.f32.mrb[153].mxu0  ;;  %v4049_v44 = vpop.f32.mrb[153].mxu1 }
 0x21d   :  { %v2615_v9 = vmax.f32 %v2590_v38, 0.0  ;;  %v2566_v14 = vmax.f32 %v6363_v6, %v2541_v31  ;;  %v6364_v38 = vmax.f32 %v5983_v62, %v5985_v0  ;;  %v6365_v31 = vmax.f32 %v5989_v7, %v5991_v15  ;;  %v6159_v15 = vld [vmem:[%s6328_s2] ss:$0 sm:$0xff] }
 0x21e   :  { %v2110_v45 = vpop.f32.mrb[154].mxu0  ;;  %v2401_v47 = vpop.f32.mrb[154].mxu1 }
 0x21f   :  { %3054 = vst.msk [vmem:[%s6329_s3 + $0xc8] sm:$0xff] %vm1324_vm5, %v2615_v9  ;;  %v2591_v59 = vadd.f32 %v5517_v61, %v2566_v14  ;;  %v2542_v17 = vmax.f32 %v2110_v45, %v2401_v47  ;;  %v3957_v60 = vpop.f32.mrb[155].mxu0  ;;  %v4052_v26 = vpop.f32.mrb[155].mxu1 }
 0x221   :  { %v2616_v19 = vmax.f32 %v2591_v59, 0.0  ;;  %v2567_v42 = vmax.f32 %v6364_v38, %v2542_v17  ;;  %v6366_v59 = vmax.f32 %v5995_v3, %v5997_v5  ;;  %v6367_v3 = vmax.f32 %v6001_v29, %v6003_v33 }
 0x222   :  { %v2115_v53 = vpop.f32.mrb[156].mxu0  ;;  %v2406_v16 = vpop.f32.mrb[156].mxu1 }
 0x223   :  { %3055 = vst.msk [vmem:[%s6329_s3 + $0xd0] sm:$0xff] %vm1324_vm5, %v2616_v19  ;;  %v2592_v27 = vadd.f32 %v5517_v61, %v2567_v42  ;;  %v2543_v9 = vmax.f32 %v2115_v53, %v2406_v16  ;;  %v3960_v44 = vpop.f32.mrb[157].mxu0  ;;  %v4055_v57 = vpop.f32.mrb[157].mxu1 }
 0x225   :  { %v2617_v45 = vmax.f32 %v2592_v27, 0.0  ;;  %v2568_v28 = vmax.f32 %v6365_v31, %v2543_v9  ;;  %v6368_v31 = vmax.f32 %v6007_v32, %v6009_v2 }
 0x226   :  { %v2120_v8 = vpop.f32.mrb[158].mxu0  ;;  %v2411_v62 = vpop.f32.mrb[158].mxu1 }
 0x227   :  { %3056 = vst.msk [vmem:[%s6329_s3 + $0xd8] sm:$0xff] %vm1324_vm5, %v2617_v45  ;;  %v2593_v0 = vadd.f32 %v5517_v61, %v2568_v28  ;;  %v2544_v39 = vmax.f32 %v2120_v8, %v2411_v62  ;;  %v3963_v6 = vpop.f32.mrb[159].mxu0  ;;  %v4058_v14 = vpop.f32.mrb[159].mxu1 }
 0x228   :  { %v6369_v14 = vmax.f32 %v6013_v1, %v6015_v10 }
 0x229   :  { %v2618_v47 = vmax.f32 %v2593_v0, 0.0  ;;  %v2569_v17 = vmax.f32 %v6366_v59, %v2544_v39 }
 0x22a   :  { %v2125_v60 = vpop.f32.mrb[160].mxu0  ;;  %v2416_v7 = vpop.f32.mrb[160].mxu1 }
 0x22b   :  { %3057 = vst.msk [vmem:[%s6329_s3 + $0xe0] sm:$0xff] %vm1324_vm5, %v2618_v47  ;;  %v2594_v61 = vadd.f32 %v6159_v15, %v2569_v17  ;;  %v2545_v26 = vmax.f32 %v2125_v60, %v2416_v7  ;;  %v3966_v19 = vpop.f32.mrb[161].mxu0  ;;  %v4061_v38 = vpop.f32.mrb[161].mxu1 }
 0x22d   :  { %v2619_v42 = vmax.f32 %v2594_v61, 0.0  ;;  %v2570_v5 = vmax.f32 %v6367_v3, %v2545_v26  ;;  %v6370_v26 = vmax.f32 %v6019_v25, %v6021_v30 }
 0x22e   :  { %v2130_v53 = vpop.f32.mrb[162].mxu0  ;;  %v2421_v16 = vpop.f32.mrb[162].mxu1 }
 0x22f   :  { %3058 = vst.msk [vmem:[%s6329_s3 + $0xe8] sm:$0xff] %vm1324_vm5, %v2619_v42  ;;  %v2595_v27 = vadd.f32 %v6159_v15, %v2570_v5  ;;  %v2546_v9 = vmax.f32 %v2130_v53, %v2421_v16  ;;  %v3969_v44 = vpop.f32.mrb[163].mxu0  ;;  %v4064_v57 = vpop.f32.mrb[163].mxu1  ;;  %v6371_v16 = vmax.f32 %v6025_v55, %v6027_v46 }
 0x231   :  { %v2620_v45 = vmax.f32 %v2595_v27, 0.0  ;;  %v2571_v28 = vmax.f32 %v6368_v31, %v2546_v9 }
 0x232   :  { %v2135_v8 = vpop.f32.mrb[164].mxu0  ;;  %v2426_v29 = vpop.f32.mrb[164].mxu1 }
 0x233   :  { %3059 = vst.msk [vmem:[%s6329_s3 + $0xf0] sm:$0xff] %vm1324_vm5, %v2620_v45  ;;  %v2596_v33 = vadd.f32 %v6159_v15, %v2571_v28  ;;  %v2547_v62 = vmax.f32 %v2135_v8, %v2426_v29  ;;  %v3972_v0 = vpop.f32.mrb[165].mxu0  ;;  %v4067_v39 = vpop.f32.mrb[165].mxu1  ;;  %v6372_v28 = vmax.f32 %v6031_v23, %v6033_v12 }
 0x235   :  { %v2621_v6 = vmax.f32 %v2596_v33, 0.0  ;;  %v2572_v47 = vmax.f32 %v6369_v14, %v2547_v62 }
 0x236   :  { %v2140_v59 = vpop.f32.mrb[166].mxu0  ;;  %v2431_v32 = vpop.f32.mrb[166].mxu1 }
 0x237   :  { %3060 = vst.msk [vmem:[%s6329_s3 + $0xf8] sm:$0xff] %vm1324_vm5, %v2621_v6  ;;  %v2597_v2 = vadd.f32 %v6159_v15, %v2572_v47  ;;  %v2548_v17 = vmax.f32 %v2140_v59, %v2431_v32  ;;  %v3975_v60 = vpop.f32.mrb[167].mxu0  ;;  %v4070_v7 = vpop.f32.mrb[167].mxu1  ;;  %v6373_v6 = vmax.f32 %v6037_v24, %v6039_v35 }
 0x238   :  { %v6374_v60 = vmax.f32 %v6043_v51, %v6045_v48 }
 0x239   :  { %v2622_v61 = vmax.f32 %v2597_v2, 0.0  ;;  %v2573_v19 = vmax.f32 %v6370_v26, %v2548_v17 }
 0x23a   :  { %v2145_v38 = vpop.f32.mrb[168].mxu0  ;;  %v2436_v1 = vpop.f32.mrb[168].mxu1 }
 0x23b   :  { %3061 = vst.msk [vmem:[%s6329_s3 + $0x100] sm:$0xff] %vm1324_vm5, %v2622_v61  ;;  %v2598_v10 = vadd.f32 %v6159_v15, %v2573_v19  ;;  %v2549_v42 = vmax.f32 %v2145_v38, %v2436_v1  ;;  %v3978_v3 = vpop.f32.mrb[169].mxu0  ;;  %v4073_v5 = vpop.f32.mrb[169].mxu1 }
 0x23d   :  { %v2623_v53 = vmax.f32 %v2598_v10, 0.0  ;;  %v2574_v27 = vmax.f32 %v6371_v16, %v2549_v42  ;;  %v6375_v10 = vmax.f32 %v6049_v56, %v6051_v52 }
 0x23e   :  { %v2150_v9 = vpop.f32.mrb[170].mxu0  ;;  %v2441_v25 = vpop.f32.mrb[170].mxu1 }
 0x23f   :  { %3062 = vst.msk [vmem:[%s6329_s3 + $0x108] sm:$0xff] %vm1324_vm5, %v2623_v53  ;;  %v2599_v30 = vadd.f32 %v6159_v15, %v2574_v27  ;;  %v2550_v44 = vmax.f32 %v2150_v9, %v2441_v25  ;;  %v3981_v57 = vpop.f32.mrb[171].mxu0  ;;  %v4076_v45 = vpop.f32.mrb[171].mxu1  ;;  %v6376_v9 = vmax.f32 %v6055_v37, %v6057_v43 }
 0x241   :  { %v2624_v31 = vmax.f32 %v2599_v30, 0.0  ;;  %v2575_v8 = vmax.f32 %v6372_v28, %v2550_v44  ;;  %v6377_v28 = vmax.f32 %v6061_v4, %v6063_v63 }
 0x242   :  { %v2155_v29 = vpop.f32.mrb[172].mxu0  ;;  %v2446_v55 = vpop.f32.mrb[172].mxu1 }
 0x243   :  { %3063 = vst.msk [vmem:[%s6329_s3 + $0x110] sm:$0xff] %vm1324_vm5, %v2624_v31  ;;  %v2600_v46 = vadd.f32 %v6159_v15, %v2575_v8  ;;  %v2551_v33 = vmax.f32 %v2155_v29, %v2446_v55  ;;  %v3984_v62 = vpop.f32.mrb[173].mxu0  ;;  %v4079_v0 = vpop.f32.mrb[173].mxu1 }
 0x244   :  { %v6378_v0 = vmax.f32 %v6067_v40, %v6069_v49 }
 0x245   :  { %v2625_v39 = vmax.f32 %v2600_v46, 0.0  ;;  %v2576_v14 = vmax.f32 %v6373_v6, %v2551_v33 }
 0x246   :  { %v2160_v47 = vpop.f32.mrb[174].mxu0  ;;  %v2451_v23 = vpop.f32.mrb[174].mxu1 }
 0x247   :  { %3064 = vst.msk [vmem:[%s6329_s3 + $0x118] sm:$0xff] %vm1324_vm5, %v2625_v39  ;;  %v2601_v12 = vadd.f32 %v6159_v15, %v2576_v14  ;;  %v2552_v59 = vmax.f32 %v2160_v47, %v2451_v23  ;;  %v3987_v32 = vpop.f32.mrb[175].mxu0  ;;  %v4082_v2 = vpop.f32.mrb[175].mxu1 }
 0x249   :  { %v2626_v17 = vmax.f32 %v2601_v12, 0.0  ;;  %v2577_v7 = vmax.f32 %v6374_v60, %v2552_v59  ;;  %v6379_v59 = vmax.f32 %v6073_v13, %v6075_v36 }
 0x24a   :  { %v2165_v61 = vpop.f32.mrb[176].mxu0  ;;  %v2456_v24 = vpop.f32.mrb[176].mxu1 }
 0x24b   :  { %3065 = vst.msk [vmem:[%s6329_s3 + $0x120] sm:$0xff] %vm1324_vm5, %v2626_v17  ;;  %v2602_v35 = vadd.f32 %v6159_v15, %v2577_v7  ;;  %v2553_v26 = vmax.f32 %v2165_v61, %v2456_v24  ;;  %v3990_v19 = vpop.f32.mrb[177].mxu0  ;;  %v4085_v38 = vpop.f32.mrb[177].mxu1  ;;  %v6380_v24 = vmax.f32 %v6079_v20, %v6081_v34 }
 0x24d   :  { %v2627_v1 = vmax.f32 %v2602_v35, 0.0  ;;  %v2578_v42 = vmax.f32 %v6375_v10, %v2553_v26 }
 0x24e   :  { %v2170_v3 = vpop.f32.mrb[178].mxu0  ;;  %v2461_v51 = vpop.f32.mrb[178].mxu1 }
 0x24f   :  { %3066 = vst.msk [vmem:[%s6329_s3 + $0x128] sm:$0xff] %vm1324_vm5, %v2627_v1  ;;  %v2603_v48 = vadd.f32 %v6159_v15, %v2578_v42  ;;  %v2554_v5 = vmax.f32 %v2170_v3, %v2461_v51  ;;  %v3993_v53 = vpop.f32.mrb[179].mxu0  ;;  %v4088_v16 = vpop.f32.mrb[179].mxu1  ;;  %v6381_v42 = vmax.f32 %v6085_v41, %v6087_v21 }
 0x251   :  { %v2628_v27 = vmax.f32 %v2603_v48, 0.0  ;;  %v2579_v25 = vmax.f32 %v6376_v9, %v2554_v5 }
 0x252   :  { %v2175_v30 = vpop.f32.mrb[180].mxu0  ;;  %v2466_v56 = vpop.f32.mrb[180].mxu1 }
 0x253   :  { %3067 = vst.msk [vmem:[%s6329_s3 + $0x130] sm:$0xff] %vm1324_vm5, %v2628_v27  ;;  %v2604_v52 = vadd.f32 %v6159_v15, %v2579_v25  ;;  %v2555_v44 = vmax.f32 %v2175_v30, %v2466_v56  ;;  %v3996_v57 = vpop.f32.mrb[181].mxu0  ;;  %v4091_v45 = vpop.f32.mrb[181].mxu1  ;;  %v6382_v27 = vmax.f32 %v6091_v58, %v6093_v18 }
 0x254   :  { %v6383_v57 = vmax.f32 %v6097_v11, %v6099_v54 }
 0x255   :  { %v2629_v31 = vmax.f32 %v2604_v52, 0.0  ;;  %v2580_v8 = vmax.f32 %v6377_v28, %v2555_v44 }
 0x256   :  { %v2180_v29 = vpop.f32.mrb[182].mxu0  ;;  %v2471_v37 = vpop.f32.mrb[182].mxu1 }
 0x257   :  { %3068 = vst.msk [vmem:[%s6329_s3 + $0x138] sm:$0xff] %vm1324_vm5, %v2629_v31  ;;  %v2605_v43 = vadd.f32 %v6159_v15, %v2580_v8  ;;  %v2556_v55 = vmax.f32 %v2180_v29, %v2471_v37  ;;  %v3999_v46 = vpop.f32.mrb[183].mxu0  ;;  %v4094_v33 = vpop.f32.mrb[183].mxu1 }
 0x259   :  { %v2630_v62 = vmax.f32 %v2605_v43, 0.0  ;;  %v2581_v39 = vmax.f32 %v6378_v0, %v2556_v55  ;;  %v6384_v43 = vld [vmem:[#allocation2_spill] sm:$0xff]  ;;  %v6385_v55 = vld [vmem:[#allocation3_spill] sm:$0xff] }
 0x25a   :  { %v2185_v6 = vpop.f32.mrb[184].mxu0  ;;  %v2476_v4 = vpop.f32.mrb[184].mxu1  ;;  %v6386_v46 = vmax.f32 %v6384_v43, %v6385_v55 }
 0x25b   :  { %3069 = vst.msk [vmem:[%s6329_s3 + $0x140] sm:$0xff] %vm1324_vm5, %v2630_v62  ;;  %v2606_v63 = vadd.f32 %v6159_v15, %v2581_v39  ;;  %v2557_v14 = vmax.f32 %v2185_v6, %v2476_v4  ;;  %v4002_v47 = vpop.f32.mrb[185].mxu0  ;;  %v4097_v23 = vpop.f32.mrb[185].mxu1 }
 0x25d   :  { %v2631_v12 = vmax.f32 %v2606_v63, 0.0  ;;  %v2582_v32 = vmax.f32 %v6379_v59, %v2557_v14  ;;  %v6387_v63 = vld [vmem:[#allocation4_spill] sm:$0xff]  ;;  %v6388_v14 = vld [vmem:[#allocation5_spill] sm:$0xff] }
 0x25e   :  { %v2190_v2 = vpop.f32.mrb[186].mxu0  ;;  %v2481_v40 = vpop.f32.mrb[186].mxu1  ;;  %v6389_v47 = vmax.f32 %v6387_v63, %v6388_v14 }
 0x25f   :  { %3070 = vst.msk [vmem:[%s6329_s3 + $0x148] sm:$0xff] %vm1324_vm5, %v2631_v12  ;;  %v2607_v49 = vadd.f32 %v6159_v15, %v2582_v32  ;;  %v2558_v17 = vmax.f32 %v2190_v2, %v2481_v40  ;;  %v4005_v60 = vpop.f32.mrb[187].mxu0  ;;  %v4100_v7 = vpop.f32.mrb[187].mxu1 }
 0x260   :  { %v6390_v60 = vmax.f32 %v6115_v22, %v6117_v50 }
 0x261   :  { %v2632_v61 = vmax.f32 %v2607_v49, 0.0  ;;  %v2583_v35 = vmax.f32 %v6380_v24, %v2558_v17 }
 0x262   :  { %v2195_v26 = vpop.f32.mrb[188].mxu0  ;;  %v2486_v13 = vpop.f32.mrb[188].mxu1 }
 0x263   :  { %3071 = vst.msk [vmem:[%s6329_s3 + $0x150] sm:$0xff] %vm1324_vm5, %v2632_v61  ;;  %v2608_v36 = vadd.f32 %v6159_v15, %v2583_v35  ;;  %v2559_v19 = vmax.f32 %v2195_v26, %v2486_v13  ;;  %v4008_v38 = vpop.f32.mrb[189].mxu0  ;;  %v4103_v1 = vpop.f32.mrb[189].mxu1 }
 0x265   :  { %v2633_v10 = vmax.f32 %v2608_v36, 0.0  ;;  %v2584_v3 = vmax.f32 %v6381_v42, %v2559_v19 }
 0x266   :  { %v2200_v51 = vpop.f32.mrb[190].mxu0  ;;  %v2491_v20 = vpop.f32.mrb[190].mxu1 }
 0x267   :  { %3072 = vst.msk [vmem:[%s6329_s3 + $0x158] sm:$0xff] %vm1324_vm5, %v2633_v10  ;;  %v2609_v34 = vadd.f32 %v6159_v15, %v2584_v3  ;;  %v2560_v48 = vmax.f32 %v2200_v51, %v2491_v20  ;;  %v4011_v5 = vpop.f32.mrb[191].mxu0  ;;  %v4106_v53 = vpop.f32.mrb[191].mxu1 }
 0x269   :  { %v2634_v16 = vmax.f32 %v2609_v34, 0.0  ;;  %v2585_v9 = vmax.f32 %v6382_v27, %v2560_v48 }
 0x26a   :  { %v2205_v25 = vpop.f32.mrb[192].mxu0  ;;  %v2496_v41 = vpop.f32.mrb[192].mxu1 }
 0x26b   :  { %3073 = vst.msk [vmem:[%s6329_s3 + $0x160] sm:$0xff] %vm1324_vm5, %v2634_v16  ;;  %v2610_v21 = vadd.f32 %v6159_v15, %v2585_v9  ;;  %v2561_v30 = vmax.f32 %v2205_v25, %v2496_v41  ;;  %v4014_v56 = vpop.f32.mrb[193].mxu0  ;;  %v4109_v52 = vpop.f32.mrb[193].mxu1 }
 0x26d   :  { %v2635_v44 = vmax.f32 %v2610_v21, 0.0  ;;  %v2586_v45 = vmax.f32 %v6383_v57, %v2561_v30 }
 0x26e   :  { %v2210_v31 = vpop.f32.mrb[194].mxu0  ;;  %v2501_v58 = vpop.f32.mrb[194].mxu1 }
 0x26f   :  { %3074 = vst.msk [vmem:[%s6329_s3 + $0x168] sm:$0xff] %vm1324_vm5, %v2635_v44  ;;  %v2611_v18 = vadd.f32 %v6159_v15, %v2586_v45  ;;  %v2562_v28 = vmax.f32 %v2210_v31, %v2501_v58  ;;  %v4017_v8 = vpop.f32.mrb[195].mxu0  ;;  %v4112_v29 = vpop.f32.mrb[195].mxu1 }
 0x271   :  { %v2636_v37 = vmax.f32 %v2611_v18, 0.0  ;;  %v2587_v33 = vmax.f32 %v6386_v46, %v2562_v28 }
 0x272   :  { %v2215_v62 = vpop.f32.mrb[196].mxu0  ;;  %v2506_v11 = vpop.f32.mrb[196].mxu1 }
 0x273   :  { %3075 = vst.msk [vmem:[%s6329_s3 + $0x170] sm:$0xff] %vm1324_vm5, %v2636_v37  ;;  %v2612_v54 = vadd.f32 %v6159_v15, %v2587_v33  ;;  %v2563_v0 = vmax.f32 %v2215_v62, %v2506_v11  ;;  %v4020_v39 = vpop.f32.mrb[197].mxu0  ;;  %v4115_v6 = vpop.f32.mrb[197].mxu1 }
 0x275   :  { %v2637_v4 = vmax.f32 %v2612_v54, 0.0  ;;  %v2588_v23 = vmax.f32 %v6389_v47, %v2563_v0 }
 0x276   :  { %v2220_v12 = vpop.f32.mrb[198].mxu0  ;;  %v2511_v59 = vpop.f32.mrb[198].mxu1 }
 0x277   :  { %3076 = vst.msk [vmem:[%s6329_s3 + $0x178] sm:$0xff] %vm1324_vm5, %v2637_v4  ;;  %v2613_v32 = vadd.f32 %v6159_v15, %v2588_v23  ;;  %v2564_v2 = vmax.f32 %v2220_v12, %v2511_v59  ;;  %v4023_v40 = vpop.f32.mrb[199].mxu0  ;;  %v4118_v49 = vpop.f32.mrb[199].mxu1 }
 0x279   :  { %v2638_v17 = vmax.f32 %v2613_v32, 0.0  ;;  %v2589_v7 = vmax.f32 %v6390_v60, %v2564_v2 }
 0x27b   :  { %3077 = vst.msk [vmem:[%s6329_s3 + $0x180] sm:$0xff] %vm1324_vm5, %v2638_v17  ;;  %v2614_v61 = vadd.f32 %v6159_v15, %v2589_v7 }
 0x27d   :  { %v2639_v24 = vmax.f32 %v2614_v61, 0.0 }
 0x27f   :  { %3078 = vst.msk [vmem:[%s6329_s3 + $0x188] sm:$0xf] %vm1349_vm6, %v2639_v24 }

// kernel: net_forward.3
= control target key start
LH: loop header
LB: loop body
LE: loop exit
PB: predicated region body
PF: predicated region fallthrough
CT: control target
= control target key end

     0   :  { %v2361_v3 = vmov 0.0|0.0   ;;  %vm61_vm0 = vcmask 179200   ;;  %s3517_s0 = inlined_call_operand.vmem [shape: f32[2,4,25,150], index: 0, kind: input, shape index: {}]   ;;  %s3518_s1 = inlined_call_operand.vmem [shape: f32[150,16], index: 1, kind: input, shape index: {}]   ;;  %s3519_s2 = inlined_call_operand.vmem [shape: f32[1,16], index: 2, kind: input, shape index: {}]   ;;  %s3520_s3 = inlined_call_operand.vmem [shape: f32[400,120], index: 3, kind: input, shape index: {}]   ;;  %s3521_s4 = inlined_call_operand.vmem [shape: f32[1,120], index: 4, kind: input, shape index: {}]   ;;  %s3522_s5 = inlined_call_operand.vmem [shape: f32[120,84], index: 5, kind: input, shape index: {}]   ;;  %s3523_s6 = inlined_call_operand.vmem [shape: f32[1,84], index: 6, kind: input, shape index: {}]   ;;  %s3524_s7 = inlined_call_operand.vmem [shape: f32[84,10], index: 7, kind: input, shape index: {}]   ;;  %s3525_s8 = inlined_call_operand.vmem [shape: f32[1,10], index: 8, kind: input, shape index: {}]   ;;  %s3526_s9 = inlined_call_operand.hbm [shape: f32[2,10], index: 9, kind: output, shape index: {}]  }
   0x1   :  { %v33_v0 = vld [vmem:[%s3518_s1] sm:$0xff]  ;;  %v34_v1 = vld [vmem:[%s3518_s1 + $0x8] sm:$0xff]  ;;  %v35_v2 = vld [vmem:[%s3518_s1 + $0x10] sm:$0xff]  ;;  %2013 = vmatprep.subr.bf16.mxu0 %v2361_v3  ;;  %2040 = vmatprep.subr.bf16.mxu1 %v2361_v3 }
   0x2   :  { %v2434_v4 = vpack.c.bf16 %v34_v1, %v33_v0  ;;  %v36_v5 = vld [vmem:[%s3518_s1 + $0x18] sm:$0xff]  ;;  %v37_v7 = vld [vmem:[%s3518_s1 + $0x20] sm:$0xff]  ;;  %v38_v8 = vld [vmem:[%s3518_s1 + $0x28] sm:$0xff] }
   0x3   :  { %v2441_v6 = vpack.c.bf16 %v36_v5, %v35_v2  ;;  %v54_v9 = vld [vmem:[%s3517_s0 + $0x8] sm:$0xff]  ;;  %v2459_v11 = vpack.c.bf16 %v38_v8, %v37_v7  ;;  %v39_v12 = vld [vmem:[%s3518_s1 + $0x30] sm:$0xff]  ;;  %v40_v13 = vld [vmem:[%s3518_s1 + $0x38] sm:$0xff] }
   0x4   :  { %2015 = vmatpush1.bf16.msra.mxu0 %v2434_v4  ;;  %2042 = vmatpush1.bf16.msra.mxu1 %v2434_v4  ;;  %v1794_v10 = vld [vmem:[%s3517_s0 + $0x48] sm:$0xff]  ;;  %v2473_v14 = vpack.c.bf16 %v40_v13, %v39_v12  ;;  %v41_v15 = vld [vmem:[%s3518_s1 + $0x40] sm:$0xff]  ;;  %v43_v18 = vld [vmem:[%s3518_s1 + $0x50] sm:$0xff] }
   0x5   :  { %2016 = vmatprep.subr.bf16.mxu0 %v2361_v3  ;;  %2043 = vmatprep.subr.bf16.mxu1 %v2361_v3  ;;  %v42_v16 = vld [vmem:[%s3518_s1 + $0x48] sm:$0xff]  ;;  %v44_v19 = vld [vmem:[%s3518_s1 + $0x58] sm:$0xff]  ;;  %v45_v21 = vld [vmem:[%s3518_s1 + $0x60] sm:$0xff] }
   0x6   :  { %1789 = vmatprep.mubr.msk.f32.mxu0 %vm61_vm0, %v54_v9  ;;  %1802 = vmatprep.mubr.msk.f32.mxu1 %vm61_vm0, %v1794_v10  ;;  %v2485_v17 = vpack.c.bf16 %v42_v16, %v41_v15  ;;  %v2497_v20 = vpack.c.bf16 %v44_v19, %v43_v18  ;;  %v46_v22 = vld [vmem:[%s3518_s1 + $0x68] sm:$0xff] }
   0x8   :  { %2018 = vmatpush1.bf16.msra.mxu0 %v2441_v6  ;;  %2045 = vmatpush1.bf16.msra.mxu1 %v2441_v6 }
   0x9   :  { %2019 = vmatprep.subr.bf16.mxu0 %v2361_v3  ;;  %2046 = vmatprep.subr.bf16.mxu1 %v2361_v3 }
   0xc   :  { %2021 = vmatpush1.bf16.msra.mxu0 %v2459_v11  ;;  %2048 = vmatpush1.bf16.msra.mxu1 %v2459_v11 }
   0xd   :  { %2022 = vmatprep.subr.bf16.mxu0 %v2361_v3  ;;  %2049 = vmatprep.subr.bf16.mxu1 %v2361_v3 }
  0x10   :  { %2024 = vmatpush1.bf16.msra.mxu0 %v2473_v14  ;;  %2051 = vmatpush1.bf16.msra.mxu1 %v2473_v14 }
  0x11   :  { %2025 = vmatprep.subr.bf16.mxu0 %v2361_v3  ;;  %2052 = vmatprep.subr.bf16.mxu1 %v2361_v3 }
  0x14   :  { %2027 = vmatpush1.bf16.msra.mxu0 %v2485_v17  ;;  %2054 = vmatpush1.bf16.msra.mxu1 %v2485_v17 }
  0x15   :  { %2028 = vmatprep.subr.bf16.mxu0 %v2361_v3  ;;  %2055 = vmatprep.subr.bf16.mxu1 %v2361_v3 }
  0x16   :  { %14 = vsyncpa [#allocation4], 0  ;;  %v2509_v23 = vpack.c.bf16 %v46_v22, %v45_v21  ;;  %v47_v24 = vld [vmem:[%s3518_s1 + $0x70] sm:$0xff]  ;;  %v48_v25 = vld [vmem:[%s3518_s1 + $0x78] sm:$0xff]  ;;  %v2362_v30 = vmov 0.0   ;;  %vm74_vm1 = vcmask 1045504  }
  0x17   :  { %v2521_v26 = vpack.c.bf16 %v48_v25, %v47_v24  ;;  %v49_v27 = vld [vmem:[%s3518_s1 + $0x80] sm:$0xff]  ;;  %v50_v28 = vld [vmem:[%s3518_s1 + $0x88] sm:$0xff]  ;;  %v2544_v31 = vld [vmem:[%s3518_s1 + $0x90] sm:$0x3f]  ;;  %vm972_vm2 = vcmask 1041409   ;;  %vm974_vm3 = vcmask 1043459  }
  0x18   :  { %2030 = vmatpush1.bf16.msra.mxu0 %v2497_v20  ;;  %2057 = vmatpush1.bf16.msra.mxu1 %v2497_v20  ;;  %v2533_v29 = vpack.c.bf16 %v50_v28, %v49_v27  ;;  %v53_v32 = vld [vmem:[%s3517_s0] sm:$0xff]  ;;  %v56_v34 = vld [vmem:[%s3517_s0 + $0x18] sm:$0xff]  ;;  %v55_v36 = vld [vmem:[%s3517_s0 + $0x10] sm:$0xff]  ;;  %vm976_vm4 = vcmask 1045509   ;;  %vm978_vm5 = vcmask 1047559   ;;  %s2365_s23 = smov 32  }
  0x19   :  { %2031 = vmatprep.subr.bf16.mxu0 %v2361_v3  ;;  %2058 = vmatprep.subr.bf16.mxu1 %v2361_v3  ;;  %v1793_v33 = vld [vmem:[%s3517_s0 + $0x40] sm:$0xff]  ;;  %v1796_v35 = vld [vmem:[%s3517_s0 + $0x58] sm:$0xff]  ;;  %v1795_v37 = vld [vmem:[%s3517_s0 + $0x50] sm:$0xff]  ;;  %s2366_s24 = smov 48   ;;  %s2367_s25 = smov 64   ;;  %vm981_vm6 = vcmask 123904  }
  0x1a   :  { %v58_v38 = vld [vmem:[%s3517_s0 + $0x28] sm:$0xff]  ;;  %v57_v40 = vld [vmem:[%s3517_s0 + $0x20] sm:$0xff]  ;;  %v60_v42 = vld [vmem:[%s3517_s0 + $0x38] sm:$0x1]  ;;  %s2368_s26 = smov 80   ;;  %s2369_s27 = smov 112  }
  0x1b   :  { %v1798_v39 = vld [vmem:[%s3517_s0 + $0x68] sm:$0xff]  ;;  %v1797_v41 = vld [vmem:[%s3517_s0 + $0x60] sm:$0xff]  ;;  %v1800_v43 = vld [vmem:[%s3517_s0 + $0x78] sm:$0x1]  ;;  %s2370_s28 = smov 96   ;;  %vm993_vm7 = vcmask 255104  }
  0x1c   :  { %2033 = vmatpush1.bf16.msra.mxu0 %v2509_v23  ;;  %2060 = vmatpush1.bf16.msra.mxu1 %v2509_v23  ;;  %v59_v44 = vld [vmem:[%s3517_s0 + $0x30] sm:$0x1]  ;;  %v1807_v46 = vld [vmem:[%s3517_s0 + $0x88] sm:$0xff]  ;;  %v1806_v48 = vld [vmem:[%s3517_s0 + $0x80] sm:$0xff]  ;;  %vm1007_vm8 = vcmask 386304   ;;  %vm1019_vm9 = vcmask 517504  }
  0x1d   :  { %2034 = vmatprep.subr.bf16.mxu0 %v2361_v3  ;;  %2061 = vmatprep.subr.bf16.mxu1 %v2361_v3  ;;  %v1799_v45 = vld [vmem:[%s3517_s0 + $0x70] sm:$0x1]  ;;  %v1820_v47 = vld [vmem:[%s3517_s0 + $0xc8] sm:$0xff]  ;;  %v1819_v49 = vld [vmem:[%s3517_s0 + $0xc0] sm:$0xff]  ;;  %vm1047_vm10 = vcmask 648704   ;;  %vm1059_vm11 = vcmask 779904  }
  0x1e   :  { %v1809_v50 = vld [vmem:[%s3517_s0 + $0x98] sm:$0xff]  ;;  %v1808_v52 = vld [vmem:[%s3517_s0 + $0x90] sm:$0xff]  ;;  %v1811_v54 = vld [vmem:[%s3517_s0 + $0xa8] sm:$0xff]  ;;  %vm1073_vm12 = vcmask 911104   ;;  %vm1085_vm13 = vcmask 1042304   ;;  %vm1435_vm14 = vcmask 130048  }
  0x1f   :  { %v1822_v51 = vld [vmem:[%s3517_s0 + $0xd8] sm:$0xff]  ;;  %v1821_v53 = vld [vmem:[%s3517_s0 + $0xd0] sm:$0xff]  ;;  %v1824_v55 = vld [vmem:[%s3517_s0 + $0xe8] sm:$0xff]  ;;  %vm2371_vm15 = vmmov 0   ;;  %s2372_s21 = smov [#allocation3]  }
  0x20   :  { %2036 = vmatpush1.bf16.msra.mxu0 %v2521_v26  ;;  %2063 = vmatpush1.bf16.msra.mxu1 %v2521_v26  ;;  %v1810_v56 = vld [vmem:[%s3517_s0 + $0xa0] sm:$0xff]  ;;  %v1813_v58 = vld [vmem:[%s3517_s0 + $0xb8] sm:$0x1]  ;;  %v1812_v60 = vld [vmem:[%s3517_s0 + $0xb0] sm:$0x1] }
  0x21   :  { %2037 = vmatprep.subr.bf16.mxu0 %v2361_v3  ;;  %2064 = vmatprep.subr.bf16.mxu1 %v2361_v3  ;;  %v1823_v57 = vld [vmem:[%s3517_s0 + $0xe0] sm:$0xff]  ;;  %v1826_v59 = vld [vmem:[%s3517_s0 + $0xf8] sm:$0x1]  ;;  %v1825_v61 = vld [vmem:[%s3517_s0 + $0xf0] sm:$0x1] }
  0x22   :  { %v1834_v62 = vld [vmem:[%s3517_s0 + $0x108] sm:$0xff]  ;;  %v1833_v0 = vld [vmem:[%s3517_s0 + $0x100] sm:$0xff]  ;;  %v1836_v2 = vld [vmem:[%s3517_s0 + $0x118] sm:$0xff] }
  0x23   :  { %v1847_v63 = vld [vmem:[%s3517_s0 + $0x148] sm:$0xff]  ;;  %v1846_v1 = vld [vmem:[%s3517_s0 + $0x140] sm:$0xff]  ;;  %v1849_v5 = vld [vmem:[%s3517_s0 + $0x158] sm:$0xff] }
  0x24   :  { %2039 = vmatpush1.bf16.msra.mxu0 %v2533_v29  ;;  %2066 = vmatpush1.bf16.msra.mxu1 %v2533_v29  ;;  %v1835_v7 = vld [vmem:[%s3517_s0 + $0x110] sm:$0xff]  ;;  %v1851_v9 = vld [vmem:[%s3517_s0 + $0x168] sm:$0xff]  ;;  %v1837_v10 = vld [vmem:[%s3517_s0 + $0x120] sm:$0xff] }
  0x25   :  { %114 = vmatprep.subr.mxu0 %v2362_v30  ;;  %220 = vmatprep.subr.mxu1 %v2362_v30  ;;  %v1848_v8 = vld [vmem:[%s3517_s0 + $0x150] sm:$0xff]  ;;  %v1850_v12 = vld [vmem:[%s3517_s0 + $0x160] sm:$0xff]  ;;  %v1853_v13 = vld [vmem:[%s3517_s0 + $0x178] sm:$0x1] }
  0x26   :  { %v1839_v15 = vld [vmem:[%s3517_s0 + $0x130] sm:$0x1]  ;;  %v1873_v18 = vld [vmem:[%s3517_s0 + $0x1c8] sm:$0xff]  ;;  %v1862_v19 = vld [vmem:[%s3517_s0 + $0x198] sm:$0xff] }
  0x27   :  { %v1852_v16 = vld [vmem:[%s3517_s0 + $0x170] sm:$0x1]  ;;  %v1877_v24 = vld [vmem:[%s3517_s0 + $0x1e8] sm:$0xff]  ;;  %v1863_v25 = vld [vmem:[%s3517_s0 + $0x1a0] sm:$0xff] }
  0x28   :  { %1788 = vmatpush1.msk.msra.mxu0 %vm74_vm1, %v2544_v31  ;;  %1801 = vmatpush1.msk.msra.mxu1 %vm74_vm1, %v2544_v31  ;;  %v1861_v21 = vld [vmem:[%s3517_s0 + $0x190] sm:$0xff]  ;;  %v1866_v27 = vld [vmem:[%s3517_s0 + $0x1b8] sm:$0x1] }
  0x29   :  { %143 = vmatmul.mubr.f32.vlgmr.msra.gmra.mrb[0].mxu0 %v53_v32  ;;  %249 = vmatmul.mubr.f32.vlgmr.msra.gmra.mrb[0].mxu1 %v1793_v33  ;;  %v1874_v22 = vld [vmem:[%s3517_s0 + $0x1d0] sm:$0xff]  ;;  %v1879_v28 = vld [vmem:[%s3517_s0 + $0x1f8] sm:$0x1] }
  0x2a   :  { %2067 = vmatprep.subr.bf16.mxu0 %v2361_v3  ;;  %2094 = vmatprep.subr.bf16.mxu1 %v2361_v3 }
  0x2b   :  { %2069 = vmatpush1.bf16.msra.mxu0 %v2434_v4  ;;  %2096 = vmatpush1.bf16.msra.mxu1 %v2434_v4 }
  0x2c   :  { %2070 = vmatprep.subr.bf16.mxu0 %v2361_v3  ;;  %2097 = vmatprep.subr.bf16.mxu1 %v2361_v3 }
  0x2d   :  { %1790 = vmatprep.mubr.msk.f32.mxu0 %vm61_vm0, %v56_v34  ;;  %1803 = vmatprep.mubr.msk.f32.mxu1 %vm61_vm0, %v1796_v35 }
  0x2e   :  { %148 = vmatmul.mubr.f32.gmra.mrb[2].mxu0 %v55_v36  ;;  %254 = vmatmul.mubr.f32.gmra.mrb[2].mxu1 %v1795_v37 }
  0x2f   :  { %2072 = vmatpush1.bf16.msra.mxu0 %v2441_v6  ;;  %2099 = vmatpush1.bf16.msra.mxu1 %v2441_v6 }
  0x30   :  { %2073 = vmatprep.subr.bf16.mxu0 %v2361_v3  ;;  %2100 = vmatprep.subr.bf16.mxu1 %v2361_v3 }
  0x31   :  { %1791 = vmatprep.mubr.msk.f32.mxu0 %vm61_vm0, %v58_v38  ;;  %1804 = vmatprep.mubr.msk.f32.mxu1 %vm61_vm0, %v1798_v39 }
  0x32   :  { %153 = vmatmul.mubr.f32.gmra.mrb[4].mxu0 %v57_v40  ;;  %259 = vmatmul.mubr.f32.gmra.mrb[4].mxu1 %v1797_v41 }
  0x33   :  { %2075 = vmatpush1.bf16.msra.mxu0 %v2459_v11  ;;  %2102 = vmatpush1.bf16.msra.mxu1 %v2459_v11 }
  0x34   :  { %2076 = vmatprep.subr.bf16.mxu0 %v2361_v3  ;;  %2103 = vmatprep.subr.bf16.mxu1 %v2361_v3 }
  0x35   :  { %1792 = vmatprep.mubr.msk.f32.mxu0 %vm61_vm0, %v60_v42  ;;  %1805 = vmatprep.mubr.msk.f32.mxu1 %vm61_vm0, %v1800_v43 }
  0x36   :  { %158 = vmatmul.mubr.f32.gmra.mrb[6].mxu0 %v59_v44  ;;  %264 = vmatmul.mubr.f32.gmra.mrb[6].mxu1 %v1799_v45 }
  0x37   :  { %2078 = vmatpush1.bf16.msra.mxu0 %v2473_v14  ;;  %2105 = vmatpush1.bf16.msra.mxu1 %v2473_v14 }
  0x38   :  { %2079 = vmatprep.subr.bf16.mxu0 %v2361_v3  ;;  %2106 = vmatprep.subr.bf16.mxu1 %v2361_v3 }
  0x39   :  { %1815 = vmatprep.mubr.msk.f32.mxu0 %vm61_vm0, %v1807_v46  ;;  %1828 = vmatprep.mubr.msk.f32.mxu1 %vm61_vm0, %v1820_v47 }
  0x3b   :  { %2081 = vmatpush1.bf16.msra.mxu0 %v2485_v17  ;;  %2108 = vmatpush1.bf16.msra.mxu1 %v2485_v17 }
  0x3c   :  { %2082 = vmatprep.subr.bf16.mxu0 %v2361_v3  ;;  %2109 = vmatprep.subr.bf16.mxu1 %v2361_v3 }
  0x3f   :  { %2084 = vmatpush1.bf16.msra.mxu0 %v2497_v20  ;;  %2111 = vmatpush1.bf16.msra.mxu1 %v2497_v20 }
  0x40   :  { %2085 = vmatprep.subr.bf16.mxu0 %v2361_v3  ;;  %2112 = vmatprep.subr.bf16.mxu1 %v2361_v3 }
  0x43   :  { %2087 = vmatpush1.bf16.msra.mxu0 %v2509_v23  ;;  %2114 = vmatpush1.bf16.msra.mxu1 %v2509_v23 }
  0x44   :  { %2088 = vmatprep.subr.bf16.mxu0 %v2361_v3  ;;  %2115 = vmatprep.subr.bf16.mxu1 %v2361_v3 }
  0x47   :  { %2090 = vmatpush1.bf16.msra.mxu0 %v2521_v26  ;;  %2117 = vmatpush1.bf16.msra.mxu1 %v2521_v26 }
  0x48   :  { %2091 = vmatprep.subr.bf16.mxu0 %v2361_v3  ;;  %2118 = vmatprep.subr.bf16.mxu1 %v2361_v3 }
  0x4b   :  { %2093 = vmatpush1.bf16.msra.mxu0 %v2533_v29  ;;  %2120 = vmatpush1.bf16.msra.mxu1 %v2533_v29 }
  0x4c   :  { %326 = vmatprep.subr.mxu0 %v2362_v30  ;;  %432 = vmatprep.subr.mxu1 %v2362_v30 }
  0x4f   :  { %1814 = vmatpush1.msk.msra.mxu0 %vm74_vm1, %v2544_v31  ;;  %1827 = vmatpush1.msk.msra.mxu1 %vm74_vm1, %v2544_v31 }
  0x50   :  { %355 = vmatmul.mubr.f32.vlgmr.msra.gmra.mrb[8].mxu0 %v1806_v48  ;;  %461 = vmatmul.mubr.f32.vlgmr.msra.gmra.mrb[8].mxu1 %v1819_v49 }
  0x51   :  { %2121 = vmatprep.subr.bf16.mxu0 %v2361_v3  ;;  %2148 = vmatprep.subr.bf16.mxu1 %v2361_v3 }
  0x52   :  { %2123 = vmatpush1.bf16.msra.mxu0 %v2434_v4  ;;  %2150 = vmatpush1.bf16.msra.mxu1 %v2434_v4 }
  0x53   :  { %1816 = vmatprep.mubr.msk.f32.mxu0 %vm61_vm0, %v1809_v50  ;;  %1829 = vmatprep.mubr.msk.f32.mxu1 %vm61_vm0, %v1822_v51 }
  0x54   :  { %360 = vmatmul.mubr.f32.gmra.mrb[10].mxu0 %v1808_v52  ;;  %466 = vmatmul.mubr.f32.gmra.mrb[10].mxu1 %v1821_v53 }
  0x55   :  { %2124 = vmatprep.subr.bf16.mxu0 %v2361_v3  ;;  %2151 = vmatprep.subr.bf16.mxu1 %v2361_v3 }
  0x56   :  { %2126 = vmatpush1.bf16.msra.mxu0 %v2441_v6  ;;  %2153 = vmatpush1.bf16.msra.mxu1 %v2441_v6 }
  0x57   :  { %1817 = vmatprep.mubr.msk.f32.mxu0 %vm61_vm0, %v1811_v54  ;;  %1830 = vmatprep.mubr.msk.f32.mxu1 %vm61_vm0, %v1824_v55 }
  0x58   :  { %365 = vmatmul.mubr.f32.gmra.mrb[12].mxu0 %v1810_v56  ;;  %471 = vmatmul.mubr.f32.gmra.mrb[12].mxu1 %v1823_v57 }
  0x59   :  { %2127 = vmatprep.subr.bf16.mxu0 %v2361_v3  ;;  %2154 = vmatprep.subr.bf16.mxu1 %v2361_v3 }
  0x5a   :  { %2129 = vmatpush1.bf16.msra.mxu0 %v2459_v11  ;;  %2156 = vmatpush1.bf16.msra.mxu1 %v2459_v11 }
  0x5b   :  { %1818 = vmatprep.mubr.msk.f32.mxu0 %vm61_vm0, %v1813_v58  ;;  %1831 = vmatprep.mubr.msk.f32.mxu1 %vm61_vm0, %v1826_v59 }
  0x5c   :  { %370 = vmatmul.mubr.f32.gmra.mrb[14].mxu0 %v1812_v60  ;;  %476 = vmatmul.mubr.f32.gmra.mrb[14].mxu1 %v1825_v61 }
  0x5d   :  { %2130 = vmatprep.subr.bf16.mxu0 %v2361_v3  ;;  %2157 = vmatprep.subr.bf16.mxu1 %v2361_v3 }
  0x5e   :  { %2132 = vmatpush1.bf16.msra.mxu0 %v2473_v14  ;;  %2159 = vmatpush1.bf16.msra.mxu1 %v2473_v14 }
  0x5f   :  { %2133 = vmatprep.subr.bf16.mxu0 %v2361_v3  ;;  %2160 = vmatprep.subr.bf16.mxu1 %v2361_v3 }
  0x60   :  { %1842 = vmatprep.mubr.msk.f32.mxu0 %vm61_vm0, %v1834_v62  ;;  %1855 = vmatprep.mubr.msk.f32.mxu1 %vm61_vm0, %v1847_v63 }
  0x62   :  { %2135 = vmatpush1.bf16.msra.mxu0 %v2485_v17  ;;  %2162 = vmatpush1.bf16.msra.mxu1 %v2485_v17 }
  0x63   :  { %2136 = vmatprep.subr.bf16.mxu0 %v2361_v3  ;;  %2163 = vmatprep.subr.bf16.mxu1 %v2361_v3 }
  0x66   :  { %2138 = vmatpush1.bf16.msra.mxu0 %v2497_v20  ;;  %2165 = vmatpush1.bf16.msra.mxu1 %v2497_v20 }
  0x67   :  { %2139 = vmatprep.subr.bf16.mxu0 %v2361_v3  ;;  %2166 = vmatprep.subr.bf16.mxu1 %v2361_v3 }
  0x6a   :  { %2141 = vmatpush1.bf16.msra.mxu0 %v2509_v23  ;;  %2168 = vmatpush1.bf16.msra.mxu1 %v2509_v23 }
  0x6b   :  { %2142 = vmatprep.subr.bf16.mxu0 %v2361_v3  ;;  %2169 = vmatprep.subr.bf16.mxu1 %v2361_v3 }
  0x6e   :  { %2144 = vmatpush1.bf16.msra.mxu0 %v2521_v26  ;;  %2171 = vmatpush1.bf16.msra.mxu1 %v2521_v26 }
  0x6f   :  { %2145 = vmatprep.subr.bf16.mxu0 %v2361_v3  ;;  %2172 = vmatprep.subr.bf16.mxu1 %v2361_v3 }
  0x72   :  { %2147 = vmatpush1.bf16.msra.mxu0 %v2533_v29  ;;  %2174 = vmatpush1.bf16.msra.mxu1 %v2533_v29 }
  0x73   :  { %564 = vmatprep.subr.mxu0 %v2362_v30  ;;  %670 = vmatprep.subr.mxu1 %v2362_v30 }
  0x76   :  { %1841 = vmatpush1.msk.msra.mxu0 %vm74_vm1, %v2544_v31  ;;  %1854 = vmatpush1.msk.msra.mxu1 %vm74_vm1, %v2544_v31 }
  0x77   :  { %593 = vmatmul.mubr.f32.vlgmr.msra.gmra.mrb[16].mxu0 %v1833_v0  ;;  %699 = vmatmul.mubr.f32.vlgmr.msra.gmra.mrb[16].mxu1 %v1846_v1 }
  0x78   :  { %2175 = vmatprep.subr.bf16.mxu0 %v2361_v3  ;;  %2202 = vmatprep.subr.bf16.mxu1 %v2361_v3 }
  0x79   :  { %2177 = vmatpush1.bf16.msra.mxu0 %v2434_v4  ;;  %2204 = vmatpush1.bf16.msra.mxu1 %v2434_v4  ;;  %v1838_v4 = vld [vmem:[%s3517_s0 + $0x128] sm:$0xff] }
  0x7a   :  { %2178 = vmatprep.subr.bf16.mxu0 %v2361_v3  ;;  %2205 = vmatprep.subr.bf16.mxu1 %v2361_v3 }
  0x7b   :  { %1843 = vmatprep.mubr.msk.f32.mxu0 %vm61_vm0, %v1836_v2  ;;  %1856 = vmatprep.mubr.msk.f32.mxu1 %vm61_vm0, %v1849_v5 }
  0x7c   :  { %598 = vmatmul.mubr.f32.gmra.mrb[18].mxu0 %v1835_v7  ;;  %704 = vmatmul.mubr.f32.gmra.mrb[18].mxu1 %v1848_v8 }
  0x7d   :  { %2180 = vmatpush1.bf16.msra.mxu0 %v2441_v6  ;;  %2207 = vmatpush1.bf16.msra.mxu1 %v2441_v6  ;;  %v1840_v6 = vld [vmem:[%s3517_s0 + $0x138] sm:$0x1] }
  0x7e   :  { %2181 = vmatprep.subr.bf16.mxu0 %v2361_v3  ;;  %2208 = vmatprep.subr.bf16.mxu1 %v2361_v3 }
  0x7f   :  { %1844 = vmatprep.mubr.msk.f32.mxu0 %vm61_vm0, %v1838_v4  ;;  %1857 = vmatprep.mubr.msk.f32.mxu1 %vm61_vm0, %v1851_v9 }
  0x80   :  { %603 = vmatmul.mubr.f32.gmra.mrb[20].mxu0 %v1837_v10  ;;  %709 = vmatmul.mubr.f32.gmra.mrb[20].mxu1 %v1850_v12 }
  0x81   :  { %2183 = vmatpush1.bf16.msra.mxu0 %v2459_v11  ;;  %2210 = vmatpush1.bf16.msra.mxu1 %v2459_v11  ;;  %v1860_v11 = vld [vmem:[%s3517_s0 + $0x188] sm:$0xff] }
  0x82   :  { %2184 = vmatprep.subr.bf16.mxu0 %v2361_v3  ;;  %2211 = vmatprep.subr.bf16.mxu1 %v2361_v3 }
  0x83   :  { %1845 = vmatprep.mubr.msk.f32.mxu0 %vm61_vm0, %v1840_v6  ;;  %1858 = vmatprep.mubr.msk.f32.mxu1 %vm61_vm0, %v1853_v13 }
  0x84   :  { %608 = vmatmul.mubr.f32.gmra.mrb[22].mxu0 %v1839_v15  ;;  %714 = vmatmul.mubr.f32.gmra.mrb[22].mxu1 %v1852_v16 }
  0x85   :  { %2186 = vmatpush1.bf16.msra.mxu0 %v2473_v14  ;;  %2213 = vmatpush1.bf16.msra.mxu1 %v2473_v14  ;;  %v1859_v14 = vld [vmem:[%s3517_s0 + $0x180] sm:$0xff] }
  0x86   :  { %2187 = vmatprep.subr.bf16.mxu0 %v2361_v3  ;;  %2214 = vmatprep.subr.bf16.mxu1 %v2361_v3 }
  0x87   :  { %1868 = vmatprep.mubr.msk.f32.mxu0 %vm61_vm0, %v1860_v11  ;;  %1881 = vmatprep.mubr.msk.f32.mxu1 %vm61_vm0, %v1873_v18 }
  0x89   :  { %2189 = vmatpush1.bf16.msra.mxu0 %v2485_v17  ;;  %2216 = vmatpush1.bf16.msra.mxu1 %v2485_v17  ;;  %v1872_v17 = vld [vmem:[%s3517_s0 + $0x1c0] sm:$0xff] }
  0x8a   :  { %2190 = vmatprep.subr.bf16.mxu0 %v2361_v3  ;;  %2217 = vmatprep.subr.bf16.mxu1 %v2361_v3 }
  0x8d   :  { %2192 = vmatpush1.bf16.msra.mxu0 %v2497_v20  ;;  %2219 = vmatpush1.bf16.msra.mxu1 %v2497_v20  ;;  %v1875_v20 = vld [vmem:[%s3517_s0 + $0x1d8] sm:$0xff] }
  0x8e   :  { %2193 = vmatprep.subr.bf16.mxu0 %v2361_v3  ;;  %2220 = vmatprep.subr.bf16.mxu1 %v2361_v3 }
  0x91   :  { %2195 = vmatpush1.bf16.msra.mxu0 %v2509_v23  ;;  %2222 = vmatpush1.bf16.msra.mxu1 %v2509_v23  ;;  %v1864_v23 = vld [vmem:[%s3517_s0 + $0x1a8] sm:$0xff] }
  0x92   :  { %2196 = vmatprep.subr.bf16.mxu0 %v2361_v3  ;;  %2223 = vmatprep.subr.bf16.mxu1 %v2361_v3 }
  0x95   :  { %2198 = vmatpush1.bf16.msra.mxu0 %v2521_v26  ;;  %2225 = vmatpush1.bf16.msra.mxu1 %v2521_v26  ;;  %v1876_v26 = vld [vmem:[%s3517_s0 + $0x1e0] sm:$0xff] }
  0x96   :  { %2199 = vmatprep.subr.bf16.mxu0 %v2361_v3  ;;  %2226 = vmatprep.subr.bf16.mxu1 %v2361_v3 }
  0x99   :  { %2201 = vmatpush1.bf16.msra.mxu0 %v2533_v29  ;;  %2228 = vmatpush1.bf16.msra.mxu1 %v2533_v29  ;;  %v1865_v29 = vld [vmem:[%s3517_s0 + $0x1b0] sm:$0x1] }
  0x9a   :  { %776 = vmatprep.subr.mxu0 %v2362_v30  ;;  %882 = vmatprep.subr.mxu1 %v2362_v30 }
  0x9d   :  { %1867 = vmatpush1.msk.msra.mxu0 %vm74_vm1, %v2544_v31  ;;  %1880 = vmatpush1.msk.msra.mxu1 %vm74_vm1, %v2544_v31  ;;  %v1878_v31 = vld [vmem:[%s3517_s0 + $0x1f0] sm:$0x1]  ;;  %vm1698_vm1 = vcmask 1043456   ;;  %s1780_s0 = sshll.u32 %s2372_s21, 4  ;;  %s1781_s0 = int_to_ptr.vmem [resolvable:$true] %s1780_s0 }
  0x9e   :  { %805 = vmatmul.mubr.f32.vlgmr.msra.gmra.mrb[24].mxu0 %v1859_v14  ;;  %911 = vmatmul.mubr.f32.vlgmr.msra.gmra.mrb[24].mxu1 %v1872_v17  ;;  %p2342_p1 = scmp.lt.s32.totalorder %s1781_s0, %s1781_s0 }
  0x9f   :  { %1869 = vmatprep.mubr.msk.f32.mxu0 %vm61_vm0, %v1862_v19  ;;  %1882 = vmatprep.mubr.msk.f32.mxu1 %vm61_vm0, %v1875_v20 }
  0xa0   :  { %2261 = vmatprep.subr.bf16.mxu1 %v2361_v3 }
  0xa2   :  { %810 = vmatmul.mubr.f32.gmra.mrb[26].mxu0 %v1861_v21  ;;  %916 = vmatmul.mubr.f32.gmra.mrb[26].mxu1 %v1874_v22 }
  0xa3   :  { %1870 = vmatprep.mubr.msk.f32.mxu0 %vm61_vm0, %v1864_v23  ;;  %1883 = vmatprep.mubr.msk.f32.mxu1 %vm61_vm0, %v1877_v24 }
  0xa6   :  { %815 = vmatmul.mubr.f32.gmra.mrb[28].mxu0 %v1863_v25  ;;  %921 = vmatmul.mubr.f32.gmra.mrb[28].mxu1 %v1876_v26 }
  0xa7   :  { %1871 = vmatprep.mubr.msk.f32.mxu0 %vm61_vm0, %v1866_v27  ;;  %1884 = vmatprep.mubr.msk.f32.mxu1 %vm61_vm0, %v1879_v28  ;;  %vm1601_vm0 = vcmask 982016  }
  0xaa   :  { %820 = vmatmul.mubr.f32.gmra.mrb[30].mxu0 %v1865_v29  ;;  %926 = vmatmul.mubr.f32.gmra.mrb[30].mxu1 %v1878_v31 }
  0xfc   :  { %v144_v32 = vpop.f32.mrb[0].mxu0  ;;  %v250_v33 = vpop.f32.mrb[0].mxu1 }
  0xfd   :  { %v481_v34 = vmax.f32 %v144_v32, %v250_v33  ;;  %v146_v35 = vpop.f32.mrb[1].mxu0  ;;  %v252_v36 = vpop.f32.mrb[1].mxu1 }
  0xfe   :  { %v2363_v35 = vmov 1983009808  }
  0xff   :  { %v954_v36 = vunpack.c.l.s4 %v2363_v35 }
 0x101   :  { %v149_v37 = vpop.f32.mrb[2].mxu0  ;;  %v255_v38 = vpop.f32.mrb[2].mxu1 }
 0x102   :  { %v482_v39 = vmax.f32 %v149_v37, %v255_v38  ;;  %v151_v40 = vpop.f32.mrb[3].mxu0  ;;  %v257_v41 = vpop.f32.mrb[3].mxu1  ;;  %v956_v37 = vlaneseq }
 0x103   :  { %v955_v40 = vunpack.c.0.s8 %v954_v36 }
 0x104   :  { %v957_v41 = vshrl.u32 %v956_v37, 7 }
 0x105   :  { %v154_v42 = vpop.f32.mrb[4].mxu0  ;;  %v260_v43 = vpop.f32.mrb[4].mxu1 }
 0x106   :  { %v483_v44 = vmax.f32 %v154_v42, %v260_v43  ;;  %v156_v45 = vpop.f32.mrb[5].mxu0  ;;  %v262_v46 = vpop.f32.mrb[5].mxu1 }
 0x107   :  { %v2919_v45 = vsub.s32 %v955_v40, %v957_v41 }
 0x109   :  { %v159_v47 = vpop.f32.mrb[6].mxu0  ;;  %v265_v48 = vpop.f32.mrb[6].mxu1 }
 0x10a   :  { %v484_v49 = vmax.f32 %v159_v47, %v265_v48  ;;  %v161_v50 = vpop.f32.mrb[7].mxu0  ;;  %v267_v51 = vpop.f32.mrb[7].mxu1 }
 0x123   :  { %v356_v52 = vpop.f32.mrb[8].mxu0  ;;  %v462_v53 = vpop.f32.mrb[8].mxu1 }
 0x124   :  { %v485_v54 = vmax.f32 %v356_v52, %v462_v53  ;;  %v358_v55 = vpop.f32.mrb[9].mxu0  ;;  %v464_v56 = vpop.f32.mrb[9].mxu1 }
 0x126   :  { %v489_v57 = vmax.f32 %v481_v34, %v485_v54  ;;  %v2914_v34 = vld [vmem:[%s3519_s2] ss:$0 sm:$0xff]  ;;  %s2364_s2 = smov 16  }
 0x127   :  { %v361_v58 = vpop.f32.mrb[10].mxu0  ;;  %v467_v59 = vpop.f32.mrb[10].mxu1 }
 0x128   :  { %v486_v60 = vmax.f32 %v361_v58, %v467_v59  ;;  %v363_v61 = vpop.f32.mrb[11].mxu0  ;;  %v469_v62 = vpop.f32.mrb[11].mxu1  ;;  %v499_v38 = vadd.f32 %v2914_v34, %v489_v57 }
 0x12a   :  { %v490_v63 = vmax.f32 %v482_v39, %v486_v60  ;;  %v503_v42 = vmax.f32 %v499_v38, 0.0 }
 0x12b   :  { %v366_v0 = vpop.f32.mrb[12].mxu0  ;;  %v472_v1 = vpop.f32.mrb[12].mxu1 }
 0x12c   :  { %v487_v2 = vmax.f32 %v366_v0, %v472_v1  ;;  %v368_v5 = vpop.f32.mrb[13].mxu0  ;;  %v474_v7 = vpop.f32.mrb[13].mxu1  ;;  %v500_v39 = vadd.f32 %v2914_v34, %v490_v63  ;;  %v1021_v46 = vcombine.high %v503_v42, %v503_v42 }
 0x12e   :  { %v491_v8 = vmax.f32 %v483_v44, %v487_v2  ;;  %v504_v43 = vmax.f32 %v500_v39, 0.0  ;;  %v2925_v50 = vrot.slane %v1021_v46, %v2919_v45 }
 0x12f   :  { %v371_v4 = vpop.f32.mrb[14].mxu0  ;;  %v477_v9 = vpop.f32.mrb[14].mxu1 }
 0x130   :  { %v488_v10 = vmax.f32 %v371_v4, %v477_v9  ;;  %v373_v12 = vpop.f32.mrb[15].mxu0  ;;  %v479_v6 = vpop.f32.mrb[15].mxu1  ;;  %v501_v44 = vadd.f32 %v2914_v34, %v491_v8  ;;  %v1147_v47 = vcombine.high %v504_v43, %v504_v43  ;;  %v2928_v51 = vrot.slane %v504_v43, %v2919_v45 }
 0x131   :  { %v2943_v62 = vcombine.high %v2925_v50, %v2925_v50 }
 0x132   :  { %v492_v13 = vmax.f32 %v484_v49, %v488_v10  ;;  %v505_v48 = vmax.f32 %v501_v44, 0.0  ;;  %v2922_v49 = vrot.slane %v503_v42, %v2919_v45  ;;  %v2931_v52 = vrot.slane %v1147_v47, %v2919_v45 }
 0x133   :  { %v2947_v0 = vcombine.high %v2928_v51, %v2928_v51 }
 0x134   :  { %v1269_v53 = vcombine.high %v505_v48, %v505_v48  ;;  %v2935_v59 = vcombine.high %v2922_v49, %v2922_v49  ;;  %v2938_v60 = vrot.slane %v505_v48, %v2919_v45  ;;  %v502_v61 = vadd.f32 %v2914_v34, %v492_v13 }
 0x135   :  { %v2954_v7 = vcombine.high %v2931_v52, %v2931_v52  ;;  %v983_v8 = vrot.slane %v2922_v49, 1 }
 0x136   :  { %v2950_v1 = vrot.slane %v1269_v53, %v2919_v45  ;;  %v2960_v6 = vcombine.high %v2938_v60, %v2938_v60  ;;  %v506_v13 = vmax.f32 %v502_v61, 0.0  ;;  %v1234_v39 = vrot.slane %v2938_v60, 1 }
 0x137   :  { %v1198_v35 = vrot.slane %v2954_v7, 1 }
 0x138   :  { %v2980_v40 = vrot.slane %v506_v13, %v2919_v45  ;;  %v1258_v41 = vrot.slane %v2960_v6, 1  ;;  %v1296_v42 = vrot.slane %v2950_v1, 1 }
 0x14a   :  { %v594_v15 = vpop.f32.mrb[16].mxu0  ;;  %v700_v16 = vpop.f32.mrb[16].mxu1 }
 0x14b   :  { %v931_v11 = vmax.f32 %v594_v15, %v700_v16  ;;  %v596_v18 = vpop.f32.mrb[17].mxu0  ;;  %v702_v14 = vpop.f32.mrb[17].mxu1  ;;  %v1009_v15 = vrot.slane %v2935_v59, 1  ;;  %v1049_v16 = vrot.slane %v2925_v50, 1 }
 0x14f   :  { %v2893_v17 = vpop.f32.mrb[18].mxu0  ;;  %v2895_v19 = vpop.f32.mrb[18].mxu1 }
 0x150   :  { %v932_v20 = vmax.f32 %v2893_v17, %v2895_v19  ;;  %v601_v21 = vpop.f32.mrb[19].mxu0  ;;  %v707_v22 = vpop.f32.mrb[19].mxu1 }
 0x151   :  { %v1075_v21 = vrot.slane %v2943_v62, 1 }
 0x153   :  { %v2899_v23 = vpop.f32.mrb[20].mxu0  ;;  %v2901_v24 = vpop.f32.mrb[20].mxu1 }
 0x154   :  { %v933_v25 = vmax.f32 %v2899_v23, %v2901_v24  ;;  %v606_v26 = vpop.f32.mrb[21].mxu0  ;;  %v712_v27 = vpop.f32.mrb[21].mxu1 }
 0x155   :  { %v1136_v27 = vrot.slane %v2947_v0, 1 }
 0x157   :  { %v2905_v28 = vpop.f32.mrb[22].mxu0  ;;  %v2907_v29 = vpop.f32.mrb[22].mxu1 }
 0x158   :  { %v934_v31 = vmax.f32 %v2905_v28, %v2907_v29  ;;  %v611_v32 = vpop.f32.mrb[23].mxu0  ;;  %v717_v33 = vpop.f32.mrb[23].mxu1 }
 0x159   :  { %v1174_v32 = vrot.slane %v2931_v52, 1  ;;  %v2973_v33 = vcombine.high %v2950_v1, %v2950_v1 }
 0x171   :  { %v806_v54 = vpop.f32.mrb[24].mxu0  ;;  %v912_v55 = vpop.f32.mrb[24].mxu1 }
 0x172   :  { %v935_v56 = vmax.f32 %v806_v54, %v912_v55  ;;  %v808_v57 = vpop.f32.mrb[25].mxu0  ;;  %v914_v58 = vpop.f32.mrb[25].mxu1 }
 0x174   :  { %v939_v63 = vmax.f32 %v931_v11, %v935_v56  ;;  %v1112_v11 = vrot.slane %v2928_v51, 1  ;;  %v1320_v56 = vrot.slane %v2973_v33, 1 }
 0x175   :  { %v811_v2 = vpop.f32.mrb[26].mxu0  ;;  %v917_v5 = vpop.f32.mrb[26].mxu1 }
 0x176   :  { %v943_v4 = vadd.f32 %v2914_v34, %v939_v63  ;;  %v936_v9 = vmax.f32 %v811_v2, %v917_v5  ;;  %v813_v10 = vpop.f32.mrb[27].mxu0  ;;  %v919_v12 = vpop.f32.mrb[27].mxu1 }
 0x178   :  { %v947_v18 = vmax.f32 %v943_v4, 0.0  ;;  %v940_v14 = vmax.f32 %v932_v20, %v936_v9 }
 0x179   :  { %v816_v22 = vpop.f32.mrb[28].mxu0  ;;  %v922_v26 = vpop.f32.mrb[28].mxu1 }
 0x17a   :  { %v966_v36 = vrot.slane %v947_v18, %v2919_v45  ;;  %v1029_v37 = vcombine.high %v947_v18, %v947_v18  ;;  %v944_v17 = vadd.f32 %v2914_v34, %v940_v14  ;;  %v937_v19 = vmax.f32 %v816_v22, %v922_v26  ;;  %v818_v20 = vpop.f32.mrb[29].mxu0  ;;  %v924_v38 = vpop.f32.mrb[29].mxu1 }
 0x17c   :  { %v1036_v43 = vrot.slane %v1029_v37, %v2919_v45  ;;  %v948_v44 = vmax.f32 %v944_v17, 0.0  ;;  %v941_v46 = vmax.f32 %v933_v25, %v937_v19  ;;  %v986_v47 = vsel %vm972_vm2, %v966_v36, %v983_v8 }
 0x17d   :  { %v821_v48 = vpop.f32.mrb[30].mxu0  ;;  %v927_v53 = vpop.f32.mrb[30].mxu1  ;;  %v987_v54 = vsel %vm974_vm3, %v966_v36, %v986_v47  ;;  %v996_v55 = vcombine.high %v966_v36, %v966_v36  ;;  %v2991_v57 = vrot.slane %v966_v36, 7 }
 0x17e   :  { %v2994_v58 = vrot.slane %v948_v44, %v2919_v45  ;;  %v1155_v61 = vcombine.high %v948_v44, %v948_v44  ;;  %v945_v63 = vadd.f32 %v2914_v34, %v941_v46  ;;  %v938_v2 = vmax.f32 %v821_v48, %v927_v53  ;;  %v929_v23 = vpop.f32.mrb[31].mxu1  ;;  %v823_v24 = vpop.f32.mrb[31].mxu0 }
 0x17f   :  { %v988_v25 = vsel %vm976_vm4, %v966_v36, %v987_v54  ;;  %v999_v5 = vrot.slane %v996_v55, 7  ;;  %v1012_v8 = vsel %vm972_vm2, %v996_v55, %v1009_v15  ;;  %v1039_v4 = vrot.slane %v1036_v43, 7 }
 0x180   :  { %v3000_v9 = vrot.slane %v1155_v61, %v2919_v45  ;;  %v949_v10 = vmax.f32 %v945_v63, 0.0  ;;  %v942_v12 = vmax.f32 %v934_v31, %v938_v2  ;;  %v989_v13 = vsel %vm978_vm5, %v966_v36, %v988_v25 }
 0x181   :  { %990 = vrot.lane.b32.xlu0 %v989_v13, %s2364_s2  ;;  %v1000_v18 = vsel %vm972_vm2, %v999_v5, %v2935_v59  ;;  %v1013_v14 = vsel %vm974_vm3, %v996_v55, %v1012_v8  ;;  %v1040_v15 = vsel %vm972_vm2, %v1039_v4, %v2925_v50  ;;  %v1052_v22 = vsel %vm972_vm2, %v1036_v43, %v1049_v16 }
 0x182   :  { %v3014_v26 = vrot.slane %v949_v10, %v2919_v45  ;;  %v1277_v28 = vcombine.high %v949_v10, %v949_v10  ;;  %v946_v29 = vadd.f32 %v2914_v34, %v942_v12  ;;  %v1001_v31 = vsel %vm974_vm3, %v999_v5, %v1000_v18 }
 0x183   :  { %v1002_v36 = vsel %vm976_vm4, %v999_v5, %v1001_v31  ;;  %v1014_v37 = vsel %vm976_vm4, %v996_v55, %v1013_v14  ;;  %v1041_v59 = vsel %vm974_vm3, %v1039_v4, %v1040_v15  ;;  %v1053_v17 = vsel %vm974_vm3, %v1036_v43, %v1052_v22 }
 0x184   :  { %v3023_v50 = vrot.slane %v1277_v28, %v2919_v45  ;;  %v950_v16 = vmax.f32 %v946_v29, 0.0  ;;  %v1003_v19 = vsel %vm978_vm5, %v999_v5, %v1002_v36  ;;  %v1015_v20 = vsel %vm978_vm5, %v996_v55, %v1014_v37 }
 0x185   :  { %1004 = vrot.lane.b32.xlu1 %v1003_v19, %s2365_s23  ;;  %1016 = vrot.lane.b32.xlu0 %v1015_v20, %s2366_s24  ;;  %v1042_v34 = vsel %vm976_vm4, %v1039_v4, %v1041_v59  ;;  %v1054_v38 = vsel %vm976_vm4, %v1036_v43, %v1053_v17  ;;  %v1124_v44 = vcombine.high %v2994_v58, %v2994_v58  ;;  %v1165_v46 = vrot.slane %v3000_v9, 7 }
 0x186   :  { %v1346_v47 = vrot.slane %v950_v16, %v2919_v45  ;;  %v1043_v48 = vsel %vm978_vm5, %v1039_v4, %v1042_v34  ;;  %v1055_v53 = vsel %vm978_vm5, %v1036_v43, %v1054_v38  ;;  %v1115_v54 = vsel %vm972_vm2, %v2994_v58, %v1112_v11 }
 0x187   :  { %v1139_v55 = vsel %vm972_vm2, %v1124_v44, %v1136_v27  ;;  %v1116_v61 = vsel %vm974_vm3, %v2994_v58, %v1115_v54  ;;  %v1177_v63 = vsel %vm972_vm2, %v3000_v9, %v1174_v32  ;;  %v1062_v2 = vcombine.high %v1036_v43, %v1036_v43 }
 0x188   :  { %v3050_v23 = vrot.slane %v1346_v47, 7  ;;  %v1140_v24 = vsel %vm974_vm3, %v1124_v44, %v1139_v55  ;;  %v1117_v11 = vsel %vm976_vm4, %v2994_v58, %v1116_v61  ;;  %v1178_v25 = vsel %vm974_vm3, %v3000_v9, %v1177_v63 }
 0x189   :  { %1044 = vrot.lane.b32.xlu1 %v1043_v48, %s2367_s25  ;;  %1056 = vrot.lane.b32.xlu0 %v1055_v53, %s2368_s26  ;;  %v1141_v27 = vsel %vm976_vm4, %v1124_v44, %v1140_v24  ;;  %v1118_v32 = vsel %vm978_vm5, %v2994_v58, %v1117_v11  ;;  %v1179_v43 = vsel %vm976_vm4, %v3000_v9, %v1178_v25  ;;  %v1065_v5 = vrot.slane %v1062_v2, 7 }
 0x18a   :  { %v1350_v8 = vsel %vm972_vm2, %v3050_v23, %v2980_v40  ;;  %v1142_v4 = vsel %vm978_vm5, %v1124_v44, %v1141_v27  ;;  %v1180_v10 = vsel %vm978_vm5, %v3000_v9, %v1179_v43  ;;  %v1078_v12 = vsel %vm972_vm2, %v1062_v2, %v1075_v21 }
 0x18b   :  { %v3075_v13 = vsel %vm974_vm3, %v3050_v23, %v1350_v8  ;;  %v1079_v18 = vsel %vm974_vm3, %v1062_v2, %v1078_v12  ;;  %v1066_v14 = vsel %vm972_vm2, %v1065_v5, %v2943_v62  ;;  %v1127_v15 = vrot.slane %v1124_v44, 7 }
 0x18c   :  { %v1080_v40 = vsel %vm976_vm4, %v1062_v2, %v1079_v18  ;;  %v1067_v22 = vsel %vm974_vm3, %v1065_v5, %v1066_v14  ;;  %v1166_v28 = vsel %vm972_vm2, %v1165_v46, %v2931_v52  ;;  %v1237_v21 = vsel %vm972_vm2, %v3014_v26, %v1234_v39 }
 0x18d   :  { %1143 = vrot.lane.b32.xlu1 %v1142_v4, %s2366_s24  ;;  %1119 = vrot.lane.b32.xlu0 %v1118_v32, %s2364_s2  ;;  %v1081_v29 = vsel %vm978_vm5, %v1062_v2, %v1080_v40  ;;  %v1068_v62 = vsel %vm976_vm4, %v1065_v5, %v1067_v22  ;;  %v1128_v31 = vsel %vm972_vm2, %v1127_v15, %v2947_v0  ;;  %v1287_v36 = vrot.slane %v3023_v50, 7 }
 0x18e   :  { %v1069_v52 = vsel %vm978_vm5, %v1065_v5, %v1068_v62  ;;  %v1129_v37 = vsel %vm974_vm3, %v1127_v15, %v1128_v31  ;;  %v1167_v59 = vsel %vm974_vm3, %v1165_v46, %v1166_v28  ;;  %v1238_v39 = vsel %vm974_vm3, %v3014_v26, %v1237_v21  ;;  %v1373_v21 = vld [vmem:[%s3520_s3 + $0x80] sm:$0xff] }
 0x18f   :  { %v1130_v17 = vsel %vm976_vm4, %v1127_v15, %v1129_v37  ;;  %v1168_v16 = vsel %vm976_vm4, %v1165_v46, %v1167_v59  ;;  %v1239_v19 = vsel %vm976_vm4, %v3014_v26, %v1238_v39  ;;  %v1246_v0 = vcombine.high %v3014_v26, %v3014_v26  ;;  %v1358_v37 = vld [vmem:[%s3520_s3 + $0x8] sm:$0xff]  ;;  %v1391_v59 = vld [vmem:[%s3520_s3 + $0x110] sm:$0xff] }
 0x190   :  { %v1131_v20 = vsel %vm978_vm5, %v1127_v15, %v1130_v17  ;;  %v1169_v34 = vsel %vm978_vm5, %v1165_v46, %v1168_v16  ;;  %v1240_v38 = vsel %vm978_vm5, %v3014_v26, %v1239_v19  ;;  %v1299_v44 = vsel %vm972_vm2, %v3023_v50, %v1296_v42  ;;  %v1392_v19 = vld [vmem:[%s3520_s3 + $0x118] sm:$0xff] }
 0x191   :  { %1181 = vrot.lane.b32.xlu1 %v1180_v10, %s2368_s26  ;;  %1082 = vrot.lane.b32.xlu0 %v1081_v29, %s2369_s27  ;;  %v1261_v47 = vsel %vm972_vm2, %v1246_v0, %v1258_v41  ;;  %v1249_v48 = vrot.slane %v1246_v0, 7  ;;  %v1300_v46 = vsel %vm974_vm3, %v3023_v50, %v1299_v44  ;;  %v1288_v53 = vsel %vm972_vm2, %v1287_v36, %v2950_v1  ;;  %v1374_v29 = vld [vmem:[%s3520_s3 + $0x88] sm:$0xff] }
 0x192   :  { %v1262_v54 = vsel %vm974_vm3, %v1246_v0, %v1261_v47  ;;  %v1301_v42 = vsel %vm976_vm4, %v3023_v50, %v1300_v46  ;;  %v1289_v55 = vsel %vm974_vm3, %v1287_v36, %v1288_v53  ;;  %v1186_v61 = vcombine.high %v3000_v9, %v3000_v9  ;;  %v1360_v46 = vld [vmem:[%s3520_s3 + $0x18] sm:$0xff] }
 0x193   :  { %v1263_v63 = vsel %vm976_vm4, %v1246_v0, %v1262_v54  ;;  %v1250_v41 = vsel %vm972_vm2, %v1249_v48, %v2960_v6  ;;  %v3134_v2 = vsel %vm978_vm5, %v3023_v50, %v1301_v42  ;;  %v1290_v1 = vsel %vm976_vm4, %v1287_v36, %v1289_v55  ;;  %v1393_v55 = vld [vmem:[%s3520_s3 + $0x120] sm:$0xff] }
 0x194   :  { %v1264_v24 = vsel %vm978_vm5, %v1246_v0, %v1263_v63  ;;  %v1251_v11 = vsel %vm974_vm3, %v1249_v48, %v1250_v41  ;;  %v3140_v25 = vsel %vm978_vm5, %v1287_v36, %v1290_v1  ;;  %v1189_v27 = vrot.slane %v1186_v61, 7  ;;  %v1375_v0 = vld [vmem:[%s3520_s3 + $0x90] sm:$0xff]  ;;  %v1377_v63 = vld [vmem:[%s3520_s3 + $0xa0] sm:$0xff]  ;;  %v1378_v41 = vld [vmem:[%s3520_s3 + $0xa8] sm:$0xff] }
 0x195   :  { %1070 = vrot.lane.b32.xlu1 %v1069_v52, %s2370_s28  ;;  %1132 = vrot.lane.b32.xlu0 %v1131_v20, %s2365_s23  ;;  %v1252_v6 = vsel %vm976_vm4, %v1249_v48, %v1251_v11  ;;  %v1308_v9 = vcombine.high %v3023_v50, %v3023_v50  ;;  %v1201_v32 = vsel %vm972_vm2, %v1186_v61, %v1198_v35  ;;  %v1105_v43 = vrot.slane %v2994_v58, 7  ;;  %v1357_v52 = vld [vmem:[%s3520_s3] sm:$0xff]  ;;  %v1376_v20 = vld [vmem:[%s3520_s3 + $0x98] sm:$0xff] }
 0x196   :  { %v1253_v5 = vsel %vm978_vm5, %v1249_v48, %v1252_v6  ;;  %v1190_v8 = vsel %vm972_vm2, %v1189_v27, %v2954_v7  ;;  %v1202_v4 = vsel %vm974_vm3, %v1186_v61, %v1201_v32  ;;  %v973_v10 = vsel %vm972_vm2, %v2991_v57, %v2922_v49  ;;  %v1389_v49 = vld [vmem:[%s3520_s3 + $0x100] sm:$0xff]  ;;  %v1359_v48 = vld [vmem:[%s3520_s3 + $0x10] sm:$0xff] }
 0x197   :  { %v1191_v12 = vsel %vm974_vm3, %v1189_v27, %v1190_v8  ;;  %v1311_v50 = vrot.slane %v1308_v9, 7  ;;  %v1323_v35 = vsel %vm972_vm2, %v1308_v9, %v1320_v56  ;;  %v1203_v58 = vsel %vm976_vm4, %v1186_v61, %v1202_v4  ;;  %v1390_v56 = vld [vmem:[%s3520_s3 + $0x108] sm:$0xff]  ;;  %v1361_v11 = vld [vmem:[%s3520_s3 + $0x20] sm:$0xff]  ;;  %v1363_v4 = vld [vmem:[%s3520_s3 + $0x30] sm:$0xff] }
 0x198   :  { %v1192_v18 = vsel %vm976_vm4, %v1189_v27, %v1191_v12  ;;  %v1324_v14 = vsel %vm974_vm3, %v1308_v9, %v1323_v35  ;;  %v3166_v7 = vsel %vm978_vm5, %v1186_v61, %v1203_v58  ;;  %v975_v15 = vsel %vm974_vm3, %v2991_v57, %v973_v10  ;;  %v1394_v61 = vld [vmem:[%s3520_s3 + $0x128] sm:$0xff]  ;;  %v1364_v10 = vld [vmem:[%s3520_s3 + $0x38] sm:$0xff]  ;;  %v1381_v35 = vld [vmem:[%s3520_s3 + $0xc0] sm:$0xff] }
 0x199   :  { %1170 = vrot.lane.b32.xlu0 %v1169_v34, %s2367_s25  ;;  %1241 = vrot.lane.b32.xlu1 %v1240_v38, %s2364_s2  ;;  %v3179_v40 = vsel %vm978_vm5, %v1189_v27, %v1192_v18  ;;  %v1312_v22 = vsel %vm972_vm2, %v1311_v50, %v2973_v33  ;;  %v1325_v28 = vsel %vm976_vm4, %v1308_v9, %v1324_v14  ;;  %v1227_v47 = vrot.slane %v3014_v26, 7  ;;  %v1362_v27 = vld [vmem:[%s3520_s3 + $0x28] sm:$0xff]  ;;  %v1397_v18 = vld [vmem:[%s3520_s3 + $0x140] sm:$0xff] }
 0x19a   :  { %v1313_v62 = vsel %vm974_vm3, %v1311_v50, %v1312_v22  ;;  %v3192_v31 = vsel %vm978_vm5, %v1308_v9, %v1325_v28  ;;  %v977_v36 = vsel %vm976_vm4, %v2991_v57, %v975_v15  ;;  %v1352_v33 = vsel %vm976_vm4, %v3050_v23, %v3075_v13  ;;  %v1382_v58 = vld [vmem:[%s3520_s3 + $0xc8] sm:$0xff]  ;;  %v1383_v28 = vld [vmem:[%s3520_s3 + $0xd0] sm:$0xff] }
 0x19b   :  { %v1314_v39 = vsel %vm976_vm4, %v1311_v50, %v1313_v62  ;;  %v979_v17 = vsel %vm978_vm5, %v2991_v57, %v977_v36  ;;  %v1353_v13 = vsel %vm978_vm5, %v3050_v23, %v1352_v33  ;;  %v1106_v16 = vsel %vm972_vm2, %v1105_v43, %v2928_v51  ;;  %v1398_v14 = vld [vmem:[%s3520_s3 + $0x148] sm:$0xff]  ;;  %v1367_v36 = vld [vmem:[%s3520_s3 + $0x50] sm:$0xff]  ;;  %v1368_v33 = vld [vmem:[%s3520_s3 + $0x58] sm:$0xff] }
 0x19c   :  { %v1315_v57 = vsel %vm978_vm5, %v1311_v50, %v1314_v39  ;;  %982 = vst.msk [vmem:[#allocation2] sm:$0x3] %vm981_vm6, %v979_v17  ;;  %1355 = vst.msk [vmem:[#allocation2 + $0x6] sm:$0x3] %vm981_vm6, %v1353_v13  ;;  %v1107_v51 = vsel %vm974_vm3, %v1105_v43, %v1106_v16  ;;  %v2262_v23 = vpack.c.bf16 %v1390_v56, %v1389_v49  ;;  %v1365_v56 = vld [vmem:[%s3520_s3 + $0x40] sm:$0xff]  ;;  %v1402_v17 = vld [vmem:[%s3520_s3 + $0x168] sm:$0xff] }
 0x19d   :  { %1265 = vrot.lane.b32.xlu0 %v1264_v24, %s2366_s24  ;;  %1254 = vrot.lane.b32.xlu1 %v1253_v5, %s2365_s23  ;;  %v1108_v34 = vsel %vm976_vm4, %v1105_v43, %v1107_v51  ;;  %v2229_v38 = vpack.c.bf16 %v1374_v29, %v1373_v21  ;;  %v2231_v44 = vpack.c.bf16 %v1358_v37, %v1357_v52  ;;  %v1380_v5 = vld [vmem:[%s3520_s3 + $0xb8] sm:$0xff]  ;;  %v1399_v21 = vld [vmem:[%s3520_s3 + $0x150] sm:$0xff] }
 0x19e   :  { %v1109_v53 = vsel %vm978_vm5, %v1105_v43, %v1108_v34  ;;  %2263 = vmatpush1.bf16.msra.mxu1 %v2262_v23  ;;  %v2265_v54 = vpack.c.bf16 %v1392_v19, %v1391_v59  ;;  %v2233_v42 = vpack.c.bf16 %v1376_v20, %v1375_v0  ;;  %v1228_v26 = vsel %vm972_vm2, %v1227_v47, %v2938_v60  ;;  %v1379_v43 = vld [vmem:[%s3520_s3 + $0xb0] sm:$0xff]  ;;  %v1400_v29 = vld [vmem:[%s3520_s3 + $0x158] sm:$0xff]  ;;  %v1385_v37 = vld [vmem:[%s3520_s3 + $0xe0] sm:$0xff] }
 0x19f   :  { %1111 = vst.msk [vmem:[#allocation2 + $0x2] sm:$0x3] %vm981_vm6, %v1109_v53  ;;  %2230 = vmatprep.subr.bf16.mxu0 %v2229_v38  ;;  %2264 = vmatprep.subr.bf16.mxu1 %v2361_v3  ;;  %v1229_v1 = vsel %vm974_vm3, %v1227_v47, %v1228_v26  ;;  %v2235_v24 = vpack.c.bf16 %v1360_v46, %v1359_v48  ;;  %v1386_v59 = vld [vmem:[%s3520_s3 + $0xe8] sm:$0xff]  ;;  %v1401_v39 = vld [vmem:[%s3520_s3 + $0x160] sm:$0xff]  ;;  %v1388_v51 = vld [vmem:[%s3520_s3 + $0xf8] sm:$0xff]  ;;  %vm1694_vm2 = vcmask 687104  }
 0x1a0   :  { %2232 = vmatpush3.bf16.msra.mxu0 %v2231_v44  ;;  %v1230_v60 = vsel %vm976_vm4, %v1227_v47, %v1229_v1  ;;  %v2268_v9 = vpack.c.bf16 %v1394_v61, %v1393_v55  ;;  %v2237_v32 = vpack.c.bf16 %v1378_v41, %v1377_v63  ;;  %v2239_v8 = vpack.c.bf16 %v1362_v27, %v1361_v11  ;;  %v1369_v19 = vld [vmem:[%s3520_s3 + $0x60] sm:$0xff]  ;;  %v1370_v0 = vld [vmem:[%s3520_s3 + $0x68] sm:$0xff]  ;;  %v1403_v23 = vld [vmem:[%s3520_s3 + $0x170] sm:$0xff] }
 0x1a1   :  { %1303 = vrot.lane.b32.xlu0 %v3134_v2, %s2368_s26  ;;  %1292 = vrot.lane.b32.xlu1 %v3140_v25, %s2367_s25  ;;  %v1231_v6 = vsel %vm978_vm5, %v1227_v47, %v1230_v60  ;;  %v1395_v2 = vld [vmem:[%s3520_s3 + $0x130] sm:$0xff]  ;;  %v1396_v25 = vld [vmem:[%s3520_s3 + $0x138] sm:$0xff]  ;;  %v2241_v50 = vpack.c.bf16 %v1380_v5, %v1379_v43  ;;  %v2243_v15 = vpack.c.bf16 %v1364_v10, %v1363_v4  ;;  %vm1772_vm3 = vcmask 74752  }
 0x1a2   :  { %2266 = vmatpush1.bf16.msra.mxu1 %v2265_v54  ;;  %2234 = vmatprep.subr.bf16.mxu0 %v2233_v42  ;;  %1233 = vst.msk [vmem:[#allocation2 + $0x4] sm:$0x3] %vm981_vm6, %v1231_v6  ;;  %v2271_v12 = vpack.c.bf16 %v1396_v25, %v1395_v2  ;;  %v2245_v49 = vpack.c.bf16 %v1382_v58, %v1381_v35  ;;  %v1404_v34 = vld [vmem:[%s3520_s3 + $0x178] sm:$0xff]  ;;  %v1371_v47 = vld [vmem:[%s3520_s3 + $0x70] sm:$0xff]  ;;  %v1405_v53 = vld [vmem:[%s3520_s3 + $0x180] sm:$0xff] }
 0x1a3   :  { %2267 = vmatprep.subr.bf16.mxu1 %v2361_v3  ;;  %v2274_v22 = vpack.c.bf16 %v1398_v14, %v1397_v18  ;;  %v2277_v52 = vpack.c.bf16 %v1400_v29, %v1399_v21  ;;  %v2251_v13 = vpack.c.bf16 %v1368_v33, %v1367_v36  ;;  %v2253_v16 = vpack.c.bf16 %v1386_v59, %v1385_v37  ;;  %v1372_v48 = vld [vmem:[%s3520_s3 + $0x78] sm:$0xff]  ;;  %v1406_v54 = vld [vmem:[%s3520_s3 + $0x188] sm:$0xff]  ;;  %v1579_v58 = vld [vmem:[%s3522_s5] sm:$0xff] }
 0x1a4   :  { %2236 = vmatpush3.bf16.msra.mxu0 %v2235_v24  ;;  %v2280_v20 = vpack.c.bf16 %v1402_v17, %v1401_v39  ;;  %v2255_v38 = vpack.c.bf16 %v1370_v0, %v1369_v19  ;;  %v2283_v46 = vpack.c.bf16 %v1404_v34, %v1403_v23  ;;  %v2259_v42 = vpack.c.bf16 %v1372_v48, %v1371_v47  ;;  %v1580_v18 = vld [vmem:[%s3522_s5 + $0x8] sm:$0xff]  ;;  %v1586_v36 = vld [vmem:[%s3522_s5 + $0x38] sm:$0xff]  ;;  %v1589_v39 = vld [vmem:[%s3522_s5 + $0x50] sm:$0xff] }
 0x1a5   :  { %1194 = vrot.lane.b32.xlu0 %v3179_v40, %s2370_s28  ;;  %1316 = vrot.lane.b32.xlu1 %v1315_v57, %s2370_s28  ;;  %v1366_v40 = vld [vmem:[%s3520_s3 + $0x48] sm:$0xff]  ;;  %v1387_v57 = vld [vmem:[%s3520_s3 + $0xf0] sm:$0xff]  ;;  %v2286_v55 = vpack.c.bf16 %v1406_v54, %v1405_v53 }
 0x1a6   :  { %2269 = vmatpush1.bf16.msra.mxu1 %v2268_v9  ;;  %2238 = vmatprep.subr.bf16.mxu0 %v2237_v32  ;;  %v2247_v62 = vpack.c.bf16 %v1366_v40, %v1365_v56  ;;  %v2257_v44 = vpack.c.bf16 %v1388_v51, %v1387_v57  ;;  %v2289_v40 = vpack.c.bf16 %v1580_v18, %v1579_v58  ;;  %v1584_v29 = vld [vmem:[%s3522_s5 + $0x28] sm:$0xff]  ;;  %v1590_v17 = vld [vmem:[%s3522_s5 + $0x58] sm:$0xff]  ;;  %v1678_v51 = vld [vmem:[%s3524_s7 + $0x10] sm:$0xff] }
 0x1a7   :  { %2270 = vmatprep.subr.bf16.mxu1 %v2361_v3  ;;  %v1588_v37 = vld [vmem:[%s3522_s5 + $0x48] sm:$0xff]  ;;  %v1679_v34 = vld [vmem:[%s3524_s7 + $0x18] sm:$0xff]  ;;  %v1680_v47 = vld [vmem:[%s3524_s7 + $0x20] sm:$0xff] }
 0x1a8   :  { %2240 = vmatpush3.bf16.msra.mxu0 %v2239_v8  ;;  %v1592_v19 = vld [vmem:[%s3522_s5 + $0x68] sm:$0xff]  ;;  %v1682_v53 = vld [vmem:[%s3524_s7 + $0x30] sm:$0xff]  ;;  %v1683_v54 = vld [vmem:[%s3524_s7 + $0x38] sm:$0xff] }
 0x1a9   :  { %1327 = vrot.lane.b32.xlu0 %v3192_v31, %s2369_s27  ;;  %1205 = vrot.lane.b32.xlu1 %v3166_v7, %s2369_s27  ;;  %v1384_v7 = vld [vmem:[%s3520_s3 + $0xd8] sm:$0xff]  ;;  %v1677_v57 = vld [vmem:[%s3524_s7 + $0x8] sm:$0xff] }
 0x1aa   :  { %2272 = vmatpush1.bf16.msra.mxu1 %v2271_v12  ;;  %2242 = vmatprep.subr.bf16.mxu0 %v2241_v50  ;;  %v2249_v31 = vpack.c.bf16 %v1384_v7, %v1383_v28  ;;  %v1582_v28 = vld [vmem:[%s3522_s5 + $0x18] sm:$0xff]  ;;  %v1681_v48 = vld [vmem:[%s3524_s7 + $0x28] sm:$0xff] }
 0x1ab   :  { %2273 = vmatprep.subr.bf16.mxu1 %v2361_v3 }
 0x1ac   :  { %2244 = vmatpush3.bf16.msra.mxu0 %v2243_v15 }
 0x1ad   :  { %2246 = vmatprep.subr.bf16.mxu0 %v2245_v49 }
 0x1ae   :  { %2275 = vmatpush1.bf16.msra.mxu1 %v2274_v22  ;;  %v1581_v22 = vld [vmem:[%s3522_s5 + $0x10] sm:$0xff] }
 0x1af   :  { %2276 = vmatprep.subr.bf16.mxu1 %v2361_v3  ;;  %v2292_v21 = vpack.c.bf16 %v1582_v28, %v1581_v22 }
 0x1b0   :  { %2248 = vmatpush3.bf16.msra.mxu0 %v2247_v62 }
 0x1b1   :  { %2250 = vmatprep.subr.bf16.mxu0 %v2249_v31  ;;  %v1585_v31 = vld [vmem:[%s3522_s5 + $0x30] sm:$0xff] }
 0x1b2   :  { %2278 = vmatpush1.bf16.msra.mxu1 %v2277_v52  ;;  %v2298_v33 = vpack.c.bf16 %v1586_v36, %v1585_v31  ;;  %v1587_v52 = vld [vmem:[%s3522_s5 + $0x40] sm:$0xff] }
 0x1b3   :  { %2279 = vmatprep.subr.bf16.mxu1 %v2361_v3  ;;  %v2301_v59 = vpack.c.bf16 %v1588_v37, %v1587_v52 }
 0x1b4   :  { %2252 = vmatpush3.bf16.msra.mxu0 %v2251_v13  ;;  %v2304_v13 = vpack.c.bf16 %v1590_v17, %v1589_v39 }
 0x1b5   :  { %2254 = vmatprep.subr.bf16.mxu0 %v2253_v16  ;;  %v1591_v16 = vld [vmem:[%s3522_s5 + $0x60] sm:$0xff] }
 0x1b6   :  { %2281 = vmatpush1.bf16.msra.mxu1 %v2280_v20  ;;  %v2307_v0 = vpack.c.bf16 %v1592_v19, %v1591_v16  ;;  %v1676_v20 = vld [vmem:[%s3524_s7] sm:$0xff] }
 0x1b7   :  { %2282 = vmatprep.subr.bf16.mxu1 %v2361_v3  ;;  %v2310_v23 = vpack.c.bf16 %v1677_v57, %v1676_v20 }
 0x1b8   :  { %2256 = vmatpush3.bf16.msra.mxu0 %v2255_v38  ;;  %v1593_v38 = vld [vmem:[%s3522_s5 + $0x70] sm:$0xff] }
 0x1b9   :  { %2258 = vmatprep.subr.bf16.mxu0 %v2257_v44  ;;  %v2313_v44 = vpack.c.bf16 %v1679_v34, %v1678_v51 }
 0x1ba   :  { %2284 = vmatpush1.bf16.msra.mxu1 %v2283_v46  ;;  %v2316_v46 = vpack.c.bf16 %v1681_v48, %v1680_v47 }
 0x1bb   :  { %2285 = vmatprep.subr.bf16.mxu1 %v2361_v3 }
 0x1bc   :  { %2260 = vmatpush3.bf16.msra.mxu0 %v2259_v42  ;;  %v2319_v42 = vpack.c.bf16 %v1683_v54, %v1682_v53 }
 0x1bd   :  { %2288 = vmatprep.subr.bf16.mxu0 %v2361_v3 }
 0x1be   :  { %2287 = vmatpush1.bf16.msra.mxu1 %v2286_v55 }
 0x1bf   :  { %2309 = vmatprep.subr.bf16.mxu1 %v2361_v3 }
 0x1f3   :  { %v991_v26 = vpop.permute.xlu0 %990 }
 0x1f4   :  { %994 = vst.msk [vmem:[#allocation2] sm:$0x3] %vm993_vm7, %v991_v26 }
 0x1f7   :  { %v1005_v61 = vpop.permute.xlu1 %1004  ;;  %v1017_v63 = vpop.permute.xlu0 %1016 }
 0x1f8   :  { %1008 = vst.msk [vmem:[#allocation2] sm:$0x3] %vm1007_vm8, %v1005_v61  ;;  %v1885_v61 = vld [vmem:[%s3521_s4] ss:$0 sm:$0xff] }
 0x1f9   :  { %1020 = vst.msk [vmem:[#allocation2] sm:$0x3] %vm1019_vm9, %v1017_v63 }
 0x1fb   :  { %v1045_v41 = vpop.permute.xlu1 %1044  ;;  %v1057_v1 = vpop.permute.xlu0 %1056 }
 0x1fc   :  { %1048 = vst.msk [vmem:[#allocation2] sm:$0x3] %vm1047_vm10, %v1045_v41 }
 0x1fd   :  { %1060 = vst.msk [vmem:[#allocation2] sm:$0x3] %vm1059_vm11, %v1057_v1 }
 0x1ff   :  { %v1144_v24 = vpop.permute.xlu1 %1143  ;;  %v1120_v60 = vpop.permute.xlu0 %1119 }
 0x200   :  { %1122 = vst.msk [vmem:[#allocation2 + $0x2] sm:$0x3] %vm993_vm7, %v1120_v60 }
 0x203   :  { %v1182_v11 = vpop.permute.xlu1 %1181  ;;  %v1083_v27 = vpop.permute.xlu0 %1082 }
 0x207   :  { %v1071_v6 = vpop.permute.xlu1 %1070  ;;  %v1133_v9 = vpop.permute.xlu0 %1132 }
 0x208   :  { %1074 = vst.msk [vmem:[#allocation2] sm:$0x3] %vm1073_vm12, %v1071_v6 }
 0x209   :  { %1135 = vst.msk [vmem:[#allocation2 + $0x2] sm:$0x3] %vm1007_vm8, %v1133_v9  ;;  %v1686_v9 = vld [vmem:[%s3524_s7 + $0x50] sm:$0xf] }
 0x20a   :  { %1086 = vst.msk [vmem:[#allocation2] sm:$0x3] %vm1085_vm13, %v1083_v27  ;;  %v1684_v27 = vld [vmem:[%s3524_s7 + $0x40] sm:$0xff] }
 0x20b   :  { %1146 = vst.msk [vmem:[#allocation2 + $0x2] sm:$0x3] %vm1019_vm9, %v1144_v24  ;;  %v1171_v32 = vpop.permute.xlu0 %1170  ;;  %v1242_v2 = vpop.permute.xlu1 %1241 }
 0x20c   :  { %1173 = vst.msk [vmem:[#allocation2 + $0x2] sm:$0x3] %vm1047_vm10, %v1171_v32  ;;  %v1887_v32 = vld [vmem:[%s3523_s6] ss:$0 sm:$0xff] }
 0x20d   :  { %1244 = vst.msk [vmem:[#allocation2 + $0x4] sm:$0x3] %vm993_vm7, %v1242_v2 }
 0x20e   :  { %1184 = vst.msk [vmem:[#allocation2 + $0x2] sm:$0x3] %vm1059_vm11, %v1182_v11 }
 0x20f   :  { %v1266_v25 = vpop.permute.xlu0 %1265  ;;  %v1255_v43 = vpop.permute.xlu1 %1254 }
 0x210   :  { %1257 = vst.msk [vmem:[#allocation2 + $0x4] sm:$0x3] %vm1007_vm8, %v1255_v43 }
 0x211   :  { %1268 = vst.msk [vmem:[#allocation2 + $0x4] sm:$0x3] %vm1019_vm9, %v1266_v25 }
 0x213   :  { %v1304_v5 = vpop.permute.xlu0 %1303  ;;  %v1293_v8 = vpop.permute.xlu1 %1292 }
 0x214   :  { %1295 = vst.msk [vmem:[#allocation2 + $0x4] sm:$0x3] %vm1047_vm10, %v1293_v8 }
 0x215   :  { %1306 = vst.msk [vmem:[#allocation2 + $0x4] sm:$0x3] %vm1059_vm11, %v1304_v5 }
 0x217   :  { %v1195_v4 = vpop.permute.xlu0 %1194  ;;  %v1317_v10 = vpop.permute.xlu1 %1316 }
 0x218   :  { %1197 = vst.msk [vmem:[#allocation2 + $0x2] sm:$0x3] %vm1073_vm12, %v1195_v4  ;;  %1319 = vst.msk [vmem:[#allocation2 + $0x4] sm:$0x3] %vm1073_vm12, %v1317_v10 }
 0x21b   :  { %v1328_v12 = vpop.permute.xlu0 %1327  ;;  %v1206_v50 = vpop.permute.xlu1 %1205 }
 0x21c   :  { %1330 = vst.msk [vmem:[#allocation2 + $0x4] sm:$0x3] %vm1085_vm13, %v1328_v12  ;;  %1208 = vst.msk [vmem:[#allocation2 + $0x2] sm:$0x3] %vm1085_vm13, %v1206_v50 }
 0x223   :  { %v1356_v35 = vld [vmem:[#allocation2] sm:$0xff] }
 0x224   :  { %v1415_v14 = vcombine.high %v1356_v35, %v1356_v35  ;;  %v1422_v15 = vrot.slane %v1356_v35, %v2919_v45 }
 0x226   :  { %v1430_v49 = vcombine.high %v1422_v15, %v1422_v15  ;;  %v1429_v56 = vrot.slane %v1415_v14, %v2919_v45  ;;  %v1583_v45 = vld [vmem:[%s3522_s5 + $0x20] sm:$0xff] }
 0x227   :  { %v2295_v62 = vpack.c.bf16 %v1584_v29, %v1583_v45 }
 0x228   :  { %1502 = vmatprep.mubr.f32.mxu0 %v1430_v49  ;;  %v1431_v7 = vcombine.high %v1429_v56, %v1429_v56 }
 0x229   :  { %1503 = vmatmul.mubr.f32.vlgmr.msra.gmra.mrb[32].mxu0 %v1422_v15 }
 0x22a   :  { %1886 = vmatprep.mubr.msk.f32.mxu1 %vm1435_vm14, %v1431_v7  ;;  %2290 = vmatpush3.bf16.msra.mxu0 %v2289_v40 }
 0x22b   :  { %1573 = vmatmul.mubr.f32.vlgmr.msra.gmra.mrb[32].mxu1 %v1429_v56  ;;  %2291 = vmatprep.subr.bf16.mxu0 %v2361_v3 }
 0x22c   :  { %1985 = vmatprep.mubr.msk.f32.mxu0 %vm2371_vm15, %v2362_v30  ;;  %2010 = vmatprep.mubr.msk.f32.mxu1 %vm2371_vm15, %v2362_v30 }
 0x22d   :  { %2311 = vmatpush3.bf16.msra.mxu1 %v2310_v23 }
 0x22e   :  { %2293 = vmatpush3.bf16.msra.mxu0 %v2292_v21  ;;  %2312 = vmatprep.subr.bf16.mxu1 %v2361_v3 }
 0x22f   :  { %2294 = vmatprep.subr.bf16.mxu0 %v2361_v3 }
 0x231   :  { %2314 = vmatpush3.bf16.msra.mxu1 %v2313_v44 }
 0x232   :  { %2296 = vmatpush3.bf16.msra.mxu0 %v2295_v62  ;;  %2315 = vmatprep.subr.bf16.mxu1 %v2361_v3 }
 0x233   :  { %2297 = vmatprep.subr.bf16.mxu0 %v2361_v3 }
 0x235   :  { %2317 = vmatpush3.bf16.msra.mxu1 %v2316_v46 }
 0x236   :  { %2299 = vmatpush3.bf16.msra.mxu0 %v2298_v33  ;;  %2318 = vmatprep.subr.bf16.mxu1 %v2361_v3 }
 0x237   :  { %2300 = vmatprep.subr.bf16.mxu0 %v2361_v3 }
 0x239   :  { %2320 = vmatpush3.bf16.msra.mxu1 %v2319_v42 }
 0x23a   :  { %2302 = vmatpush3.bf16.msra.mxu0 %v2301_v59  ;;  %2321 = vmatprep.subr.bf16.mxu1 %v2361_v3 }
 0x23b   :  { %2303 = vmatprep.subr.bf16.mxu0 %v2361_v3 }
 0x23e   :  { %2305 = vmatpush3.bf16.msra.mxu0 %v2304_v13 }
 0x23f   :  { %2306 = vmatprep.subr.bf16.mxu0 %v2361_v3  ;;  %v1685_v3 = vld [vmem:[%s3524_s7 + $0x48] sm:$0xff]  ;;  %s2337_s7 = scalar_lea.vmem %s1781_s0, 32 }
 0x240   :  { %v2322_v6 = vpack.c.bf16 %v1685_v3, %v1684_v27  ;;  %p2338_p0 = scmp.ne.s32.totalorder %s1781_s0, %s2337_s7  ;;  %p2343_p2 = scmp.lt.s32.totalorder %s2337_s7, %s2337_s7 }
 0x242   :  { %2308 = vmatpush3.bf16.msra.mxu0 %v2307_v0  ;;  %2323 = vmatpush3.bf16.msra.mxu1 %v2322_v6  ;;  %p2344_p3 = por %p2343_p2, %p2342_p1 }
 0x243   :  { %1983 = vmatprep.subr.mxu0 %v2362_v30  ;;  %2008 = vmatprep.subr.mxu1 %v2362_v30  ;;  %v1889_v30 = vld [vmem:[%s3525_s8] ss:$0 sm:$0xff] }
 0x244   :  { %p2345_p4 = pnand %p2344_p3, %p2338_p0 }
 0x246   :  { %1984 = vmatpush3.msra.mxu0 %v1593_v38  ;;  %2009 = vmatpush3.msk.msra.mxu1 %vm1698_vm1, %v1686_v9 }
 0x2fc   :  { %v1924_v55 = vpop.f32.mrb[32].mxu0 }
 0x2fd   :  { %v1925_v26 = vpop.f32.mrb[33].mxu0 }
 0x2fe   :  { %v1926_v63 = vadd.f32 %v1925_v26, %v1924_v55  ;;  %v1574_v41 = vpop.f32.mrb[32].mxu1 }
 0x2ff   :  { %v1576_v1 = vpop.f32.mrb[33].mxu1 }
 0x300   :  { %v1505_v24 = vadd.f32 %v1926_v63, %v1885_v61 }
 0x302   :  { %v1575_v60 = vadd.f32 %v1574_v41, %v1505_v24 }
 0x304   :  { %v1578_v11 = vmax.f32 %v1575_v60, 0.0 }
 0x306   :  { %1986 = vmatmul.mubr.msk.f32.vlgmr.msra.gmra.mrb[34].mxu0 %vm1601_vm0, %v1578_v11 }
 0x3d9   :  { %v1671_v2 = vpop.f32.mrb[34].mxu0 }
 0x3da   :  { %v1672_v25 = vadd.f32 %v1887_v32, %v1671_v2  ;;  %v1987_v43 = vpop.f32.mrb[35].mxu0 }
 0x3dc   :  { %v1675_v5 = vmax.f32 %v1672_v25, 0.0 }
 0x3de   :  { %2011 = vmatmul.mubr.msk.f32.vlgmr.msra.gmra.mrb[34].mxu1 %vm1694_vm2, %v1675_v5 }
 0x4b1   :  { %v1768_v8 = vpop.f32.mrb[34].mxu1 }
 0x4b2   :  { %v1769_v4 = vadd.f32 %v1889_v30, %v1768_v8  ;;  %v2012_v10 = vpop.f32.mrb[35].mxu1 }
 0x4b4   :  { %1773 = vst.msk [vmem:[#allocation3] sm:$0x3] %vm1772_vm3, %v1769_v4 }
 0x4b5   :  { %2348 = shalt.err (!%p2345_p4)
}
 0x4b6   :  { %s2349_s22 = scalar_lea.hbm %s3526_s9, 32 }
 0x4b7   :  { %p2350_p5 = scmp.ne.s32.totalorder %s3526_s9, %s2349_s22  ;;  %p2353_p6 = scmp.lt.u32.totalorder %s2349_s22, %s3526_s9 }
 0x4b9   :  { %p2355_p7 = pnand %p2353_p6, %p2350_p5 }
 0x4bb   :  { %2358 = shalt.err (!%p2355_p7)
}
 0x4bc   :  { %1783 = dma.vmem_to_hbm [thread:$0]  %s1781_s0, 32, %s3526_s9, [#allocation4]  }
 0x4bd   :  { %2359 = dma.done.wait [#allocation4], 32  }
 0x4be   :  { %2360 = vsyncadd [#allocation4], 4294967264 }
 0x4bf   :  { %1787 = vsyncpa [#allocation4], 1 }

</bundles_post_ra>
